<compile_context>
chip_gen: v7x
topology: tpu7x:2x2x1
jax: 0.10.0
libtpu: 0.0.40
codegen_flags: <defaults>
</compile_context>

<pallas_src>
import functools

import jax
import jax.numpy as jnp
from jax.experimental import pallas as pl
from jax.experimental.pallas import tpu as pltpu


def _cbam_kernel(x_ref, w1_ref, w2t_ref, tpl_ref, o_ref, *, HW):
    # x_ref block: (Nb, C, HW)  lane-dense flattened spatial axis.
    Nb, C, _ = x_ref.shape

    x = x_ref[...].astype(jnp.float32)                     # (Nb, C, HW)
    w1 = w1_ref[...].astype(jnp.float32)                   # (Cr, C)
    w2t = w2t_ref[...].astype(jnp.float32)                 # (Cr, C) == w2.T

    # ---------------- Channel attention ----------------
    # Single lane-dense reduction over the flattened spatial axis.
    inv_hw = 1.0 / float(HW)
    avg_c = jnp.sum(x, axis=-1) * inv_hw                   # (Nb, C)
    max_c = jnp.max(x, axis=-1)                            # (Nb, C)

    def shared_mlp(s):                                     # (Nb, C) -> (Nb, C), VPU only
        # hidden[n, r] = relu(sum_c s[n, c] * w1[r, c])
        h = jnp.maximum(
            jnp.sum(s[:, None, :] * w1[None, :, :], axis=-1), 0.0)   # (Nb, Cr)
        # out[n, c] = sum_r h[n, r] * w2t[r, c]   (C stays on the lane axis)
        return jnp.sum(h[:, :, None] * w2t[None, :, :], axis=1)      # (Nb, C)

    ch_att = jax.nn.sigmoid(shared_mlp(avg_c) + shared_mlp(max_c))    # (Nb, C)
    x1 = x * ch_att[:, :, None]                            # (Nb, C, HW) lane-dense scale

    # ---------------- Spatial attention ----------------
    # Channel reduce stays lane-dense; the 7x7 conv is one MXU matmul against a
    # precomputed Toeplitz matrix (padding + [avg, max] order baked in).
    inv_c = 1.0 / float(C)
    avg_s = jnp.sum(x1, axis=1) * inv_c                    # (Nb, HW)
    max_s = jnp.max(x1, axis=1)                            # (Nb, HW)
    sp_in = jnp.concatenate([avg_s, max_s], axis=-1)       # (Nb, 2*HW)

    att = jnp.dot(sp_in, tpl_ref[...],
                  preferred_element_type=jnp.float32,
                  precision=jax.lax.Precision.HIGHEST)     # (Nb, HW) lane-dense
    sp_att = jax.nn.sigmoid(att)

    # Full-width (Nb, C, HW) store.
    o_ref[...] = (x1 * sp_att[:, None, :]).astype(o_ref.dtype)


def _build_spatial_conv_matrix(wconv, H, W):
    """(2, K, K) conv weights -> (2*HW, HW) Toeplitz matrix.

    Row m*HW + i holds the contribution of input position i of channel m
    (0 = avg, 1 = max) to every output position, with 'SAME' zero padding
    baked in, so  att_flat = concat([avg_flat, max_flat], -1) @ T  reproduces
    the PyTorch Conv2d(2, 1, K, padding=K//2, bias=False) exactly.
    """
    HW = H * W
    basis = jnp.eye(2 * HW, dtype=jnp.float32).reshape(2 * HW, 2, H, W)
    t = jax.lax.conv_general_dilated(
        basis, wconv[None].astype(jnp.float32), window_strides=(1, 1),
        padding='SAME', dimension_numbers=('NCHW', 'OIHW', 'NCHW'),
        precision=jax.lax.Precision.HIGHEST)
    return t.reshape(2 * HW, HW)


def _num_tensorcores_per_chip():
    try:
        kind = jax.devices()[0].device_kind.lower()
        if "v7" in kind:
            return 2
    except Exception:  # pragma: no cover - defensive fallback
        pass
    return 1


def _pick_block_batch(N, bytes_per_sample, num_tc):
    """Samples per grid step.

    1 TC (v5e/v6e): single bigger blocks (~2 MiB) amortize the ~0.35us/step
    pipeline overhead.  2 TC (v7x): keep >= 2 grid steps so the second
    TensorCore isn't idle, with ~1 MiB blocks.
    """
    target = (2 << 20) if num_tc == 1 else (1 << 20)
    nb = max(1, int(target // max(1, bytes_per_sample)))
    if num_tc >= 2 and N >= 2:
        nb = min(nb, N // 2)
    return max(1, min(nb, N))


def cbam_pallas(x, w1, w2, wconv):
    """x: (N, C, H, W); w1: (C//r, C); w2: (C, C//r); wconv: (2, K, K)."""
    N, C, H, W = x.shape
    Cr = w1.shape[0]
    HW = H * W

    # Precomputed operands (host/XLA side, one-off).
    tpl = _build_spatial_conv_matrix(wconv, H, W)          # (2*HW, HW)
    w2t = jnp.transpose(w2).astype(jnp.float32)            # (Cr, C)
    w1f = w1.astype(jnp.float32)

    # Lane-dense view: last dim = H*W (free reshape on contiguous NCHW data).
    x_flat = x.reshape(N, C, HW)

    num_tc = _num_tensorcores_per_chip()
    nb = _pick_block_batch(N, C * HW * 4, num_tc)
    steps = pl.cdiv(N, nb)
    n_pad = steps * nb
    if n_pad != N:
        # Pad the batch so the grid math is exact; padded samples are discarded.
        x_flat = jnp.pad(x_flat, ((0, n_pad - N), (0, 0), (0, 0)))

    block_bytes = nb * C * HW * 4
    tpl_bytes = 2 * HW * HW * 4
    # Budget VMEM explicitly: double-buffered in/out blocks + f32 temporaries
    # (x, x1, staging) + resident weights.  Cap at 48 MiB (v7x has 64 MiB).
    vmem_limit = int(min(48 << 20,
                         max(32 << 20, 10 * block_bytes + tpl_bytes + (2 << 20))))

    kernel = functools.partial(_cbam_kernel, HW=HW)

    out_flat = pl.pallas_call(
        kernel,
        out_shape=jax.ShapeDtypeStruct((n_pad, C, HW), x.dtype),
        grid_spec=pltpu.PrefetchScalarGridSpec(
            num_scalar_prefetch=0,
            grid=(steps,),
            in_specs=[
                pl.BlockSpec((nb, C, HW), lambda b: (b, 0, 0)),
                pl.BlockSpec((Cr, C), lambda b: (0, 0)),       # resident across steps
                pl.BlockSpec((Cr, C), lambda b: (0, 0)),       # resident across steps
                pl.BlockSpec((2 * HW, HW), lambda b: (0, 0)),  # resident across steps
            ],
            out_specs=pl.BlockSpec((nb, C, HW), lambda b: (b, 0, 0)),
        ),
        compiler_params=pltpu.CompilerParams(
            dimension_semantics=("parallel",),
            vmem_limit_bytes=vmem_limit,
        ),
    )(x_flat, w1f, w2t, tpl)

    return out_flat[:N].reshape(N, C, H, W)


def cbam_reference(x, w1, w2, wconv):
    """Pure-JAX reference mirroring the PyTorch forward exactly (NCHW)."""
    avg = jnp.mean(x, axis=(2, 3), keepdims=True)
    mx = jnp.max(x, axis=(2, 3), keepdims=True)

    def fc(v):  # v: (N, C, 1, 1)
        h = jax.nn.relu(jnp.einsum('rc,nchw->nrhw', w1, v))
        return jnp.einsum('cr,nrhw->nchw', w2, h)

    ch_att = jax.nn.sigmoid(fc(avg) + fc(mx))
    x1 = x * ch_att

    avg_s = jnp.mean(x1, axis=1, keepdims=True)
    max_s = jnp.max(x1, axis=1, keepdims=True)
    amap = jnp.concatenate([avg_s, max_s], axis=1)          # (N, 2, H, W)
    conv = jax.lax.conv_general_dilated(
        amap, wconv[None], window_strides=(1, 1), padding='SAME',
        dimension_numbers=('NCHW', 'OIHW', 'NCHW'))
    return x1 * jax.nn.sigmoid(conv)


if __name__ == "__main__":
    # Keep kernel MXU matmul and the pure-JAX reference at full f32 precision.
    jax.config.update("jax_default_matmul_precision", "highest")

    # small shapes consistent with the module: channels=32, reduction=16, kernel_size=7
    N, C, H, W = 2, 32, 16, 16
    reduction, K = 16, 7
    Cr = C // reduction

    key = jax.random.PRNGKey(0)
    kx, k1, k2, k3 = jax.random.split(key, 4)

    x = jax.random.normal(kx, (N, C, H, W), dtype=jnp.float32)
    # Conv2d 1x1 weights squeezed to 2-D (no biases); spatial-attn conv (out=1).
    w1 = 0.1 * jax.random.normal(k1, (Cr, C), dtype=jnp.float32)       # C -> C//r
    w2 = 0.1 * jax.random.normal(k2, (C, Cr), dtype=jnp.float32)       # C//r -> C
    wconv = 0.1 * jax.random.normal(k3, (2, K, K), dtype=jnp.float32)  # spatial attn

    out = jax.block_until_ready(cbam_pallas(x, w1, w2, wconv))

    ref = cbam_reference(x, w1, w2, wconv)
    assert out.shape == (N, C, H, W)
    max_err = float(jnp.max(jnp.abs(out - ref)))
    assert jnp.allclose(out, ref, rtol=1e-3, atol=3e-4), max_err

    print("KERNEL_OK")
</pallas_src>

<mosaic_0001>
module attributes {stable_mosaic.version = 11 : i64} {
  func.func @_cbam_kernel(%arg0: i32, %arg1: memref<2x32x256xf32, #tpu.memory_space<vmem>>, %arg2: memref<2x32xf32, #tpu.memory_space<vmem>>, %arg3: memref<2x32xf32, #tpu.memory_space<vmem>>, %arg4: memref<512x256xf32, #tpu.memory_space<vmem>>, %arg5: memref<2x32x256xf32, #tpu.memory_space<vmem>>) attributes {dimension_semantics = [#tpu.dimension_semantics<parallel>], iteration_bounds = array<i64: 1>, scalar_prefetch = 0 : i64, scratch_operands = 0 : i64, tpu.core_type = #tpu.core_type<tc>, window_params = [{transform_indices = @transform_0, window_bounds = array<i64: 2, 32, 256>}, {pipeline_mode = #tpu.pipeline_mode<synchronous>, transform_indices = @transform_1, window_bounds = array<i64: 2, 32>}, {pipeline_mode = #tpu.pipeline_mode<synchronous>, transform_indices = @transform_2, window_bounds = array<i64: 2, 32>}, {pipeline_mode = #tpu.pipeline_mode<synchronous>, transform_indices = @transform_3, window_bounds = array<i64: 512, 256>}, {transform_indices = @transform_4, window_bounds = array<i64: 2, 32, 256>}]} {
    %c0 = arith.constant 0 : index
    %c0_0 = arith.constant 0 : index
    %c0_1 = arith.constant 0 : index
    %0 = vector.load %arg1[%c0, %c0_0, %c0_1] : memref<2x32x256xf32, #tpu.memory_space<vmem>>, vector<2x32x256xf32>
    %c0_2 = arith.constant 0 : index
    %c0_3 = arith.constant 0 : index
    %1 = vector.load %arg2[%c0_2, %c0_3] : memref<2x32xf32, #tpu.memory_space<vmem>>, vector<2x32xf32>
    %c0_4 = arith.constant 0 : index
    %c0_5 = arith.constant 0 : index
    %2 = vector.load %arg3[%c0_4, %c0_5] : memref<2x32xf32, #tpu.memory_space<vmem>>, vector<2x32xf32>
    %cst = arith.constant dense<0.000000e+00> : vector<2x32xf32>
    %3 = vector.multi_reduction <add>, %0, %cst [2] : vector<2x32x256xf32> to vector<2x32xf32>
    %cst_6 = arith.constant 3.906250e-03 : f32
    %4 = vector.broadcast %cst_6 : f32 to vector<2x32xf32>
    %5 = arith.mulf %3, %4 : vector<2x32xf32>
    %cst_7 = arith.constant dense<0xFF800000> : vector<2x32xf32>
    %6 = vector.multi_reduction <maximumf>, %0, %cst_7 [2] : vector<2x32x256xf32> to vector<2x32xf32>
    %7 = vector.shape_cast %5 : vector<2x32xf32> to vector<2x1x32xf32>
    %8 = vector.shape_cast %1 : vector<2x32xf32> to vector<1x2x32xf32>
    %9 = vector.broadcast %7 : vector<2x1x32xf32> to vector<2x2x32xf32>
    %10 = vector.broadcast %8 : vector<1x2x32xf32> to vector<2x2x32xf32>
    %11 = arith.mulf %9, %10 : vector<2x2x32xf32>
    %cst_8 = arith.constant dense<0.000000e+00> : vector<2x2xf32>
    %12 = vector.multi_reduction <add>, %11, %cst_8 [2] : vector<2x2x32xf32> to vector<2x2xf32>
    %cst_9 = arith.constant 0.000000e+00 : f32
    %13 = vector.broadcast %cst_9 : f32 to vector<2x2xf32>
    %14 = arith.maximumf %12, %13 : vector<2x2xf32>
    %15 = vector.shape_cast %14 : vector<2x2xf32> to vector<2x2x1xf32>
    %16 = vector.shape_cast %2 : vector<2x32xf32> to vector<1x2x32xf32>
    %17 = vector.broadcast %15 : vector<2x2x1xf32> to vector<2x2x32xf32>
    %18 = vector.broadcast %16 : vector<1x2x32xf32> to vector<2x2x32xf32>
    %19 = arith.mulf %17, %18 : vector<2x2x32xf32>
    %cst_10 = arith.constant dense<0.000000e+00> : vector<2x32xf32>
    %20 = vector.multi_reduction <add>, %19, %cst_10 [1] : vector<2x2x32xf32> to vector<2x32xf32>
    %21 = vector.shape_cast %6 : vector<2x32xf32> to vector<2x1x32xf32>
    %22 = vector.shape_cast %1 : vector<2x32xf32> to vector<1x2x32xf32>
    %23 = vector.broadcast %21 : vector<2x1x32xf32> to vector<2x2x32xf32>
    %24 = vector.broadcast %22 : vector<1x2x32xf32> to vector<2x2x32xf32>
    %25 = arith.mulf %23, %24 : vector<2x2x32xf32>
    %cst_11 = arith.constant dense<0.000000e+00> : vector<2x2xf32>
    %26 = vector.multi_reduction <add>, %25, %cst_11 [2] : vector<2x2x32xf32> to vector<2x2xf32>
    %cst_12 = arith.constant 0.000000e+00 : f32
    %27 = vector.broadcast %cst_12 : f32 to vector<2x2xf32>
    %28 = arith.maximumf %26, %27 : vector<2x2xf32>
    %29 = vector.shape_cast %28 : vector<2x2xf32> to vector<2x2x1xf32>
    %30 = vector.shape_cast %2 : vector<2x32xf32> to vector<1x2x32xf32>
    %31 = vector.broadcast %29 : vector<2x2x1xf32> to vector<2x2x32xf32>
    %32 = vector.broadcast %30 : vector<1x2x32xf32> to vector<2x2x32xf32>
    %33 = arith.mulf %31, %32 : vector<2x2x32xf32>
    %cst_13 = arith.constant dense<0.000000e+00> : vector<2x32xf32>
    %34 = vector.multi_reduction <add>, %33, %cst_13 [1] : vector<2x2x32xf32> to vector<2x32xf32>
    %35 = arith.addf %20, %34 : vector<2x32xf32>
    %36 = arith.negf %35 : vector<2x32xf32>
    %37 = math.exp %36 : vector<2x32xf32>
    %cst_14 = arith.constant 1.000000e+00 : f32
    %38 = vector.broadcast %cst_14 : f32 to vector<2x32xf32>
    %39 = arith.addf %38, %37 : vector<2x32xf32>
    %40 = arith.divf %38, %39 : vector<2x32xf32>
    %41 = vector.shape_cast %40 : vector<2x32xf32> to vector<2x32x1xf32>
    %42 = vector.broadcast %41 : vector<2x32x1xf32> to vector<2x32x256xf32>
    %43 = arith.mulf %0, %42 : vector<2x32x256xf32>
    %cst_15 = arith.constant dense<0.000000e+00> : vector<2x256xf32>
    %44 = vector.multi_reduction <add>, %43, %cst_15 [1] : vector<2x32x256xf32> to vector<2x256xf32>
    %cst_16 = arith.constant 3.125000e-02 : f32
    %45 = vector.broadcast %cst_16 : f32 to vector<2x256xf32>
    %46 = arith.mulf %44, %45 : vector<2x256xf32>
    %cst_17 = arith.constant dense<0xFF800000> : vector<2x256xf32>
    %47 = vector.multi_reduction <maximumf>, %43, %cst_17 [1] : vector<2x32x256xf32> to vector<2x256xf32>
    %48 = tpu.concatenate %46, %47 in 1 : vector<2x256xf32>, vector<2x256xf32> -> vector<2x512xf32>
    %c0_18 = arith.constant 0 : index
    %c0_19 = arith.constant 0 : index
    %49 = vector.load %arg4[%c0_18, %c0_19] : memref<512x256xf32, #tpu.memory_space<vmem>>, vector<512x256xf32>
    %cst_20 = arith.constant dense<0.000000e+00> : vector<2x256xf32>
    %50 = tpu.matmul %48, %49, %cst_20 {dimension_numbers = #tpu.dot_dimension_numbers<[1], [0], [0], [1], [0, 0, 1, 1], [], []>, precision = #tpu.contract_precision<fp32>} : vector<2x512xf32>, vector<512x256xf32>, vector<2x256xf32> -> vector<2x256xf32>
    %51 = arith.negf %50 : vector<2x256xf32>
    %52 = math.exp %51 : vector<2x256xf32>
    %cst_21 = arith.constant 1.000000e+00 : f32
    %53 = vector.broadcast %cst_21 : f32 to vector<2x256xf32>
    %54 = arith.addf %53, %52 : vector<2x256xf32>
    %55 = arith.divf %53, %54 : vector<2x256xf32>
    %56 = vector.shape_cast %55 : vector<2x256xf32> to vector<2x1x256xf32>
    %57 = vector.broadcast %56 : vector<2x1x256xf32> to vector<2x32x256xf32>
    %58 = arith.mulf %43, %57 : vector<2x32x256xf32>
    %c0_22 = arith.constant 0 : index
    %c0_23 = arith.constant 0 : index
    %c0_24 = arith.constant 0 : index
    %59 = vector.load %arg5[%c0_22, %c0_23, %c0_24] : memref<2x32x256xf32, #tpu.memory_space<vmem>>, vector<2x32x256xf32>
    tpu.vector_store %arg5[%c0_22, %c0_23, %c0_24], %58 {strides = array<i32>} : memref<2x32x256xf32, #tpu.memory_space<vmem>>, vector<2x32x256xf32>,
    return
  }
  func.func @transform_0(%arg0: i32) -> (i32, i32, i32) {
    %c0_i32 = arith.constant 0 : i32
    %c0_i32_0 = arith.constant 0 : i32
    %c0_i32_1 = arith.constant 0 : i32
    return %arg0, %c0_i32, %c0_i32_0 : i32, i32, i32
  }
  func.func @transform_1(%arg0: i32) -> (i32, i32) {
    %c0_i32 = arith.constant 0 : i32
    %c0_i32_0 = arith.constant 0 : i32
    %c0_i32_1 = arith.constant 0 : i32
    return %c0_i32, %c0_i32_0 : i32, i32
  }
  func.func @transform_2(%arg0: i32) -> (i32, i32) {
    %c0_i32 = arith.constant 0 : i32
    %c0_i32_0 = arith.constant 0 : i32
    %c0_i32_1 = arith.constant 0 : i32
    return %c0_i32, %c0_i32_0 : i32, i32
  }
  func.func @transform_3(%arg0: i32) -> (i32, i32) {
    %c0_i32 = arith.constant 0 : i32
    %c0_i32_0 = arith.constant 0 : i32
    %c0_i32_1 = arith.constant 0 : i32
    return %c0_i32, %c0_i32_0 : i32, i32
  }
  func.func @transform_4(%arg0: i32) -> (i32, i32, i32) {
    %c0_i32 = arith.constant 0 : i32
    %c0_i32_0 = arith.constant 0 : i32
    %c0_i32_1 = arith.constant 0 : i32
    return %arg0, %c0_i32, %c0_i32_0 : i32, i32, i32
  }
}

</mosaic_0001>

<bundles_post_ra>
// kernel: tpu_custom_call.1
= control target key start
LH: loop header
LB: loop body
LE: loop exit
PB: predicated region body
PF: predicated region fallthrough
CT: control target
= control target key end

     0   :  { %9 = vsyncpa [#allocation3], 0  ;;  %s6866_s0 = inlined_call_operand.hbm [shape: f32[2,32,256], index: 0, kind: input, shape index: {}]   ;;  %s6867_s1 = inlined_call_operand.vmem [shape: f32[2,32], index: 1, kind: input, shape index: {}]   ;;  %s6868_s2 = inlined_call_operand.vmem [shape: f32[2,32], index: 2, kind: input, shape index: {}]   ;;  %s6869_s3 = inlined_call_operand.hbm [shape: f32[512,256], index: 3, kind: input, shape index: {}]   ;;  %s6870_s4 = inlined_call_operand.hbm [shape: f32[2,32,256], index: 4, kind: output, shape index: {}]  }
   0x1   :  { %10 = vsyncpa [#allocation6], 0 }
   0x2   :  { %11 = vsyncpa [#allocation4], 0  ;;  %s4407_s15 = smov [#allocation2]   ;;  %s4335_s19 = scalar_lea.hbm %s6866_s0, 2048 }
   0x3   :  { %s17_s16 = sshll.u32 %s4407_s15, 4  ;;  %p4336_p0 = scmp.ne.s32.totalorder %s6866_s0, %s4335_s19  ;;  %s18_s16 = int_to_ptr.vmem [resolvable:$true] %s17_s16 }
   0x4   :  { %p4339_p1 = scmp.lt.u32.totalorder %s4335_s19, %s6866_s0 }
   0x6   :  { %p4341_p2 = pnand %p4339_p1, %p4336_p0 }
   0x8   :  { %4344 = shalt.err (!%p4341_p2)
}
   0x9   :  { %s4345_s24 = scalar_lea.vmem %s18_s16, 2048  ;;  %p4350_p4 = scmp.lt.s32.totalorder %s18_s16, %s18_s16 }
   0xa   :  { %p4346_p3 = scmp.ne.s32.totalorder %s18_s16, %s4345_s24  ;;  %p4351_p5 = scmp.lt.s32.totalorder %s4345_s24, %s4345_s24 }
   0xc   :  { %p4352_p6 = por %p4351_p5, %p4350_p4 }
   0xe   :  { %p4353_p7 = pnand %p4352_p6, %p4346_p3 }
  0x10   :  { %4356 = shalt.err (!%p4353_p7)
}
  0x11   :  { %s4408_s25 = smov 256   ;;  %s4409_s26 = smov 16  }
  0x12   :  { %23 = dma.hbm_to_vmem [thread:$0]  %s6866_s0, 2048, %s18_s16, [#allocation3], %s4408_s25, %s4408_s25, %s4409_s26  }
  0x13   :  { %s4410_s29 = smov [#allocation5]   ;;  %s4357_s7 = scalar_lea.hbm %s6869_s3, 16384 }
  0x14   :  { %s33_s30 = sshll.u32 %s4410_s29, 4  ;;  %p4358_p8 = scmp.ne.s32.totalorder %s6869_s3, %s4357_s7  ;;  %s34_s30 = int_to_ptr.vmem [resolvable:$true] %s33_s30 }
  0x15   :  { %p4361_p9 = scmp.lt.u32.totalorder %s4357_s7, %s6869_s3 }
  0x17   :  { %p4363_p10 = pnand %p4361_p9, %p4358_p8 }
  0x19   :  { %4366 = shalt.err (!%p4363_p10)
}
  0x1a   :  { %s4367_s12 = scalar_lea.vmem %s34_s30, 16384  ;;  %p4372_p12 = scmp.lt.s32.totalorder %s34_s30, %s34_s30 }
  0x1b   :  { %p4368_p11 = scmp.ne.s32.totalorder %s34_s30, %s4367_s12  ;;  %p4373_p13 = scmp.lt.s32.totalorder %s4367_s12, %s4367_s12 }
  0x1d   :  { %p4374_p0 = por %p4373_p13, %p4372_p12 }
  0x1f   :  { %p4375_p1 = pnand %p4374_p0, %p4368_p11 }
  0x21   :  { %4378 = shalt.err (!%p4375_p1)
}
  0x22   :  { %39 = dma.hbm_to_vmem [thread:$0]  %s6869_s3, 16384, %s34_s30, [#allocation6], %s4408_s25, %s4408_s25, %s4409_s26  }
  0x23   :  { %4401 = dma.done.wait [#allocation3], 2048  }
  0x24   :  { %4402 = vsyncadd [#allocation3], 4294965248 }
  0x25   :  { %4403 = dma.done.wait [#allocation6], 16384  }
  0x26   :  { %4404 = vsyncadd [#allocation6], 4294950912  ;;  %v54_v0 = vld [vmem:[#allocation2 + $0x40] sm:$0xff]  ;;  %v55_v1 = vld [vmem:[#allocation2 + $0x48] sm:$0xff]  ;;  %v121_v32 = vlaneseq  ;;  %v4411_v39 = vmov 0   ;;  %vm258_vm0 = vcmask 130112  }
  0x27   :  { %v46_v2 = vld [vmem:[#allocation2] sm:$0xff]  ;;  %v76_v3 = vadd.f32 %v55_v1, %v54_v0  ;;  %v47_v4 = vld [vmem:[#allocation2 + $0x8] sm:$0xff]  ;;  %v56_v5 = vld [vmem:[#allocation2 + $0x50] sm:$0xff]  ;;  %v108_v27 = vmax.f32 %v54_v0, %v55_v1  ;;  %4302 = vset.pattern.permute.xlu0 %v4411_v39  ;;  %4301 = vset.pattern.permute.xlu1 %v4411_v39  ;;  %vm265_vm1 = vcmask 195712   ;;  %vm272_vm2 = vcmask 261312  }
  0x28   :  { %v57_v6 = vld [vmem:[#allocation2 + $0x58] sm:$0xff]  ;;  %v64_v7 = vadd.f32 %v47_v4, %v46_v2  ;;  %v48_v8 = vld [vmem:[#allocation2 + $0x10] sm:$0xff]  ;;  %v58_v12 = vld [vmem:[#allocation2 + $0x60] sm:$0xff]  ;;  %v96_v25 = vmax.f32 %v46_v2, %v47_v4  ;;  %v4470_v33 = vshrl.u32 %v121_v32, 7  ;;  %vm331_vm3 = vcmask 1041409  }
  0x29   :  { %v49_v9 = vld [vmem:[#allocation2 + $0x18] sm:$0xff]  ;;  %77 = vadd.xlane.f32.xlu1 %v76_v3  ;;  %v79_v10 = vadd.f32 %v57_v6, %v56_v5  ;;  %v59_v13 = vld [vmem:[#allocation2 + $0x68] sm:$0xff]  ;;  %v50_v14 = vld [vmem:[#allocation2 + $0x20] sm:$0xff]  ;;  %v111_v26 = vmax.f32 %v56_v5, %v57_v6  ;;  %vm336_vm4 = vcmask 254976  }
  0x2a   :  { %65 = vadd.xlane.f32.xlu0 %v64_v7  ;;  %v67_v11 = vadd.f32 %v49_v9, %v48_v8  ;;  %v51_v15 = vld [vmem:[#allocation2 + $0x28] sm:$0xff]  ;;  %v82_v16 = vadd.f32 %v59_v13, %v58_v12  ;;  %v60_v18 = vld [vmem:[#allocation2 + $0x70] sm:$0xff]  ;;  %v61_v19 = vld [vmem:[#allocation2 + $0x78] sm:$0xff]  ;;  %v99_v24 = vmax.f32 %v48_v8, %v49_v9  ;;  %v114_v28 = vmax.f32 %v58_v12, %v59_v13 }
  0x2b   :  { %v70_v17 = vadd.f32 %v51_v15, %v50_v14  ;;  %v52_v20 = vld [vmem:[#allocation2 + $0x30] sm:$0xff]  ;;  %v53_v21 = vld [vmem:[#allocation2 + $0x38] sm:$0xff]  ;;  %v85_v22 = vadd.f32 %v61_v19, %v60_v18  ;;  %v102_v29 = vmax.f32 %v50_v14, %v51_v15  ;;  %v117_v30 = vmax.f32 %v60_v18, %v61_v19  ;;  %7337 = vst [vmem:[#allocation11_spill] sm:$0xff] %v4470_v33  ;;  %v62_v35 = vld [vmem:[%s6867_s1] sm:$0x3] }
  0x2c   :  { %v73_v23 = vadd.f32 %v53_v21, %v52_v20  ;;  %v105_v31 = vmax.f32 %v52_v20, %v53_v21  ;;  %v4473_v34 = vsub.s32 0, %v4470_v33  ;;  %v4480_v37 = vsub.s32 1, %v4470_v33 }
  0x2d   :  { %80 = vadd.xlane.f32.xlu1 %v79_v10 }
  0x2e   :  { %68 = vadd.xlane.f32.xlu0 %v67_v11  ;;  %7338 = vst [vmem:[#allocation12_spill] sm:$0xff] %v4473_v34  ;;  %v124_v36 = vrot.slane %v62_v35, %v4473_v34  ;;  %7339 = vst [vmem:[#allocation13_spill] sm:$0xff] %v4480_v37  ;;  %v143_v38 = vrot.slane %v62_v35, %v4480_v37 }
  0x31   :  { %83 = vadd.xlane.f32.xlu1 %v82_v16 }
  0x32   :  { %71 = vadd.xlane.f32.xlu0 %v70_v17 }
  0x35   :  { %86 = vadd.xlane.f32.xlu1 %v85_v22 }
  0x36   :  { %74 = vadd.xlane.f32.xlu0 %v73_v23 }
  0x39   :  { %100 = vmax.xlane.f32.xlu1 %v99_v24 }
  0x3a   :  { %97 = vmax.xlane.f32.xlu0 %v96_v25 }
  0x3d   :  { %112 = vmax.xlane.f32.xlu1 %v111_v26 }
  0x3e   :  { %109 = vmax.xlane.f32.xlu0 %v108_v27 }
  0x41   :  { %115 = vmax.xlane.f32.xlu1 %v114_v28 }
  0x42   :  { %103 = vmax.xlane.f32.xlu0 %v102_v29 }
  0x45   :  { %118 = vmax.xlane.f32.xlu1 %v117_v30 }
  0x46   :  { %106 = vmax.xlane.f32.xlu0 %v105_v31 }
  0x56   :  { %130 = vbcast.lane.b32.xlu1 %v124_v36, 264 }
  0x5a   :  { %145 = vbcast.lane.b32.xlu1 %v143_v38, 256 }
  0x5c   :  { %126 = vbcast.lane.b32.xlu0 %v124_v36, 256 }
  0x5e   :  { %149 = vbcast.lane.b32.xlu1 %v143_v38, 264 }
  0x60   :  { %134 = vbcast.lane.b32.xlu0 %v124_v36, 272 }
  0x62   :  { %153 = vbcast.lane.b32.xlu1 %v143_v38, 272 }
  0x64   :  { %138 = vbcast.lane.b32.xlu0 %v124_v36, 280 }
  0x66   :  { %157 = vbcast.lane.b32.xlu1 %v143_v38, 280 }
  0xb6   :  { %v78_v40 = vpop.xlane.xlu1 %77 }
  0xb7   :  { %v66_v41 = vpop.xlane.xlu0 %65  ;;  %v92_v19 = vmul.f32 0.00390625, %v78_v40 }
  0xb8   :  { %v88_v16 = vmul.f32 0.00390625, %v66_v41 }
  0xba   :  { %v81_v42 = vpop.xlane.xlu1 %80 }
  0xbb   :  { %v69_v43 = vpop.xlane.xlu0 %68  ;;  %v93_v22 = vmul.f32 0.00390625, %v81_v42 }
  0xbc   :  { %v89_v13 = vmul.f32 0.00390625, %v69_v43 }
  0xbe   :  { %v4483_v44 = vpop.xlane.xlu1 %83 }
  0xbf   :  { %v4485_v45 = vpop.xlane.xlu0 %71  ;;  %v94_v28 = vmul.f32 0.00390625, %v4483_v44 }
  0xc0   :  { %v90_v25 = vmul.f32 0.00390625, %v4485_v45 }
  0xc2   :  { %v4487_v46 = vpop.xlane.xlu1 %86 }
  0xc3   :  { %v4489_v47 = vpop.xlane.xlu0 %74  ;;  %v95_v38 = vmul.f32 0.00390625, %v4487_v46 }
  0xc4   :  { %v91_v31 = vmul.f32 0.00390625, %v4489_v47 }
  0xc6   :  { %v101_v48 = vpop.xlane.xlu1 %100 }
  0xc7   :  { %v98_v49 = vpop.xlane.xlu0 %97 }
  0xca   :  { %v113_v50 = vpop.xlane.xlu1 %112 }
  0xcb   :  { %v110_v51 = vpop.xlane.xlu0 %109 }
  0xce   :  { %v116_v52 = vpop.xlane.xlu1 %115 }
  0xcf   :  { %v104_v53 = vpop.xlane.xlu0 %103 }
  0xd2   :  { %v4491_v54 = vpop.xlane.xlu1 %118 }
  0xd3   :  { %v107_v55 = vpop.xlane.xlu0 %106 }
  0xd6   :  { %v131_v56 = vpop.permute.xlu1 %130 }
  0xd7   :  { %v127_v57 = vpop.permute.xlu0 %126  ;;  %v362_v58 = vmul.f32 %v131_v56, %v101_v48  ;;  %v370_v1 = vmul.f32 %v131_v56, %v113_v50  ;;  %v168_v15 = vmul.f32 %v131_v56, %v89_v13  ;;  %v176_v23 = vmul.f32 %v131_v56, %v93_v22 }
  0xd8   :  { %v361_v59 = vmul.f32 %v127_v57, %v98_v49  ;;  %v369_v0 = vmul.f32 %v127_v57, %v110_v51  ;;  %v167_v17 = vmul.f32 %v127_v57, %v88_v16  ;;  %v175_v21 = vmul.f32 %v127_v57, %v92_v19 }
  0xd9   :  { %397 = vperm.xlu0 %4302, %v362_v58  }
  0xda   :  { %394 = vperm.xlu1 %4301, %v361_v59   ;;  %v146_v60 = vpop.permute.xlu1 %145 }
  0xdb   :  { %v365_v61 = vmul.f32 %v146_v60, %v98_v49  ;;  %v373_v2 = vmul.f32 %v146_v60, %v110_v51  ;;  %v135_v3 = vpop.permute.xlu0 %134  ;;  %v171_v18 = vmul.f32 %v146_v60, %v88_v16  ;;  %v179_v24 = vmul.f32 %v146_v60, %v92_v19 }
  0xdc   :  { %v363_v6 = vmul.f32 %v135_v3, %v104_v53  ;;  %v371_v8 = vmul.f32 %v135_v3, %v116_v52  ;;  %v169_v27 = vmul.f32 %v135_v3, %v90_v25  ;;  %v177_v30 = vmul.f32 %v135_v3, %v94_v28 }
  0xde   :  { %406 = vperm.xlu1 %4301, %v365_v61   ;;  %v150_v62 = vpop.permute.xlu1 %149 }
  0xdf   :  { %v366_v63 = vmul.f32 %v150_v62, %v101_v48  ;;  %v374_v4 = vmul.f32 %v150_v62, %v113_v50  ;;  %v139_v9 = vpop.permute.xlu0 %138  ;;  %v172_v20 = vmul.f32 %v150_v62, %v89_v13  ;;  %v180_v26 = vmul.f32 %v150_v62, %v93_v22 }
  0xe0   :  { %v364_v12 = vmul.f32 %v139_v9, %v107_v55  ;;  %v170_v36 = vmul.f32 %v139_v9, %v91_v31  ;;  %v178_v40 = vmul.f32 %v139_v9, %v95_v38  ;;  %v372_v42 = vmul.f32 %v139_v9, %v4491_v54 }
  0xe1   :  { %409 = vperm.xlu0 %4302, %v366_v63   ;;  %v248_v50 = vand.u32 127, %v121_v32 }
  0xe2   :  { %418 = vperm.xlu1 %4301, %v369_v0   ;;  %v154_v5 = vpop.permute.xlu1 %153 }
  0xe3   :  { %v367_v7 = vmul.f32 %v154_v5, %v104_v53  ;;  %v375_v10 = vmul.f32 %v154_v5, %v116_v52  ;;  %v173_v29 = vmul.f32 %v154_v5, %v90_v25  ;;  %v181_v35 = vmul.f32 %v154_v5, %v94_v28 }
  0xe4   :  { %v253_v53 = vadd.s32 4294967288, %v248_v50  ;;  %v260_v56 = vadd.s32 4294967280, %v248_v50  ;;  %v267_v57 = vadd.s32 4294967272, %v248_v50  ;;  %v4509_v58 = vsub.s32 %v248_v50, %v4470_v33 }
  0xe5   :  { %421 = vperm.xlu0 %4302, %v370_v1  }
  0xe6   :  { %430 = vperm.xlu1 %4301, %v373_v2   ;;  %v158_v11 = vpop.permute.xlu1 %157  ;;  %v4512_v59 = vsub.s32 %v253_v53, %v4470_v33  ;;  %v4517_v61 = vsub.s32 %v260_v56, %v4470_v33  ;;  %v4520_v32 = vsub.s32 %v267_v57, %v4470_v33 }
  0xe7   :  { %v368_v14 = vmul.f32 %v158_v11, %v107_v55  ;;  %v174_v39 = vmul.f32 %v158_v11, %v91_v31  ;;  %v182_v41 = vmul.f32 %v158_v11, %v95_v38  ;;  %v376_v43 = vmul.f32 %v158_v11, %v4491_v54 }
  0xe9   :  { %433 = vperm.xlu0 %4302, %v374_v4  }
  0xea   :  { %400 = vperm.xlu1 %4301, %v363_v6  }
  0xed   :  { %412 = vperm.xlu0 %4302, %v367_v7  }
  0xee   :  { %424 = vperm.xlu1 %4301, %v371_v8  }
  0xf1   :  { %436 = vperm.xlu0 %4302, %v375_v10  }
  0xf2   :  { %403 = vperm.xlu1 %4301, %v364_v12  }
  0xf5   :  { %415 = vperm.xlu0 %4302, %v368_v14  }
  0xf6   :  { %203 = vperm.xlu1 %4301, %v168_v15  }
  0xf9   :  { %200 = vperm.xlu0 %4302, %v167_v17  }
  0xfa   :  { %212 = vperm.xlu1 %4301, %v171_v18  }
  0xfd   :  { %215 = vperm.xlu0 %4302, %v172_v20  }
  0xfe   :  { %224 = vperm.xlu1 %4301, %v175_v21  }
 0x101   :  { %227 = vperm.xlu0 %4302, %v176_v23  }
 0x102   :  { %236 = vperm.xlu1 %4301, %v179_v24  }
 0x105   :  { %239 = vperm.xlu0 %4302, %v180_v26  }
 0x106   :  { %206 = vperm.xlu1 %4301, %v169_v27  }
 0x109   :  { %218 = vperm.xlu0 %4302, %v173_v29  }
 0x10a   :  { %230 = vperm.xlu1 %4301, %v177_v30  }
 0x10d   :  { %242 = vperm.xlu0 %4302, %v181_v35  }
 0x10e   :  { %209 = vperm.xlu1 %4301, %v170_v36  }
 0x111   :  { %221 = vperm.xlu0 %4302, %v174_v39  }
 0x112   :  { %233 = vperm.xlu1 %4301, %v178_v40  }
 0x115   :  { %245 = vperm.xlu0 %4302, %v182_v41  }
 0x116   :  { %427 = vperm.xlu1 %4301, %v372_v42  }
 0x119   :  { %439 = vperm.xlu0 %4302, %v376_v43  }
 0x158   :  { %v398_v45 = vpop.permute.xlu0 %397 }
 0x159   :  { %v395_v44 = vpop.permute.xlu1 %394  ;;  %v448_v0 = vrot.slane %v398_v45, %v4512_v59 }
 0x15a   :  { %v444_v63 = vrot.slane %v395_v44, %v4509_v58 }
 0x15c   :  { %v449_v8 = vsel %vm258_vm0, %v448_v0, %v444_v63 }
 0x15d   :  { %v407_v47 = vpop.permute.xlu1 %406 }
 0x15e   :  { %v463_v5 = vrot.slane %v407_v47, %v4509_v58 }
 0x160   :  { %v410_v48 = vpop.permute.xlu0 %409 }
 0x161   :  { %v4499_v49 = vpop.permute.xlu1 %418  ;;  %v467_v1 = vrot.slane %v410_v48, %v4512_v59 }
 0x163   :  { %v468_v9 = vsel %vm258_vm0, %v467_v1, %v463_v5 }
 0x164   :  { %v4501_v46 = vpop.permute.xlu0 %421 }
 0x165   :  { %v4504_v51 = vpop.permute.xlu1 %430 }
 0x168   :  { %v4506_v52 = vpop.permute.xlu0 %433 }
 0x169   :  { %v401_v55 = vpop.permute.xlu1 %400 }
 0x16a   :  { %v453_v3 = vrot.slane %v401_v55, %v4517_v61 }
 0x16c   :  { %v413_v54 = vpop.permute.xlu0 %412  ;;  %v454_v12 = vsel %vm265_vm1, %v453_v3, %v449_v8  ;;  %v486_v3 = vrot.slane %v4501_v46, %v4512_v59 }
 0x16d   :  { %v4514_v60 = vpop.permute.xlu1 %424  ;;  %v472_v4 = vrot.slane %v413_v54, %v4517_v61 }
 0x16f   :  { %v473_v13 = vsel %vm265_vm1, %v472_v4, %v468_v9  ;;  %v505_v4 = vrot.slane %v4506_v52, %v4512_v59 }
 0x170   :  { %v4522_v62 = vpop.permute.xlu0 %436 }
 0x171   :  { %v404_v2 = vpop.permute.xlu1 %403  ;;  %v510_v46 = vrot.slane %v4522_v62, %v4517_v61 }
 0x172   :  { %v458_v6 = vrot.slane %v404_v2, %v4520_v32  ;;  %v482_v2 = vrot.slane %v4499_v49, %v4509_v58  ;;  %v491_v49 = vrot.slane %v4514_v60, %v4517_v61 }
 0x174   :  { %v416_v7 = vpop.permute.xlu0 %415  ;;  %v459_v14 = vsel %vm272_vm2, %v458_v6, %v454_v12  ;;  %v501_v12 = vrot.slane %v4504_v51, %v4509_v58 }
 0x175   :  { %v204_v10 = vpop.permute.xlu1 %203  ;;  %v477_v11 = vrot.slane %v416_v7, %v4520_v32 }
 0x176   :  { %v257_v35 = vrot.slane %v204_v10, %v4512_v59 }
 0x177   :  { %v478_v15 = vsel %vm272_vm2, %v477_v11, %v473_v13 }
 0x178   :  { %v201_v16 = vpop.permute.xlu0 %200  ;;  %v517_v17 = vsel %vm331_vm3, %v478_v15, %v459_v14 }
 0x179   :  { %v213_v18 = vpop.permute.xlu1 %212  ;;  %v521_v19 = vsel %vm336_vm4, %v517_v17, 0.0  ;;  %v252_v28 = vrot.slane %v201_v16, %v4509_v58  ;;  %v487_v17 = vsel %vm258_vm0, %v486_v3, %v482_v2  ;;  %v704_v2 = vld [vmem:[#allocation5 + $0x38] sm:$0xff] }
 0x17a   :  { %522 = vadd.xlane.f32.xlu0 %v521_v19  ;;  %v277_v39 = vrot.slane %v213_v18, %v4509_v58  ;;  %v492_v19 = vsel %vm265_vm1, %v491_v49, %v487_v17  ;;  %v837_v17 = vand.u32 4294901760, %v704_v2 }
 0x17b   :  { %v259_v41 = vsel %vm258_vm0, %v257_v35, %v252_v28 }
 0x17c   :  { %v216_v20 = vpop.permute.xlu0 %215 }
 0x17d   :  { %v225_v21 = vpop.permute.xlu1 %224  ;;  %v281_v30 = vrot.slane %v216_v20, %v4512_v59 }
 0x17e   :  { %v296_v42 = vrot.slane %v225_v21, %v4509_v58 }
 0x17f   :  { %v282_v44 = vsel %vm258_vm0, %v281_v30, %v277_v39  ;;  %v700_v30 = vld [vmem:[#allocation5 + $0x18] sm:$0xff]  ;;  %v699_v39 = vld [vmem:[#allocation5 + $0x10] sm:$0xff] }
 0x180   :  { %v228_v22 = vpop.permute.xlu0 %227 }
 0x181   :  { %v237_v23 = vpop.permute.xlu1 %236  ;;  %v300_v45 = vrot.slane %v228_v22, %v4512_v59 }
 0x182   :  { %v315_v54 = vrot.slane %v237_v23, %v4509_v58  ;;  %v762_v23 = vld [vmem:[#allocation5 + $0x208] sm:$0xff] }
 0x183   :  { %v301_v7 = vsel %vm258_vm0, %v300_v45, %v296_v42  ;;  %v768_v45 = vld [vmem:[#allocation5 + $0x238] sm:$0xff] }
 0x184   :  { %v240_v24 = vpop.permute.xlu0 %239  ;;  %v2121_v3 = vand.u32 4294901760, %v768_v45 }
 0x185   :  { %v207_v25 = vpop.permute.xlu1 %206  ;;  %v319_v47 = vrot.slane %v240_v24, %v4512_v59  ;;  %v764_v24 = vld [vmem:[#allocation5 + $0x218] sm:$0xff] }
 0x186   :  { %v264_v36 = vrot.slane %v207_v25, %v4517_v61  ;;  %v761_v25 = vld [vmem:[#allocation5 + $0x200] sm:$0xff] }
 0x187   :  { %v320_v8 = vsel %vm258_vm0, %v319_v47, %v315_v54  ;;  %v2111_v28 = vand.u32 4294901760, %v761_v25  ;;  %v765_v47 = vld [vmem:[#allocation5 + $0x220] sm:$0xff] }
 0x188   :  { %v219_v26 = vpop.permute.xlu0 %218  ;;  %v266_v53 = vsel %vm265_vm1, %v264_v36, %v259_v41  ;;  %v829_v36 = vand.u32 4294901760, %v700_v30 }
 0x189   :  { %v231_v27 = vpop.permute.xlu1 %230  ;;  %v286_v38 = vrot.slane %v219_v26, %v4517_v61  ;;  %v2113_v26 = vand.u32 4294901760, %v764_v24 }
 0x18a   :  { %v305_v55 = vrot.slane %v231_v27, %v4517_v61  ;;  %v763_v27 = vld [vmem:[#allocation5 + $0x210] sm:$0xff]  ;;  %v4611_v54 = vsub.f32 %v700_v30, %v829_v36 }
 0x18b   :  { %v287_v56 = vsel %vm265_vm1, %v286_v38, %v282_v44  ;;  %v697_v38 = vld [vmem:[#allocation5] sm:$0xff]  ;;  %v4600_v44 = vsub.f32 %v761_v25, %v2111_v28 }
 0x18c   :  { %v243_v29 = vpop.permute.xlu0 %242  ;;  %v306_v52 = vsel %vm265_vm1, %v305_v55, %v301_v7  ;;  %7348 = vst [vmem:[#allocation22_spill] sm:$0xff] %v4611_v54  ;;  %v701_v7 = vld [vmem:[#allocation5 + $0x20] sm:$0xff] }
 0x18d   :  { %v210_v31 = vpop.permute.xlu1 %209  ;;  %v324_v57 = vrot.slane %v243_v29, %v4517_v61  ;;  %v506_v61 = vsel %vm258_vm0, %v505_v4, %v501_v12  ;;  %v698_v29 = vld [vmem:[#allocation5 + $0x8] sm:$0xff]  ;;  %7343 = vst [vmem:[#allocation17_spill] sm:$0xff] %v4600_v44  ;;  %v2119_v4 = vand.u32 4294901760, %v765_v47  ;;  %v5076_v44 = vld [vmem:[#allocation5 + $0x190] sm:$0xff] }
 0x18e   :  { %v271_v40 = vrot.slane %v210_v31, %v4520_v32  ;;  %v511_v51 = vsel %vm265_vm1, %v510_v46, %v506_v61  ;;  %v2115_v31 = vand.u32 4294901760, %v763_v27  ;;  %v825_v35 = vand.u32 4294901760, %v698_v29  ;;  %v770_v46 = vld [vmem:[#allocation5 + $0x248] sm:$0xff] }
 0x18f   :  { %v325_v59 = vsel %vm265_vm1, %v324_v57, %v320_v8  ;;  %v702_v57 = vld [vmem:[#allocation5 + $0x28] sm:$0xff]  ;;  %v703_v8 = vld [vmem:[#allocation5 + $0x30] sm:$0xff] }
 0x190   :  { %v222_v43 = vpop.permute.xlu0 %221  ;;  %v273_v0 = vsel %vm272_vm2, %v271_v40, %v266_v53  ;;  %v766_v40 = vld [vmem:[#allocation5 + $0x228] sm:$0xff]  ;;  %v4604_v53 = vsub.f32 %v763_v27, %v2115_v31  ;;  %v4606_v55 = vpack.c.bf16 %v829_v36, %v825_v35  ;;  %v773_v36 = vld [vmem:[#allocation5 + $0x260] sm:$0xff] }
 0x191   :  { %v234_v48 = vpop.permute.xlu1 %233  ;;  %v291_v50 = vrot.slane %v222_v43, %v4520_v32  ;;  %v4598_v43 = vsub.f32 %v764_v24, %v2113_v26  ;;  %v774_v27 = vld [vmem:[#allocation5 + $0x268] sm:$0xff] }
 0x192   :  { %v310_v63 = vrot.slane %v234_v48, %v4520_v32  ;;  %v767_v48 = vld [vmem:[#allocation5 + $0x230] sm:$0xff]  ;;  %7345 = vst [vmem:[#allocation19_spill] sm:$0xff] %v4604_v53  ;;  %7346 = vst [vmem:[#allocation20_spill] sm:$0xff] %v4606_v55  ;;  %3505 = vmatprep.subr.bf16.mxu1 %v4606_v55  ;;  %v720_v55 = vld [vmem:[#allocation5 + $0xb8] sm:$0xff] }
 0x193   :  { %v292_v1 = vsel %vm272_vm2, %v291_v50, %v287_v56  ;;  %7342 = vst [vmem:[#allocation16_spill] sm:$0xff] %v4598_v43  ;;  %v4602_v50 = vpack.c.bf16 %v2115_v31, %v2111_v28  ;;  %v4608_v56 = vsub.f32 %v698_v29, %v825_v35  ;;  %v776_v35 = vld [vmem:[#allocation5 + $0x278] sm:$0xff]  ;;  %v5074_v53 = vld [vmem:[#allocation5 + $0x180] sm:$0xff] }
 0x194   :  { %v246_v5 = vpop.permute.xlu0 %245  ;;  %v332_v6 = vsel %vm331_vm3, %v292_v1, %v273_v0  ;;  %v311_v14 = vsel %vm272_vm2, %v310_v63, %v306_v52  ;;  %v827_v63 = vand.u32 4294901760, %v697_v38  ;;  %v831_v0 = vand.u32 4294901760, %v699_v39  ;;  %v772_v52 = vld [vmem:[#allocation5 + $0x258] sm:$0xff] }
 0x195   :  { %v428_v9 = vpop.permute.xlu1 %427  ;;  %v329_v10 = vrot.slane %v246_v5, %v4520_v32  ;;  %v337_v11 = vsel %vm336_vm4, %v332_v6, 0.0  ;;  %7344 = vst [vmem:[#allocation18_spill] sm:$0xff] %v4602_v50  ;;  %7347 = vst [vmem:[#allocation21_spill] sm:$0xff] %v4608_v56  ;;  %v2117_v1 = vand.u32 4294901760, %v766_v40  ;;  %v2123_v5 = vand.u32 4294901760, %v767_v48 }
 0x196   :  { %338 = vadd.xlane.f32.xlu1 %v337_v11  ;;  %v496_v13 = vrot.slane %v428_v9, %v4520_v32  ;;  %v833_v6 = vand.u32 4294901760, %v702_v57  ;;  %v4615_v9 = vpack.c.bf16 %v831_v0, %v827_v63  ;;  %v4619_v11 = vsub.f32 %v699_v39, %v831_v0 }
 0x197   :  { %v330_v15 = vsel %vm272_vm2, %v329_v10, %v325_v59  ;;  %v4617_v10 = vsub.f32 %v697_v38, %v827_v63  ;;  %v4621_v49 = vsub.f32 %v766_v40, %v2117_v1  ;;  %v769_v59 = vld [vmem:[#allocation5 + $0x240] sm:$0xff]  ;;  %v4623_v12 = vpack.c.bf16 %v2121_v3, %v2117_v1  ;;  %v775_v38 = vld [vmem:[#allocation5 + $0x270] sm:$0xff] }
 0x198   :  { %v440_v16 = vpop.permute.xlu0 %439  ;;  %v333_v60 = vsel %vm331_vm3, %v330_v15, %v311_v14  ;;  %v497_v58 = vsel %vm272_vm2, %v496_v13, %v492_v19  ;;  %7349 = vst [vmem:[#allocation23_spill] sm:$0xff] %v4615_v9  ;;  %7351 = vst [vmem:[#allocation25_spill] sm:$0xff] %v4619_v11  ;;  %v4625_v13 = vsub.f32 %v768_v45, %v2121_v3  ;;  %3507 = vmatpush1.bf16.msra.mxu1 %v4615_v9 }
 0x199   :  { %v515_v62 = vrot.slane %v440_v16, %v4520_v32  ;;  %v340_v18 = vsel %vm336_vm4, %v333_v60, 0.0  ;;  %v2109_v32 = vand.u32 4294901760, %v762_v23  ;;  %7350 = vst [vmem:[#allocation24_spill] sm:$0xff] %v4617_v10  ;;  %7352 = vst [vmem:[#allocation26_spill] sm:$0xff] %v4621_v49  ;;  %v4627_v14 = vpack.c.bf16 %v2123_v5, %v2119_v4  ;;  %v771_v16 = vld [vmem:[#allocation5 + $0x250] sm:$0xff] }
 0x19a   :  { %341 = vadd.xlane.f32.xlu0 %v340_v18  ;;  %7353 = vst [vmem:[#allocation27_spill] sm:$0xff] %v4623_v12  ;;  %7354 = vst [vmem:[#allocation28_spill] sm:$0xff] %v4625_v13  ;;  %v4629_v15 = vsub.f32 %v765_v47, %v2119_v4  ;;  %v4632_v60 = vsub.f32 %v767_v48, %v2123_v5  ;;  %v4634_v61 = vsub.f32 %v702_v57, %v833_v6  ;;  %v710_v5 = vld [vmem:[#allocation5 + $0x68] sm:$0xff] }
 0x19b   :  { %v516_v20 = vsel %vm272_vm2, %v515_v62, %v511_v51  ;;  %v4594_v41 = vpack.c.bf16 %v2113_v26, %v2109_v32  ;;  %v4596_v42 = vsub.f32 %v762_v23, %v2109_v32  ;;  %7355 = vst [vmem:[#allocation29_spill] sm:$0xff] %v4627_v14  ;;  %v835_v62 = vand.u32 4294901760, %v701_v7  ;;  %v705_v32 = vld [vmem:[#allocation5 + $0x40] sm:$0xff]  ;;  %v707_v26 = vld [vmem:[#allocation5 + $0x50] sm:$0xff] }
 0x19c   :  { %v518_v21 = vsel %vm331_vm3, %v516_v20, %v497_v58  ;;  %7356 = vst [vmem:[#allocation30_spill] sm:$0xff] %v4629_v15  ;;  %7357 = vst [vmem:[#allocation31_spill] sm:$0xff] %v4632_v60  ;;  %v839_v18 = vand.u32 4294901760, %v703_v8  ;;  %v2125_v19 = vand.u32 4294901760, %v770_v46  ;;  %v2129_v51 = vand.u32 4294901760, %v772_v52  ;;  %v706_v20 = vld [vmem:[#allocation5 + $0x48] sm:$0xff] }
 0x19d   :  { %v524_v22 = vsel %vm336_vm4, %v518_v21, 0.0  ;;  %7340 = vst [vmem:[#allocation14_spill] sm:$0xff] %v4594_v41  ;;  %7341 = vst [vmem:[#allocation15_spill] sm:$0xff] %v4596_v42  ;;  %3889 = vmatprep.subr.bf16.mxu0 %v4594_v41  ;;  %v2127_v58 = vand.u32 4294901760, %v769_v59  ;;  %v708_v21 = vld [vmem:[#allocation5 + $0x58] sm:$0xff]  ;;  %v4640_v23 = vsub.f32 %v704_v2, %v837_v17  ;;  %v4642_v24 = vsub.f32 %v701_v7, %v835_v62  ;;  %v717_v41 = vld [vmem:[#allocation5 + $0xa0] sm:$0xff] }
 0x19e   :  { %525 = vadd.xlane.f32.xlu0 %v524_v22  ;;  %3891 = vmatpush1.bf16.msra.mxu0 %v4602_v50  ;;  %7358 = vst [vmem:[#allocation32_spill] sm:$0xff] %v4634_v61  ;;  %v4638_v22 = vpack.c.bf16 %v837_v17, %v833_v6  ;;  %v2131_v25 = vand.u32 4294901760, %v771_v16  ;;  %v4644_v28 = vpack.c.bf16 %v839_v18, %v835_v62  ;;  %v841_v48 = vand.u32 4294901760, %v706_v20  ;;  %v718_v50 = vld [vmem:[#allocation5 + $0xa8] sm:$0xff]  ;;  %v5032_v61 = vld [vmem:[#allocation5 + $0x398] sm:$0xff]  ;;  %v5037_v60 = vld [vmem:[#allocation5 + $0x380] sm:$0xff] }
 0x19f   :  { %3893 = vmatprep.subr.bf16.mxu0 %v4623_v12  ;;  %7360 = vst [vmem:[#allocation34_spill] sm:$0xff] %v4640_v23  ;;  %7361 = vst [vmem:[#allocation35_spill] sm:$0xff] %v4642_v24  ;;  %v4646_v29 = vsub.f32 %v703_v8, %v839_v18  ;;  %v4648_v30 = vpack.c.bf16 %v2129_v51, %v2125_v19  ;;  %v4650_v31 = vsub.f32 %v770_v46, %v2125_v19  ;;  %v5015_v24 = vld [vmem:[#allocation5 + $0x160] sm:$0xff]  ;;  %v5030_v23 = vld [vmem:[#allocation5 + $0x388] sm:$0xff] }
 0x1a0   :  { %7359 = vst [vmem:[#allocation33_spill] sm:$0xff] %v4638_v22  ;;  %7362 = vst [vmem:[#allocation36_spill] sm:$0xff] %v4644_v28  ;;  %3509 = vmatprep.subr.bf16.mxu1 %v4638_v22  ;;  %v4653_v39 = vsub.f32 %v772_v52, %v2129_v51  ;;  %v4655_v40 = vpack.c.bf16 %v2131_v25, %v2127_v58  ;;  %v4657_v45 = vsub.f32 %v769_v59, %v2127_v58  ;;  %v712_v52 = vld [vmem:[#allocation5 + $0x78] sm:$0xff]  ;;  %v709_v59 = vld [vmem:[#allocation5 + $0x60] sm:$0xff] }
 0x1a1   :  { %7363 = vst [vmem:[#allocation37_spill] sm:$0xff] %v4646_v29  ;;  %7364 = vst [vmem:[#allocation38_spill] sm:$0xff] %v4648_v30  ;;  %v4659_v47 = vsub.f32 %v771_v16, %v2131_v25  ;;  %3511 = vmatpush1.bf16.msra.mxu1 %v4644_v28  ;;  %v845_v57 = vand.u32 4294901760, %v708_v21  ;;  %v843_v63 = vand.u32 4294901760, %v705_v32  ;;  %v847_v0 = vand.u32 4294901760, %v707_v26  ;;  %v711_v16 = vld [vmem:[#allocation5 + $0x70] sm:$0xff] }
 0x1a2   :  { %3895 = vmatpush1.bf16.msra.mxu0 %v4627_v14  ;;  %7365 = vst [vmem:[#allocation39_spill] sm:$0xff] %v4650_v31  ;;  %7366 = vst [vmem:[#allocation40_spill] sm:$0xff] %v4653_v39  ;;  %v2133_v1 = vand.u32 4294901760, %v774_v27  ;;  %v2137_v2 = vand.u32 4294901760, %v776_v35  ;;  %v2135_v3 = vand.u32 4294901760, %v773_v36  ;;  %v2139_v4 = vand.u32 4294901760, %v775_v38 }
 0x1a3   :  { %7367 = vst [vmem:[#allocation41_spill] sm:$0xff] %v4655_v40  ;;  %7368 = vst [vmem:[#allocation42_spill] sm:$0xff] %v4657_v45  ;;  %3897 = vmatprep.subr.bf16.mxu0 %v4648_v30  ;;  %v4664_v6 = vpack.c.bf16 %v845_v57, %v841_v48  ;;  %v4666_v7 = vsub.f32 %v706_v20, %v841_v48  ;;  %v4668_v8 = vsub.f32 %v708_v21, %v845_v57  ;;  %v778_v51 = vld [vmem:[#allocation5 + $0x288] sm:$0xff]  ;;  %v780_v58 = vld [vmem:[#allocation5 + $0x298] sm:$0xff] }
 0x1a4   :  { %7369 = vst [vmem:[#allocation43_spill] sm:$0xff] %v4659_v47  ;;  %v4670_v46 = vpack.c.bf16 %v847_v0, %v843_v63  ;;  %v4672_v17 = vsub.f32 %v705_v32, %v843_v63  ;;  %v4674_v62 = vsub.f32 %v707_v26, %v847_v0  ;;  %v4676_v18 = vpack.c.bf16 %v2137_v2, %v2133_v1  ;;  %v5050_v15 = vld [vmem:[#allocation5 + $0x188] sm:$0xff] }
 0x1a5   :  { %7370 = vst [vmem:[#allocation44_spill] sm:$0xff] %v4664_v6  ;;  %7371 = vst [vmem:[#allocation45_spill] sm:$0xff] %v4666_v7  ;;  %v4678_v19 = vsub.f32 %v774_v27, %v2133_v1  ;;  %3513 = vmatprep.subr.bf16.mxu1 %v4664_v6  ;;  %v4681_v20 = vsub.f32 %v776_v35, %v2137_v2  ;;  %v4683_v21 = vpack.c.bf16 %v2139_v4, %v2135_v3  ;;  %v4969_v7 = vld [vmem:[#allocation5 + $0x368] sm:$0xff] }
 0x1a6   :  { %3899 = vmatpush1.bf16.msra.mxu0 %v4655_v40  ;;  %7372 = vst [vmem:[#allocation46_spill] sm:$0xff] %v4668_v8  ;;  %7373 = vst [vmem:[#allocation47_spill] sm:$0xff] %v4670_v46  ;;  %v4685_v25 = vsub.f32 %v773_v36, %v2135_v3  ;;  %v4687_v48 = vsub.f32 %v775_v38, %v2139_v4  ;;  %3515 = vmatpush1.bf16.msra.mxu1 %v4670_v46  ;;  %v849_v32 = vand.u32 4294901760, %v710_v5 }
 0x1a7   :  { %7374 = vst [vmem:[#allocation48_spill] sm:$0xff] %v4672_v17  ;;  %7375 = vst [vmem:[#allocation49_spill] sm:$0xff] %v4674_v62  ;;  %3901 = vmatprep.subr.bf16.mxu0 %v4676_v18  ;;  %v853_v26 = vand.u32 4294901760, %v712_v52  ;;  %v851_v27 = vand.u32 4294901760, %v709_v59  ;;  %v855_v57 = vand.u32 4294901760, %v711_v16  ;;  %v2141_v63 = vand.u32 4294901760, %v778_v51 }
 0x1a8   :  { %7376 = vst [vmem:[#allocation50_spill] sm:$0xff] %v4676_v18  ;;  %7377 = vst [vmem:[#allocation51_spill] sm:$0xff] %v4678_v19  ;;  %v2145_v0 = vand.u32 4294901760, %v780_v58  ;;  %v4694_v1 = vsub.f32 %v710_v5, %v849_v32  ;;  %v4951_v17 = vld [vmem:[#allocation5 + $0x150] sm:$0xff]  ;;  %v7480_v11 = vand.u32 4294901760, %v5015_v24  ;;  %v7484_v45 = vand.u32 4294901760, %v5032_v61 }
 0x1a9   :  { %7378 = vst [vmem:[#allocation52_spill] sm:$0xff] %v4681_v20  ;;  %7379 = vst [vmem:[#allocation53_spill] sm:$0xff] %v4683_v21  ;;  %v4692_v35 = vpack.c.bf16 %v853_v26, %v849_v32  ;;  %v4696_v36 = vsub.f32 %v712_v52, %v853_v26  ;;  %v4698_v38 = vpack.c.bf16 %v855_v57, %v851_v27  ;;  %v4947_v20 = vld [vmem:[#allocation5 + $0x158] sm:$0xff] }
 0x1aa   :  { %7380 = vst [vmem:[#allocation54_spill] sm:$0xff] %v4685_v25  ;;  %7381 = vst [vmem:[#allocation55_spill] sm:$0xff] %v4687_v48  ;;  %3903 = vmatpush1.bf16.msra.mxu0 %v4683_v21  ;;  %v4700_v2 = vsub.f32 %v709_v59, %v851_v27  ;;  %v4702_v3 = vsub.f32 %v711_v16, %v855_v57  ;;  %v4704_v4 = vpack.c.bf16 %v2145_v0, %v2141_v63  ;;  %v63_v59 = vld [vmem:[%s6868_s2] sm:$0x3]  ;;  %v4923_v25 = vld [vmem:[#allocation5 + $0x350] sm:$0xff]  ;;  %s4413_s2 = smov [#allocation7]  }
 0x1ab   :  { %7382 = vst [vmem:[#allocation56_spill] sm:$0xff] %v4692_v35  ;;  %7383 = vst [vmem:[#allocation57_spill] sm:$0xff] %v4694_v1  ;;  %v4706_v37 = vsub.f32 %v778_v51, %v2141_v63  ;;  %3517 = vmatprep.subr.bf16.mxu1 %v4692_v35  ;;  %v4709_v34 = vsub.f32 %v780_v58, %v2145_v0  ;;  %v4921_v48 = vld [vmem:[#allocation5 + $0x340] sm:$0xff]  ;;  %v7464_v39 = vand.u32 4294901760, %v4923_v25  ;;  %s3487_s16 = sshll.u32 %s4413_s2, 4  ;;  %s3488_s16 = int_to_ptr.vmem [resolvable:$true] %s3487_s16 }
 0x1ac   :  { %7384 = vst [vmem:[#allocation58_spill] sm:$0xff] %v4696_v36  ;;  %7385 = vst [vmem:[#allocation59_spill] sm:$0xff] %v4698_v38  ;;  %3519 = vmatpush1.bf16.msra.mxu1 %v4698_v38  ;;  %3905 = vmatprep.subr.bf16.mxu0 %v4704_v4  ;;  %v7463_v8 = vand.u32 4294901760, %v4921_v48  ;;  %s4379_s17 = scalar_lea.vmem %s3488_s16, 2048  ;;  %p4384_p3 = scmp.lt.s32.totalorder %s3488_s16, %s3488_s16 }
 0x1ad   :  { %7386 = vst [vmem:[#allocation60_spill] sm:$0xff] %v4700_v2  ;;  %7387 = vst [vmem:[#allocation61_spill] sm:$0xff] %v4702_v3  ;;  %v4904_v3 = vld [vmem:[#allocation5 + $0x358] sm:$0xff]  ;;  %p4380_p2 = scmp.ne.s32.totalorder %s3488_s16, %s4379_s17  ;;  %p4385_p4 = scmp.lt.s32.totalorder %s4379_s17, %s4379_s17 }
 0x1ae   :  { %7388 = vst [vmem:[#allocation62_spill] sm:$0xff] %v4704_v4  ;;  %7389 = vst [vmem:[#allocation63_spill] sm:$0xff] %v4706_v37  ;;  %v7461_v47 = vand.u32 4294901760, %v4904_v3  ;;  %v4990_v31 = vpack.c.bf16 %v7464_v39, %v7463_v8  ;;  %v7470_v8 = vand.u32 4294901760, %v4951_v17 }
 0x1af   :  { %7390 = vst [vmem:[#allocation64_spill] sm:$0xff] %v4709_v34  ;;  %p4386_p5 = por %p4385_p4, %p4384_p3 }
 0x1b0   :  { %7465 = vst [vmem:[#allocation113_spill] sm:$0xff] %v4990_v31 }
 0x1b1   :  { %p4387_p6 = pnand %p4386_p5, %p4380_p2 }
 0x207   :  { %v523_v5 = vpop.xlane.xlu0 %522 }
 0x208   :  { %v527_v52 = vmax.f32 %v523_v5, 0.0 }
 0x20a   :  { %v529_v16 = vmul.f32 %v527_v52, %v63_v59 }
 0x20c   :  { %v531_v32 = vsel %vm336_vm4, %v529_v16, 0.0 }
 0x20d   :  { %v532_v26 = vrot.slane %v531_v32, 4 }
 0x20f   :  { %v533_v51 = vadd.f32 %v532_v26, %v531_v32 }
 0x211   :  { %v534_v58 = vrot.slane %v533_v51, 2 }
 0x213   :  { %v535_v5 = vadd.f32 %v534_v58, %v533_v51 }
 0x215   :  { %v536_v32 = vrot.slane %v535_v5, 1 }
 0x223   :  { %v339_v27 = vpop.xlane.xlu1 %338 }
 0x224   :  { %v343_v57 = vmax.f32 %v339_v27, 0.0 }
 0x226   :  { %v345_v63 = vmul.f32 %v343_v57, %v63_v59 }
 0x227   :  { %v342_v0 = vpop.xlane.xlu0 %341 }
 0x228   :  { %v347_v33 = vsel %vm336_vm4, %v345_v63, 0.0  ;;  %v344_v38 = vmax.f32 %v342_v0, 0.0  ;;  %v537_v0 = vadd.f32 %v536_v32, %v535_v5  ;;  %v714_v5 = vld [vmem:[#allocation5 + $0x88] sm:$0xff] }
 0x229   :  { %v348_v4 = vrot.slane %v347_v33, 4 }
 0x22a   :  { %v346_v21 = vmul.f32 %v344_v38, %v63_v59 }
 0x22b   :  { %v349_v35 = vadd.f32 %v348_v4, %v347_v33  ;;  %v526_v46 = vpop.xlane.xlu0 %525 }
 0x22c   :  { %v354_v18 = vsel %vm336_vm4, %v346_v21, 0.0  ;;  %v528_v52 = vmax.f32 %v526_v46, 0.0 }
 0x22d   :  { %v350_v40 = vrot.slane %v349_v35, 2  ;;  %v355_v16 = vrot.slane %v354_v18, 4 }
 0x22e   :  { %v530_v6 = vmul.f32 %v528_v52, %v63_v59 }
 0x22f   :  { %v351_v26 = vadd.f32 %v350_v40, %v349_v35  ;;  %v356_v27 = vadd.f32 %v355_v16, %v354_v18  ;;  %v777_v35 = vld [vmem:[#allocation5 + $0x280] sm:$0xff] }
 0x230   :  { %v538_v57 = vsel %vm336_vm4, %v530_v6, 0.0  ;;  %v779_v6 = vld [vmem:[#allocation5 + $0x290] sm:$0xff]  ;;  %v2143_v16 = vand.u32 4294901760, %v777_v35 }
 0x231   :  { %v352_v28 = vrot.slane %v351_v26, 1  ;;  %v357_v30 = vrot.slane %v356_v27, 2  ;;  %v539_v63 = vrot.slane %v538_v57, 4  ;;  %v2147_v9 = vand.u32 4294901760, %v779_v6 }
 0x233   :  { %v353_v14 = vadd.f32 %v352_v28, %v351_v26  ;;  %v358_v38 = vadd.f32 %v357_v30, %v356_v27  ;;  %v540_v51 = vadd.f32 %v539_v63, %v538_v57  ;;  %v716_v28 = vld [vmem:[#allocation5 + $0x98] sm:$0xff]  ;;  %v857_v30 = vand.u32 4294901760, %v714_v5  ;;  %v715_v26 = vld [vmem:[#allocation5 + $0x90] sm:$0xff] }
 0x234   :  { %v861_v32 = vand.u32 4294901760, %v716_v28  ;;  %v4720_v57 = vpack.c.bf16 %v2147_v9, %v2143_v16  ;;  %v4729_v12 = vsub.f32 %v779_v6, %v2147_v9  ;;  %v786_v9 = vld [vmem:[#allocation5 + $0x2c8] sm:$0xff]  ;;  %v788_v6 = vld [vmem:[#allocation5 + $0x2d8] sm:$0xff] }
 0x235   :  { %v545_v33 = vadd.f32 %v537_v0, %v353_v14  ;;  %v541_v4 = vrot.slane %v540_v51, 2  ;;  %v359_v21 = vrot.slane %v358_v38, 1  ;;  %v713_v14 = vld [vmem:[#allocation5 + $0x80] sm:$0xff]  ;;  %v863_v0 = vand.u32 4294901760, %v715_v26 }
 0x236   :  { %7391 = vst [vmem:[#allocation65_spill] sm:$0xff] %v4720_v57  ;;  %v859_v63 = vand.u32 4294901760, %v713_v14  ;;  %3907 = vmatpush1.bf16.msra.mxu0 %v4720_v57  ;;  %7395 = vst [vmem:[#allocation69_spill] sm:$0xff] %v4729_v12  ;;  %v4734_v34 = vsub.f32 %v716_v28, %v861_v32  ;;  %v785_v28 = vld [vmem:[#allocation5 + $0x2c0] sm:$0xff] }
 0x237   :  { %v3500_v58 = vmul.f32 -1.442695, %v545_v33  ;;  %v542_v46 = vadd.f32 %v541_v4, %v540_v51  ;;  %v360_v59 = vadd.f32 %v359_v21, %v358_v38  ;;  %v782_v38 = vld [vmem:[#allocation5 + $0x2a8] sm:$0xff]  ;;  %v4722_v33 = vpack.c.bf16 %v861_v32, %v857_v30  ;;  %v781_v21 = vld [vmem:[#allocation5 + $0x2a0] sm:$0xff] }
 0x238   :  { %v2149_v4 = vand.u32 4294901760, %v782_v38  ;;  %7397 = vst [vmem:[#allocation71_spill] sm:$0xff] %v4734_v34  ;;  %v4737_v57 = vsub.f32 %v713_v14, %v859_v63  ;;  %v4739_v37 = vsub.f32 %v715_v26, %v863_v0  ;;  %v865_v14 = vand.u32 4294901760, %v718_v50  ;;  %v790_v34 = vld [vmem:[#allocation5 + $0x2e8] sm:$0xff]  ;;  %v4888_v12 = vld [vmem:[#allocation5 + $0x120] sm:$0xff] }
 0x239   :  { %4303 = vpow2.f32 %v3500_v58  ;;  %v543_v22 = vrot.slane %v542_v46, 1  ;;  %7392 = vst [vmem:[#allocation66_spill] sm:$0xff] %v4722_v33  ;;  %3521 = vmatprep.subr.bf16.mxu1 %v4722_v33  ;;  %v869_v26 = vand.u32 4294901760, %v720_v55 }
 0x23a   :  { %7398 = vst [vmem:[#allocation72_spill] sm:$0xff] %v4737_v57  ;;  %7399 = vst [vmem:[#allocation73_spill] sm:$0xff] %v4739_v37  ;;  %v723_v57 = vld [vmem:[#allocation5 + $0xd0] sm:$0xff] }
 0x23b   :  { %v544_v52 = vadd.f32 %v543_v22, %v542_v46  ;;  %v784_v22 = vld [vmem:[#allocation5 + $0x2b8] sm:$0xff]  ;;  %v783_v46 = vld [vmem:[#allocation5 + $0x2b0] sm:$0xff] }
 0x23c   :  { %v2153_v58 = vand.u32 4294901760, %v784_v22 }
 0x23d   :  { %v546_v40 = vadd.f32 %v544_v52, %v360_v59  ;;  %v4725_v59 = vpack.c.bf16 %v863_v0, %v859_v63  ;;  %v2151_v52 = vand.u32 4294901760, %v781_v21  ;;  %v867_v63 = vand.u32 4294901760, %v717_v41 }
 0x23f   :  { %v3501_v18 = vmul.f32 -1.442695, %v546_v40  ;;  %7393 = vst [vmem:[#allocation67_spill] sm:$0xff] %v4725_v59  ;;  %v2155_v40 = vand.u32 4294901760, %v783_v46  ;;  %3523 = vmatpush1.bf16.msra.mxu1 %v4725_v59  ;;  %v4749_v33 = vsub.f32 %v781_v21, %v2151_v52  ;;  %v2157_v59 = vand.u32 4294901760, %v786_v9 }
 0x240   :  { %v4757_v21 = vsub.f32 %v718_v50, %v865_v14 }
 0x241   :  { %4305 = vpow2.f32 %v3501_v18  ;;  %v4727_v18 = vsub.f32 %v777_v35, %v2143_v16  ;;  %v719_v35 = vld [vmem:[#allocation5 + $0xb0] sm:$0xff]  ;;  %v4743_v16 = vsub.f32 %v782_v38, %v2149_v4  ;;  %7404 = vst [vmem:[#allocation78_spill] sm:$0xff] %v4749_v33  ;;  %v4752_v32 = vsub.f32 %v783_v46, %v2155_v40  ;;  %v722_v46 = vld [vmem:[#allocation5 + $0xc8] sm:$0xff] }
 0x242   :  { %v871_v0 = vand.u32 4294901760, %v719_v35  ;;  %v2161_v38 = vand.u32 4294901760, %v788_v6  ;;  %7407 = vst [vmem:[#allocation81_spill] sm:$0xff] %v4757_v21  ;;  %v4770_v50 = vsub.f32 %v786_v9, %v2157_v59  ;;  %v879_v9 = vand.u32 4294901760, %v723_v57  ;;  %v4873_v21 = vld [vmem:[#allocation5 + $0x128] sm:$0xff] }
 0x243   :  { %v4304_v27 = vpop.eup %4303  ;;  %7394 = vst [vmem:[#allocation68_spill] sm:$0xff] %v4727_v18  ;;  %7401 = vst [vmem:[#allocation75_spill] sm:$0xff] %v4743_v16  ;;  %v4890_v18 = vld [vmem:[#allocation5 + $0x130] sm:$0xff] }
 0x244   :  { %v553_v51 = vadd.f32 1.0, %v4304_v27  ;;  %v4732_v27 = vsub.f32 %v714_v5, %v857_v30  ;;  %v4745_v5 = vsub.f32 %v784_v22, %v2153_v58  ;;  %v4747_v30 = vpack.c.bf16 %v2155_v40, %v2151_v52  ;;  %7405 = vst [vmem:[#allocation79_spill] sm:$0xff] %v4752_v32  ;;  %v724_v40 = vld [vmem:[#allocation5 + $0xd8] sm:$0xff]  ;;  %v721_v32 = vld [vmem:[#allocation5 + $0xc0] sm:$0xff]  ;;  %7413 = vst [vmem:[#allocation87_spill] sm:$0xff] %v4770_v50 }
 0x245   :  { %v2159_v22 = vand.u32 4294901760, %v785_v28  ;;  %v4759_v52 = vsub.f32 %v720_v55, %v869_v26  ;;  %v4763_v16 = vpack.c.bf16 %v871_v0, %v867_v63  ;;  %v4767_v37 = vpack.c.bf16 %v2161_v38, %v2157_v59 }
 0x246   :  { %4307 = vrcp.f32 %v553_v51  ;;  %7396 = vst [vmem:[#allocation70_spill] sm:$0xff] %v4732_v27  ;;  %v4741_v51 = vpack.c.bf16 %v2153_v58, %v2149_v4  ;;  %7402 = vst [vmem:[#allocation76_spill] sm:$0xff] %v4745_v5  ;;  %v787_v4 = vld [vmem:[#allocation5 + $0x2d0] sm:$0xff]  ;;  %v4755_v5 = vpack.c.bf16 %v869_v26, %v865_v14  ;;  %v4772_v55 = vsub.f32 %v788_v6, %v2161_v38 }
 0x247   :  { %7403 = vst [vmem:[#allocation77_spill] sm:$0xff] %v4747_v30  ;;  %7408 = vst [vmem:[#allocation82_spill] sm:$0xff] %v4759_v52  ;;  %v4774_v14 = vsub.f32 %v785_v28, %v2159_v22  ;;  %v877_v26 = vand.u32 4294901760, %v724_v40  ;;  %v2165_v6 = vand.u32 4294901760, %v790_v34  ;;  %v4784_v38 = vld [vmem:[#allocation5 + $0x2f0] sm:$0xff]  ;;  %v4786_v28 = vld [vmem:[#allocation5 + $0xe8] sm:$0xff] }
 0x248   :  { %7400 = vst [vmem:[#allocation74_spill] sm:$0xff] %v4741_v51  ;;  %3909 = vmatprep.subr.bf16.mxu0 %v4741_v51  ;;  %7406 = vst [vmem:[#allocation80_spill] sm:$0xff] %v4755_v5  ;;  %v4761_v51 = vsub.f32 %v717_v41, %v867_v63  ;;  %3525 = vmatprep.subr.bf16.mxu1 %v4755_v5  ;;  %v2163_v41 = vand.u32 4294901760, %v787_v4  ;;  %v875_v63 = vand.u32 4294901760, %v721_v32  ;;  %v7493_v56 = vand.u32 4294901760, %v4786_v28 }
 0x249   :  { %3911 = vmatpush1.bf16.msra.mxu0 %v4747_v30  ;;  %7410 = vst [vmem:[#allocation84_spill] sm:$0xff] %v4763_v16  ;;  %v4765_v30 = vsub.f32 %v719_v35, %v871_v0  ;;  %7412 = vst [vmem:[#allocation86_spill] sm:$0xff] %v4767_v37  ;;  %3527 = vmatpush1.bf16.msra.mxu1 %v4763_v16  ;;  %v873_v35 = vand.u32 4294901760, %v722_v46  ;;  %v792_v0 = vld [vmem:[#allocation5 + $0x2f8] sm:$0xff] }
 0x24a   :  { %7409 = vst [vmem:[#allocation83_spill] sm:$0xff] %v4761_v51  ;;  %7414 = vst [vmem:[#allocation88_spill] sm:$0xff] %v4772_v55  ;;  %3913 = vmatprep.subr.bf16.mxu0 %v4767_v37  ;;  %v4782_v59 = vsub.f32 %v787_v4, %v2163_v41  ;;  %v4800_v4 = vld [vmem:[#allocation5 + $0xe0] sm:$0xff]  ;;  %v4808_v55 = vsub.f32 %v723_v57, %v879_v9  ;;  %v2169_v50 = vand.u32 4294901760, %v792_v0  ;;  %v4839_v57 = vld [vmem:[#allocation5 + $0x110] sm:$0xff] }
 0x24b   :  { %v4306_v58 = vpop.eup %4305  ;;  %7411 = vst [vmem:[#allocation85_spill] sm:$0xff] %v4765_v30  ;;  %7415 = vst [vmem:[#allocation89_spill] sm:$0xff] %v4774_v14  ;;  %v4780_v30 = vpack.c.bf16 %v2163_v41, %v2159_v22  ;;  %v4792_v37 = vpack.c.bf16 %v877_v26, %v873_v35  ;;  %v4794_v5 = vsub.f32 %v722_v46, %v873_v35  ;;  %v4802_v41 = vld [vmem:[#allocation5 + $0xf0] sm:$0xff]  ;;  %v4812_v46 = vld [vmem:[#allocation5 + $0x308] sm:$0xff] }
 0x24c   :  { %v554_v33 = vadd.f32 1.0, %v4306_v58  ;;  %v4778_v58 = vld [vmem:[#allocation5 + $0x2e0] sm:$0xff]  ;;  %7417 = vst [vmem:[#allocation91_spill] sm:$0xff] %v4782_v59  ;;  %v4796_v14 = vsub.f32 %v724_v40, %v877_v26  ;;  %v4798_v22 = vsub.f32 %v721_v32, %v875_v63  ;;  %v4806_v59 = vpack.c.bf16 %v879_v9, %v875_v63  ;;  %7423 = vst [vmem:[#allocation97_spill] sm:$0xff] %v4808_v55  ;;  %v4814_v40 = vld [vmem:[#allocation5 + $0x318] sm:$0xff] }
 0x24d   :  { %7416 = vst [vmem:[#allocation90_spill] sm:$0xff] %v4780_v30  ;;  %7418 = vst [vmem:[#allocation92_spill] sm:$0xff] %v4792_v37  ;;  %v4810_v51 = vsub.f32 %v790_v34, %v2165_v6  ;;  %v4816_v32 = vld [vmem:[#allocation5 + $0x300] sm:$0xff]  ;;  %3915 = vmatpush1.bf16.msra.mxu0 %v4780_v30  ;;  %3529 = vmatprep.subr.bf16.mxu1 %v4792_v37  ;;  %v4824_v34 = vld [vmem:[#allocation5 + $0x310] sm:$0xff]  ;;  %v4831_v55 = vsub.f32 %v792_v0, %v2169_v50  ;;  %v7427_v63 = vand.u32 4294901760, %v4778_v58 }
 0x24e   :  { %4309 = vrcp.f32 %v554_v33  ;;  %v4788_v33 = vld [vmem:[#allocation5 + $0xf8] sm:$0xff]  ;;  %7419 = vst [vmem:[#allocation93_spill] sm:$0xff] %v4794_v5  ;;  %7420 = vst [vmem:[#allocation94_spill] sm:$0xff] %v4796_v14  ;;  %v4826_v9 = vld [vmem:[#allocation5 + $0x108] sm:$0xff]  ;;  %3531 = vmatpush1.bf16.msra.mxu1 %v4806_v59  ;;  %v7437_v27 = vand.u32 4294901760, %v4814_v40 }
 0x24f   :  { %7421 = vst [vmem:[#allocation95_spill] sm:$0xff] %v4798_v22  ;;  %7422 = vst [vmem:[#allocation96_spill] sm:$0xff] %v4806_v59  ;;  %v4835_v37 = vld [vmem:[#allocation5 + $0x118] sm:$0xff]  ;;  %v4837_v26 = vld [vmem:[#allocation5 + $0x100] sm:$0xff]  ;;  %v7428_v22 = vand.u32 4294901760, %v4784_v38 }
 0x250   :  { %v4790_v16 = vpop.eup %4307  ;;  %7424 = vst [vmem:[#allocation98_spill] sm:$0xff] %v4810_v51  ;;  %v4829_v51 = vpack.c.bf16 %v2169_v50, %v2165_v6  ;;  %7426 = vst [vmem:[#allocation100_spill] sm:$0xff] %v4831_v55  ;;  %v7430_v6 = vand.u32 4294901760, %v4786_v28  ;;  %v7431_v50 = vand.u32 4294901760, %v4788_v33  ;;  %v4855_v59 = vld [vmem:[#allocation5 + $0x328] sm:$0xff]  ;;  %v4857_v55 = vld [vmem:[#allocation5 + $0x338] sm:$0xff] }
 0x251   :  { %564 = vbcast.lane.b32.xlu0 %v4790_v16, 264  ;;  %560 = vbcast.lane.b32.xlu1 %v4790_v16, 256  ;;  %v4845_v14 = vpack.c.bf16 %v7428_v22, %v7427_v63  ;;  %v4859_v5 = vld [vmem:[#allocation5 + $0x320] sm:$0xff]  ;;  %v7433_v22 = vand.u32 4294901760, %v4800_v4  ;;  %v7434_v63 = vand.u32 4294901760, %v4802_v41  ;;  %v4871_v35 = vld [vmem:[#allocation5 + $0x330] sm:$0xff] }
 0x252   :  { %7425 = vst [vmem:[#allocation99_spill] sm:$0xff] %v4829_v51  ;;  %v4851_v0 = vpack.c.bf16 %v7431_v50, %v7430_v6  ;;  %3917 = vmatprep.subr.bf16.mxu0 %v4829_v51  ;;  %v7436_v51 = vand.u32 4294901760, %v4812_v46  ;;  %v4886_v6 = vld [vmem:[#allocation5 + $0x138] sm:$0xff]  ;;  %v7443_v36 = vand.u32 4294901760, %v4835_v37  ;;  %v4934_v30 = vld [vmem:[#allocation5 + $0x148] sm:$0xff]  ;;  %v7452_v19 = vand.u32 4294901760, %v4871_v35 }
 0x253   :  { %7429 = vst [vmem:[#allocation101_spill] sm:$0xff] %v4845_v14  ;;  %v4866_v52 = vpack.c.bf16 %v7434_v63, %v7433_v22  ;;  %3919 = vmatpush1.bf16.msra.mxu0 %v4845_v14  ;;  %v7439_v14 = vand.u32 4294901760, %v4816_v32  ;;  %v4902_v63 = vld [vmem:[#allocation5 + $0x348] sm:$0xff] }
 0x254   :  { %7432 = vst [vmem:[#allocation102_spill] sm:$0xff] %v4851_v0  ;;  %3533 = vmatprep.subr.bf16.mxu1 %v4851_v0  ;;  %v4881_v22 = vpack.c.bf16 %v7437_v27, %v7436_v51  ;;  %v7440_v0 = vand.u32 4294901760, %v4824_v34  ;;  %v7451_v51 = vand.u32 4294901760, %v4859_v5 }
 0x255   :  { %7435 = vst [vmem:[#allocation103_spill] sm:$0xff] %v4866_v52  ;;  %3535 = vmatpush1.bf16.msra.mxu1 %v4866_v52  ;;  %v7442_v52 = vand.u32 4294901760, %v4826_v9 }
 0x256   :  { %7438 = vst [vmem:[#allocation104_spill] sm:$0xff] %v4881_v22  ;;  %v4897_v27 = vpack.c.bf16 %v7440_v0, %v7439_v14  ;;  %3921 = vmatprep.subr.bf16.mxu0 %v4881_v22  ;;  %v7445_v14 = vand.u32 4294901760, %v4837_v26  ;;  %v7446_v0 = vand.u32 4294901760, %v4839_v57  ;;  %v7448_v22 = vand.u32 4294901760, %v4855_v59 }
 0x257   :  { %v4911_v1 = vpack.c.bf16 %v7443_v36, %v7442_v52  ;;  %v7449_v36 = vand.u32 4294901760, %v4857_v55  ;;  %v4942_v62 = vpack.c.bf16 %v7452_v19, %v7451_v51  ;;  %v7455_v19 = vand.u32 4294901760, %v4886_v6 }
 0x258   :  { %7441 = vst [vmem:[#allocation105_spill] sm:$0xff] %v4897_v27  ;;  %v4310_v2 = vpop.eup %4309  ;;  %v4917_v50 = vpack.c.bf16 %v7446_v0, %v7445_v14  ;;  %3923 = vmatpush1.bf16.msra.mxu0 %v4897_v27  ;;  %v4949_v0 = vld [vmem:[#allocation5 + $0x140] sm:$0xff]  ;;  %v7454_v27 = vand.u32 4294901760, %v4873_v21  ;;  %v7458_v14 = vand.u32 4294901760, %v4890_v18 }
 0x259   :  { %7444 = vst [vmem:[#allocation106_spill] sm:$0xff] %v4911_v1  ;;  %583 = vbcast.lane.b32.xlu0 %v4310_v2, 272  ;;  %575 = vbcast.lane.b32.xlu1 %v4310_v2, 256  ;;  %v4929_v52 = vpack.c.bf16 %v7449_v36, %v7448_v22  ;;  %7453 = vst [vmem:[#allocation109_spill] sm:$0xff] %v4942_v62  ;;  %v7457_v36 = vand.u32 4294901760, %v4888_v12  ;;  %v7469_v39 = vand.u32 4294901760, %v4949_v0 }
 0x25a   :  { %7447 = vst [vmem:[#allocation107_spill] sm:$0xff] %v4917_v50  ;;  %3537 = vmatprep.subr.bf16.mxu1 %v4911_v1  ;;  %v4959_v51 = vpack.c.bf16 %v7455_v19, %v7454_v27  ;;  %v4984_v1 = vld [vmem:[#allocation5 + $0x370] sm:$0xff]  ;;  %v4995_v19 = vld [vmem:[#allocation5 + $0x168] sm:$0xff] }
 0x25b   :  { %7450 = vst [vmem:[#allocation108_spill] sm:$0xff] %v4929_v52  ;;  %3539 = vmatpush1.bf16.msra.mxu1 %v4917_v50  ;;  %3925 = vmatprep.subr.bf16.mxu0 %v4929_v52  ;;  %v4965_v22 = vpack.c.bf16 %v7458_v14, %v7457_v36  ;;  %v4971_v50 = vld [vmem:[#allocation5 + $0x378] sm:$0xff]  ;;  %v7460_v52 = vand.u32 4294901760, %v4902_v63  ;;  %v4982_v36 = vld [vmem:[#allocation5 + $0x360] sm:$0xff]  ;;  %v7467_v14 = vand.u32 4294901760, %v4947_v20  ;;  %v7478_v13 = vand.u32 4294901760, %v4984_v1 }
 0x25c   :  { %7456 = vst [vmem:[#allocation110_spill] sm:$0xff] %v4959_v51  ;;  %3927 = vmatpush1.bf16.msra.mxu0 %v4942_v62  ;;  %3541 = vmatprep.subr.bf16.mxu1 %v4959_v51  ;;  %v5017_v51 = vld [vmem:[#allocation5 + $0x170] sm:$0xff] }
 0x25d   :  { %7459 = vst [vmem:[#allocation111_spill] sm:$0xff] %v4965_v22  ;;  %v4977_v27 = vpack.c.bf16 %v7461_v47, %v7460_v52  ;;  %587 = vbcast.lane.b32.xlu0 %v4310_v2, 280  ;;  %579 = vbcast.lane.b32.xlu1 %v4310_v2, 264  ;;  %v7466_v2 = vand.u32 4294901760, %v4934_v30  ;;  %v5009_v47 = vpack.c.bf16 %v7470_v8, %v7469_v39  ;;  %v5012_v52 = vld [vmem:[#allocation5 + $0x178] sm:$0xff] }
 0x25e   :  { %v7011_v8 = vand.u32 4294901760, %v5012_v52 }
 0x25f   :  { %7462 = vst [vmem:[#allocation112_spill] sm:$0xff] %v4977_v27  ;;  %v5003_v29 = vpack.c.bf16 %v7467_v14, %v7466_v2  ;;  %7471 = vst [vmem:[#allocation115_spill] sm:$0xff] %v5009_v47  ;;  %3543 = vmatpush1.bf16.msra.mxu1 %v4965_v22  ;;  %3929 = vmatprep.subr.bf16.mxu0 %v4977_v27  ;;  %v7472_v14 = vand.u32 4294901760, %v4969_v7  ;;  %v7473_v2 = vand.u32 4294901760, %v4971_v50  ;;  %v5052_v22 = vld [vmem:[#allocation5 + $0x198] sm:$0xff]  ;;  %v7477_v27 = vand.u32 4294901760, %v4982_v36 }
 0x260   :  { %3931 = vmatpush1.bf16.msra.mxu0 %v4990_v31  ;;  %v7489_v31 = vand.u32 4294901760, %v4778_v58 }
 0x261   :  { %7468 = vst [vmem:[#allocation114_spill] sm:$0xff] %v5003_v29  ;;  %v5025_v39 = vpack.c.bf16 %v7473_v2, %v7472_v14  ;;  %3545 = vmatprep.subr.bf16.mxu1 %v5003_v29  ;;  %v5039_v14 = vld [vmem:[#allocation5 + $0x390] sm:$0xff]  ;;  %568 = vbcast.lane.b32.xlu1 %v4790_v16, 272  ;;  %v7475_v2 = vand.u32 4294901760, %v4995_v19  ;;  %v5059_v49 = vpack.c.bf16 %v7478_v13, %v7477_v27  ;;  %v7483_v29 = vand.u32 4294901760, %v5030_v23 }
 0x262   :  { %v7486_v13 = vand.u32 4294901760, %v5037_v60  ;;  %v5092_v54 = vsub.f32 %v4778_v58, %v7489_v31  ;;  %v7497_v31 = vand.u32 4294901760, %v4800_v4 }
 0x263   :  { %7474 = vst [vmem:[#allocation116_spill] sm:$0xff] %v5025_v39  ;;  %v5046_v62 = vpack.c.bf16 %v7011_v8, %v7475_v2  ;;  %7479 = vst [vmem:[#allocation118_spill] sm:$0xff] %v5059_v49  ;;  %v7481_v2 = vand.u32 4294901760, %v5017_v51  ;;  %v5071_v10 = vpack.c.bf16 %v7484_v45, %v7483_v29  ;;  %3547 = vmatpush1.bf16.msra.mxu1 %v5009_v47  ;;  %3933 = vmatprep.subr.bf16.mxu0 %v5025_v39  ;;  %v816_v45 = vld [vmem:[#allocation5 + $0x3b8] sm:$0xff] }
 0x264   :  { %7490 = vst [vmem:[#allocation122_spill] sm:$0xff] %v5092_v54  ;;  %v7491_v47 = vand.u32 4294901760, %v4784_v38  ;;  %v5114_v58 = vsub.f32 %v4800_v4, %v7497_v31  ;;  %v7505_v4 = vand.u32 4294901760, %v4816_v32  ;;  %3935 = vmatpush1.bf16.msra.mxu0 %v5059_v49  ;;  %v2217_v49 = vand.u32 4294901760, %v816_v45 }
 0x265   :  { %7476 = vst [vmem:[#allocation117_spill] sm:$0xff] %v5046_v62  ;;  %v5065_v8 = vpack.c.bf16 %v7481_v2, %v7480_v11  ;;  %7485 = vst [vmem:[#allocation120_spill] sm:$0xff] %v5071_v10  ;;  %v7487_v11 = vand.u32 4294901760, %v5039_v14  ;;  %v7029_v2 = vand.u32 4294901760, %v5052_v22  ;;  %3549 = vmatprep.subr.bf16.mxu1 %v5046_v62  ;;  %572 = vbcast.lane.b32.xlu1 %v4790_v16, 280  ;;  %v814_v16 = vld [vmem:[#allocation5 + $0x3a8] sm:$0xff] }
 0x266   :  { %v5097_v39 = vsub.f32 %v4784_v38, %v7491_v47  ;;  %7498 = vst [vmem:[#allocation126_spill] sm:$0xff] %v5114_v58  ;;  %v7499_v38 = vand.u32 4294901760, %v4802_v41  ;;  %v5134_v31 = vsub.f32 %v4816_v32, %v7505_v4  ;;  %v7513_v32 = vand.u32 4294901760, %v4837_v26  ;;  %3937 = vmatprep.subr.bf16.mxu0 %v5071_v10 }
 0x267   :  { %7482 = vst [vmem:[#allocation119_spill] sm:$0xff] %v5065_v8  ;;  %v5084_v27 = vpack.c.bf16 %v7487_v11, %v7486_v13  ;;  %v5102_v13 = vsub.f32 %v4786_v28, %v7493_v56  ;;  %v7495_v11 = vand.u32 4294901760, %v4788_v33  ;;  %v7501_v56 = vand.u32 4294901760, %v4812_v46  ;;  %3551 = vmatpush1.bf16.msra.mxu1 %v5065_v8 }
 0x268   :  { %7492 = vst [vmem:[#allocation123_spill] sm:$0xff] %v5097_v39  ;;  %v5119_v47 = vsub.f32 %v4802_v41, %v7499_v38  ;;  %7506 = vst [vmem:[#allocation130_spill] sm:$0xff] %v5134_v31  ;;  %v7507_v41 = vand.u32 4294901760, %v4824_v34  ;;  %v5155_v4 = vsub.f32 %v4837_v26, %v7513_v32  ;;  %v7521_v26 = vand.u32 4294901760, %v5050_v15 }
 0x269   :  { %7488 = vst [vmem:[#allocation121_spill] sm:$0xff] %v5084_v27  ;;  %7494 = vst [vmem:[#allocation124_spill] sm:$0xff] %v5102_v13  ;;  %v5107_v29 = vsub.f32 %v4788_v33, %v7495_v11  ;;  %v5124_v28 = vsub.f32 %v4812_v46, %v7501_v56  ;;  %v7503_v33 = vand.u32 4294901760, %v4814_v40  ;;  %v7509_v46 = vand.u32 4294901760, %v4826_v9  ;;  %3939 = vmatpush1.bf16.msra.mxu0 %v5084_v27  ;;  %v750_v27 = vld [vmem:[#allocation5 + $0x1a8] sm:$0xff] }
 0x26a   :  { %7500 = vst [vmem:[#allocation127_spill] sm:$0xff] %v5119_v47  ;;  %v5139_v38 = vsub.f32 %v4824_v34, %v7507_v41  ;;  %7514 = vst [vmem:[#allocation134_spill] sm:$0xff] %v5155_v4  ;;  %v7515_v34 = vand.u32 4294901760, %v4839_v57  ;;  %v7523_v32 = vand.u32 4294901760, %v5074_v53  ;;  %v7528_v8 = vand.u32 4294901760, %v4871_v35 }
 0x26b   :  { %7496 = vst [vmem:[#allocation125_spill] sm:$0xff] %v5107_v29  ;;  %7502 = vst [vmem:[#allocation128_spill] sm:$0xff] %v5124_v28  ;;  %v5129_v11 = vsub.f32 %v4814_v40, %v7503_v33  ;;  %v5144_v56 = vsub.f32 %v4826_v9, %v7509_v46  ;;  %v7511_v40 = vand.u32 4294901760, %v4835_v37  ;;  %v7517_v9 = vand.u32 4294901760, %v4855_v59 }
 0x26c   :  { %7508 = vst [vmem:[#allocation131_spill] sm:$0xff] %v5139_v38  ;;  %v5160_v41 = vsub.f32 %v4839_v57, %v7515_v34  ;;  %v5178_v57 = vpack.c.bf16 %v7029_v2, %v7521_v26  ;;  %v5194_v10 = vsub.f32 %v4871_v35, %v7528_v8  ;;  %v7530_v26 = vand.u32 4294901760, %v4873_v21 }
 0x26d   :  { %7504 = vst [vmem:[#allocation129_spill] sm:$0xff] %v5129_v11  ;;  %7510 = vst [vmem:[#allocation132_spill] sm:$0xff] %v5144_v56  ;;  %v5149_v33 = vsub.f32 %v4835_v37, %v7511_v40  ;;  %v5165_v46 = vsub.f32 %v4855_v59, %v7517_v9  ;;  %v7519_v37 = vand.u32 4294901760, %v4857_v55  ;;  %v7524_v59 = vand.u32 4294901760, %v5076_v44 }
 0x26e   :  { %7516 = vst [vmem:[#allocation135_spill] sm:$0xff] %v5160_v41  ;;  %7522 = vst [vmem:[#allocation138_spill] sm:$0xff] %v5178_v57  ;;  %v2213_v9 = vand.u32 4294901760, %v814_v16  ;;  %v5199_v2 = vsub.f32 %v4873_v21, %v7530_v26  ;;  %v7534_v62 = vand.u32 4294901760, %v4888_v12  ;;  %v7538_v8 = vand.u32 4294901760, %v4902_v63  ;;  %3553 = vmatprep.subr.bf16.mxu1 %v5178_v57  ;;  %v752_v57 = vld [vmem:[#allocation5 + $0x1b8] sm:$0xff] }
 0x26f   :  { %7512 = vst [vmem:[#allocation133_spill] sm:$0xff] %v5149_v33  ;;  %7518 = vst [vmem:[#allocation136_spill] sm:$0xff] %v5165_v46  ;;  %v5170_v40 = vsub.f32 %v4857_v55, %v7519_v37  ;;  %v5184_v34 = vpack.c.bf16 %v7524_v59, %v7523_v32  ;;  %v7526_v55 = vand.u32 4294901760, %v4859_v5  ;;  %v7532_v32 = vand.u32 4294901760, %v4886_v6 }
 0x270   :  { %7529 = vst [vmem:[#allocation141_spill] sm:$0xff] %v5194_v10  ;;  %7531 = vst [vmem:[#allocation142_spill] sm:$0xff] %v5199_v2  ;;  %v5219_v21 = vsub.f32 %v4902_v63, %v7538_v8  ;;  %v7540_v26 = vand.u32 4294901760, %v4904_v3  ;;  %v7546_v63 = vand.u32 4294901760, %v4934_v30 }
 0x271   :  { %7520 = vst [vmem:[#allocation137_spill] sm:$0xff] %v5170_v40  ;;  %7525 = vst [vmem:[#allocation139_spill] sm:$0xff] %v5184_v34  ;;  %v5189_v37 = vsub.f32 %v4859_v5, %v7526_v55  ;;  %v5204_v59 = vsub.f32 %v4886_v6, %v7532_v32  ;;  %v5209_v5 = vsub.f32 %v4888_v12, %v7534_v62  ;;  %v7536_v55 = vand.u32 4294901760, %v4890_v18 }
 0x272   :  { %7539 = vst [vmem:[#allocation146_spill] sm:$0xff] %v5219_v21  ;;  %v5224_v6 = vsub.f32 %v4904_v3, %v7540_v26  ;;  %v7542_v12 = vand.u32 4294901760, %v4921_v48  ;;  %v7548_v3 = vand.u32 4294901760, %v4947_v20  ;;  %3555 = vmatpush1.bf16.msra.mxu1 %v5184_v34  ;;  %v7566_v34 = vand.u32 4294901760, %v5015_v24 }
 0x273   :  { %7527 = vst [vmem:[#allocation140_spill] sm:$0xff] %v5189_v37  ;;  %7533 = vst [vmem:[#allocation143_spill] sm:$0xff] %v5204_v59  ;;  %v5214_v35 = vsub.f32 %v4890_v18, %v7536_v55  ;;  %v7544_v18 = vand.u32 4294901760, %v4923_v25  ;;  %v5240_v55 = vsub.f32 %v4934_v30, %v7546_v63  ;;  %v7554_v30 = vand.u32 4294901760, %v4969_v7 }
 0x274   :  { %7535 = vst [vmem:[#allocation144_spill] sm:$0xff] %v5209_v5  ;;  %7541 = vst [vmem:[#allocation147_spill] sm:$0xff] %v5224_v6  ;;  %v5230_v62 = vsub.f32 %v4921_v48, %v7542_v12  ;;  %v5245_v8 = vsub.f32 %v4947_v20, %v7548_v3  ;;  %v7550_v48 = vand.u32 4294901760, %v4949_v0  ;;  %v7556_v20 = vand.u32 4294901760, %v4971_v50 }
 0x275   :  { %7537 = vst [vmem:[#allocation145_spill] sm:$0xff] %v5214_v35  ;;  %v5235_v32 = vsub.f32 %v4923_v25, %v7544_v18  ;;  %7547 = vst [vmem:[#allocation150_spill] sm:$0xff] %v5240_v55  ;;  %v7552_v25 = vand.u32 4294901760, %v4951_v17  ;;  %v5261_v18 = vsub.f32 %v4969_v7, %v7554_v30  ;;  %v7562_v7 = vand.u32 4294901760, %v4995_v19 }
 0x276   :  { %7543 = vst [vmem:[#allocation148_spill] sm:$0xff] %v5230_v62  ;;  %7549 = vst [vmem:[#allocation151_spill] sm:$0xff] %v5245_v8  ;;  %v5251_v26 = vsub.f32 %v4949_v0, %v7550_v48  ;;  %v5266_v63 = vsub.f32 %v4971_v50, %v7556_v20  ;;  %v7558_v0 = vand.u32 4294901760, %v4982_v36  ;;  %v7564_v50 = vand.u32 4294901760, %v5012_v52  ;;  %v813_v20 = vld [vmem:[#allocation5 + $0x3a0] sm:$0xff] }
 0x277   :  { %7545 = vst [vmem:[#allocation149_spill] sm:$0xff] %v5235_v32  ;;  %v5256_v12 = vsub.f32 %v4951_v17, %v7552_v25  ;;  %7555 = vst [vmem:[#allocation154_spill] sm:$0xff] %v5261_v18  ;;  %v7560_v17 = vand.u32 4294901760, %v4984_v1  ;;  %v5282_v25 = vsub.f32 %v4995_v19, %v7562_v7  ;;  %v7572_v7 = vand.u32 4294901760, %v5032_v61 }
 0x278   :  { %7551 = vst [vmem:[#allocation152_spill] sm:$0xff] %v5251_v26  ;;  %7557 = vst [vmem:[#allocation155_spill] sm:$0xff] %v5266_v63  ;;  %v5272_v3 = vsub.f32 %v4982_v36, %v7558_v0  ;;  %v5287_v30 = vsub.f32 %v5012_v52, %v7564_v50  ;;  %v5292_v36 = vsub.f32 %v5015_v24, %v7566_v34  ;;  %v7568_v0 = vand.u32 4294901760, %v5017_v51  ;;  %v815_v50 = vld [vmem:[#allocation5 + $0x3b0] sm:$0xff]  ;;  %v820_v26 = vld [vmem:[#allocation5 + $0x3d8] sm:$0xff] }
 0x279   :  { %7553 = vst [vmem:[#allocation153_spill] sm:$0xff] %v5256_v12  ;;  %v5277_v48 = vsub.f32 %v4984_v1, %v7560_v17  ;;  %7563 = vst [vmem:[#allocation158_spill] sm:$0xff] %v5282_v25  ;;  %v7570_v17 = vand.u32 4294901760, %v5030_v23  ;;  %v5307_v52 = vsub.f32 %v5032_v61, %v7572_v7  ;;  %v7574_v24 = vand.u32 4294901760, %v5037_v60  ;;  %v751_v25 = vld [vmem:[#allocation5 + $0x1b0] sm:$0xff] }
 0x27a   :  { %7559 = vst [vmem:[#allocation156_spill] sm:$0xff] %v5272_v3  ;;  %7565 = vst [vmem:[#allocation159_spill] sm:$0xff] %v5287_v30  ;;  %v5297_v1 = vsub.f32 %v5017_v51, %v7568_v0  ;;  %v7576_v51 = vand.u32 4294901760, %v5039_v14  ;;  %v7580_v61 = vand.u32 4294901760, %v5052_v22  ;;  %v749_v30 = vld [vmem:[#allocation5 + $0x1a0] sm:$0xff]  ;;  %v5343_v3 = vsub.f32 %v816_v45, %v2217_v49  ;;  %v754_v45 = vld [vmem:[#allocation5 + $0x1c8] sm:$0xff] }
 0x27b   :  { %7561 = vst [vmem:[#allocation157_spill] sm:$0xff] %v5277_v48  ;;  %7567 = vst [vmem:[#allocation160_spill] sm:$0xff] %v5292_v36  ;;  %v5302_v19 = vsub.f32 %v5030_v23, %v7570_v17  ;;  %v5312_v34 = vsub.f32 %v5037_v60, %v7574_v24  ;;  %v7578_v23 = vand.u32 4294901760, %v5050_v15  ;;  %v818_v48 = vld [vmem:[#allocation5 + $0x3c8] sm:$0xff]  ;;  %v7582_v60 = vand.u32 4294901760, %v5074_v53 }
 0x27c   :  { %7569 = vst [vmem:[#allocation161_spill] sm:$0xff] %v5297_v1  ;;  %7573 = vst [vmem:[#allocation163_spill] sm:$0xff] %v5307_v52  ;;  %v5317_v0 = vsub.f32 %v5039_v14, %v7576_v51  ;;  %v5327_v7 = vsub.f32 %v5052_v22, %v7580_v61  ;;  %v7584_v14 = vand.u32 4294901760, %v5076_v44  ;;  %v2215_v22 = vand.u32 4294901760, %v813_v20 }
 0x27d   :  { %7571 = vst [vmem:[#allocation162_spill] sm:$0xff] %v5302_v19  ;;  %7575 = vst [vmem:[#allocation164_spill] sm:$0xff] %v5312_v34  ;;  %v5322_v17 = vsub.f32 %v5050_v15, %v7578_v23  ;;  %v5332_v24 = vsub.f32 %v5074_v53, %v7582_v60  ;;  %v5339_v15 = vpack.c.bf16 %v2217_v49, %v2213_v9  ;;  %v2219_v61 = vand.u32 4294901760, %v815_v50 }
 0x27e   :  { %7577 = vst [vmem:[#allocation165_spill] sm:$0xff] %v5317_v0  ;;  %7581 = vst [vmem:[#allocation167_spill] sm:$0xff] %v5327_v7  ;;  %v5337_v51 = vsub.f32 %v5076_v44, %v7584_v14  ;;  %v5341_v23 = vsub.f32 %v814_v16, %v2213_v9  ;;  %v929_v12 = vand.u32 4294901760, %v750_v27  ;;  %v933_v63 = vand.u32 4294901760, %v752_v57  ;;  %v819_v7 = vld [vmem:[#allocation5 + $0x3d0] sm:$0xff]  ;;  %v756_v9 = vld [vmem:[#allocation5 + $0x1d8] sm:$0xff] }
 0x27f   :  { %7579 = vst [vmem:[#allocation166_spill] sm:$0xff] %v5322_v17  ;;  %7583 = vst [vmem:[#allocation168_spill] sm:$0xff] %v5332_v24  ;;  %3941 = vmatprep.subr.bf16.mxu0 %v5339_v15  ;;  %v931_v53 = vand.u32 4294901760, %v749_v30  ;;  %v935_v60 = vand.u32 4294901760, %v751_v25  ;;  %v2221_v18 = vand.u32 4294901760, %v818_v48  ;;  %v817_v24 = vld [vmem:[#allocation5 + $0x3c0] sm:$0xff]  ;;  %v5346_v44 = vpack.c.bf16 %v2219_v61, %v2215_v22 }
 0x280   :  { %7585 = vst [vmem:[#allocation169_spill] sm:$0xff] %v5337_v51  ;;  %7586 = vst [vmem:[#allocation170_spill] sm:$0xff] %v5339_v15  ;;  %v5348_v14 = vsub.f32 %v813_v20, %v2215_v22  ;;  %v5350_v16 = vsub.f32 %v815_v50, %v2219_v61  ;;  %v5352_v49 = vsub.f32 %v750_v27, %v929_v12  ;;  %v755_v0 = vld [vmem:[#allocation5 + $0x1d0] sm:$0xff]  ;;  %v2225_v50 = vand.u32 4294901760, %v820_v26 }
 0x281   :  { %7587 = vst [vmem:[#allocation171_spill] sm:$0xff] %v5341_v23  ;;  %7588 = vst [vmem:[#allocation172_spill] sm:$0xff] %v5343_v3  ;;  %v753_v3 = vld [vmem:[#allocation5 + $0x1c0] sm:$0xff]  ;;  %v5354_v23 = vpack.c.bf16 %v933_v63, %v929_v12  ;;  %v5356_v15 = vsub.f32 %v752_v57, %v933_v63  ;;  %v5358_v51 = vpack.c.bf16 %v935_v60, %v931_v53  ;;  %3943 = vmatpush1.bf16.msra.mxu0 %v5346_v44  ;;  %v822_v63 = vld [vmem:[#allocation5 + $0x3e8] sm:$0xff] }
 0x282   :  { %7589 = vst [vmem:[#allocation173_spill] sm:$0xff] %v5346_v44  ;;  %7590 = vst [vmem:[#allocation174_spill] sm:$0xff] %v5348_v14  ;;  %v5360_v17 = vsub.f32 %v749_v30, %v931_v53  ;;  %v5363_v20 = vsub.f32 %v751_v25, %v935_v60  ;;  %v5365_v22 = vsub.f32 %v818_v48, %v2221_v18  ;;  %v2223_v27 = vand.u32 4294901760, %v817_v24  ;;  %v821_v48 = vld [vmem:[#allocation5 + $0x3e0] sm:$0xff]  ;;  %v823_v44 = vld [vmem:[#allocation5 + $0x3f0] sm:$0xff] }
 0x283   :  { %7591 = vst [vmem:[#allocation175_spill] sm:$0xff] %v5350_v16  ;;  %7592 = vst [vmem:[#allocation176_spill] sm:$0xff] %v5352_v49  ;;  %3557 = vmatprep.subr.bf16.mxu1 %v5354_v23  ;;  %v2227_v61 = vand.u32 4294901760, %v819_v7  ;;  %v937_v12 = vand.u32 4294901760, %v754_v45  ;;  %v941_v49 = vand.u32 4294901760, %v756_v9  ;;  %v939_v57 = vand.u32 4294901760, %v753_v3 }
 0x284   :  { %7593 = vst [vmem:[#allocation177_spill] sm:$0xff] %v5354_v23  ;;  %7594 = vst [vmem:[#allocation178_spill] sm:$0xff] %v5356_v15  ;;  %v824_v15 = vld [vmem:[#allocation5 + $0x3f8] sm:$0xff]  ;;  %3559 = vmatpush1.bf16.msra.mxu1 %v5358_v51  ;;  %v5369_v30 = vpack.c.bf16 %v2225_v50, %v2221_v18  ;;  %v5371_v53 = vsub.f32 %v820_v26, %v2225_v50  ;;  %v5373_v25 = vsub.f32 %v817_v24, %v2223_v27  ;;  %v759_v18 = vld [vmem:[#allocation5 + $0x1f0] sm:$0xff] }
 0x285   :  { %7595 = vst [vmem:[#allocation179_spill] sm:$0xff] %v5358_v51  ;;  %7596 = vst [vmem:[#allocation180_spill] sm:$0xff] %v5360_v17  ;;  %v943_v60 = vand.u32 4294901760, %v755_v0  ;;  %v5377_v23 = vsub.f32 %v819_v7, %v2227_v61  ;;  %v5379_v17 = vpack.c.bf16 %v941_v49, %v937_v12  ;;  %v5381_v16 = vsub.f32 %v754_v45, %v937_v12  ;;  %v760_v14 = vld [vmem:[#allocation5 + $0x1f8] sm:$0xff]  ;;  %v757_v51 = vld [vmem:[#allocation5 + $0x1e0] sm:$0xff] }
 0x286   :  { %7597 = vst [vmem:[#allocation181_spill] sm:$0xff] %v5363_v20  ;;  %7598 = vst [vmem:[#allocation182_spill] sm:$0xff] %v5365_v22  ;;  %v758_v22 = vld [vmem:[#allocation5 + $0x1e8] sm:$0xff]  ;;  %v5375_v20 = vpack.c.bf16 %v2227_v61, %v2223_v27  ;;  %3945 = vmatprep.subr.bf16.mxu0 %v5369_v30  ;;  %v5384_v26 = vsub.f32 %v756_v9, %v941_v49  ;;  %v5388_v50 = vsub.f32 %v753_v3, %v939_v57 }
 0x287   :  { %7599 = vst [vmem:[#allocation183_spill] sm:$0xff] %v5369_v30  ;;  %7600 = vst [vmem:[#allocation184_spill] sm:$0xff] %v5371_v53  ;;  %v5386_v24 = vpack.c.bf16 %v943_v60, %v939_v57  ;;  %3561 = vmatprep.subr.bf16.mxu1 %v5379_v17  ;;  %v2229_v7 = vand.u32 4294901760, %v822_v63  ;;  %v2233_v45 = vand.u32 4294901760, %v824_v15  ;;  %v2231_v27 = vand.u32 4294901760, %v821_v48 }
 0x288   :  { %7601 = vst [vmem:[#allocation185_spill] sm:$0xff] %v5373_v25  ;;  %7602 = vst [vmem:[#allocation186_spill] sm:$0xff] %v5375_v20  ;;  %v5390_v25 = vsub.f32 %v755_v0, %v943_v60  ;;  %3947 = vmatpush1.bf16.msra.mxu0 %v5375_v20  ;;  %v2235_v61 = vand.u32 4294901760, %v823_v44  ;;  %v945_v12 = vand.u32 4294901760, %v758_v22  ;;  %v949_v30 = vand.u32 4294901760, %v760_v14 }
 0x289   :  { %7603 = vst [vmem:[#allocation187_spill] sm:$0xff] %v5377_v23  ;;  %7604 = vst [vmem:[#allocation188_spill] sm:$0xff] %v5379_v17  ;;  %3563 = vmatpush1.bf16.msra.mxu1 %v5386_v24  ;;  %v947_v49 = vand.u32 4294901760, %v757_v51  ;;  %v951_v9 = vand.u32 4294901760, %v759_v18  ;;  %v5397_v3 = vsub.f32 %v822_v63, %v2229_v7  ;;  %v5399_v0 = vsub.f32 %v824_v15, %v2233_v45 }
 0x28a   :  { %7605 = vst [vmem:[#allocation189_spill] sm:$0xff] %v5381_v16  ;;  %7606 = vst [vmem:[#allocation190_spill] sm:$0xff] %v5384_v26  ;;  %v5395_v26 = vpack.c.bf16 %v2233_v45, %v2229_v7  ;;  %v5401_v57 = vpack.c.bf16 %v2235_v61, %v2231_v27  ;;  %v5403_v60 = vsub.f32 %v821_v48, %v2231_v27  ;;  %v7089_v48 = vand.u32 4294901760, %v4598_v43 }
 0x28b   :  { %7607 = vst [vmem:[#allocation191_spill] sm:$0xff] %v5386_v24  ;;  %7608 = vst [vmem:[#allocation192_spill] sm:$0xff] %v5388_v50  ;;  %v5405_v20 = vsub.f32 %v823_v44, %v2235_v61  ;;  %v5407_v17 = vpack.c.bf16 %v949_v30, %v945_v12  ;;  %v5412_v24 = vsub.f32 %v760_v14, %v949_v30  ;;  %v7084_v44 = vand.u32 4294901760, %v4596_v42  ;;  %v7623_v14 = vld [vmem:[#allocation22_spill] sm:$0xff] }
 0x28c   :  { %7609 = vst [vmem:[#allocation193_spill] sm:$0xff] %v5390_v25  ;;  %7610 = vst [vmem:[#allocation194_spill] sm:$0xff] %v5395_v26  ;;  %v5409_v25 = vsub.f32 %v758_v22, %v945_v12  ;;  %3949 = vmatprep.subr.bf16.mxu0 %v5395_v26  ;;  %v5414_v50 = vpack.c.bf16 %v951_v9, %v947_v49  ;;  %v5416_v63 = vsub.f32 %v757_v51, %v947_v49  ;;  %v7622_v22 = vld [vmem:[#allocation21_spill] sm:$0xff]  ;;  %v7625_v26 = vld [vmem:[#allocation19_spill] sm:$0xff] }
 0x28d   :  { %7611 = vst [vmem:[#allocation195_spill] sm:$0xff] %v5397_v3  ;;  %7612 = vst [vmem:[#allocation196_spill] sm:$0xff] %v5399_v0  ;;  %v5418_v15 = vsub.f32 %v759_v18, %v951_v9  ;;  %3951 = vmatpush1.bf16.msra.mxu0 %v5401_v57  ;;  %3565 = vmatprep.subr.bf16.mxu1 %v5407_v17  ;;  %v7095_v7 = vand.u32 4294901760, %v7622_v22  ;;  %v7099_v30 = vand.u32 4294901760, %v7623_v14 }
 0x28e   :  { %7613 = vst [vmem:[#allocation197_spill] sm:$0xff] %v5401_v57  ;;  %7614 = vst [vmem:[#allocation198_spill] sm:$0xff] %v5403_v60  ;;  %3567 = vmatpush1.bf16.msra.mxu1 %v5414_v50  ;;  %v2257_v51 = vsub.f32 %v4596_v42, %v7084_v44  ;;  %v2269_v18 = vsub.f32 %v4598_v43, %v7089_v48  ;;  %v7624_v44 = vld [vmem:[#allocation17_spill] sm:$0xff]  ;;  %v7626_v43 = vld [vmem:[#allocation24_spill] sm:$0xff] }
 0x28f   :  { %7615 = vst [vmem:[#allocation199_spill] sm:$0xff] %v5405_v20  ;;  %7616 = vst [vmem:[#allocation200_spill] sm:$0xff] %v5407_v17  ;;  %v973_v45 = vsub.f32 %v7622_v22, %v7095_v7  ;;  %v985_v27 = vsub.f32 %v7623_v14, %v7099_v30  ;;  %v7628_v22 = vld [vmem:[#allocation26_spill] sm:$0xff]  ;;  %v7635_v17 = vld [vmem:[#allocation37_spill] sm:$0xff]  ;;  %v7636_v42 = vand.u32 4294901760, %v7624_v44 }
 0x290   :  { %7617 = vst [vmem:[#allocation201_spill] sm:$0xff] %v5409_v25  ;;  %7618 = vst [vmem:[#allocation202_spill] sm:$0xff] %v5412_v24  ;;  %v2258_v61 = vand.u32 4294901760, %v2257_v51  ;;  %v2270_v12 = vand.u32 4294901760, %v2269_v18  ;;  %v7629_v24 = vld [vmem:[#allocation28_spill] sm:$0xff]  ;;  %v7630_v51 = vld [vmem:[#allocation30_spill] sm:$0xff] }
 0x291   :  { %7619 = vst [vmem:[#allocation203_spill] sm:$0xff] %v5414_v50  ;;  %7620 = vst [vmem:[#allocation204_spill] sm:$0xff] %v5416_v63  ;;  %v974_v49 = vand.u32 4294901760, %v973_v45  ;;  %v986_v9 = vand.u32 4294901760, %v985_v27  ;;  %v7631_v45 = vld [vmem:[#allocation31_spill] sm:$0xff]  ;;  %v2263_v7 = vsub.f32 %v7624_v44, %v7636_v42  ;;  %v7637_v63 = vand.u32 4294901760, %v7625_v26 }
 0x292   :  { %7621 = vst [vmem:[#allocation205_spill] sm:$0xff] %v5418_v15  ;;  %v3952_v50 = vpack.c.bf16 %v2270_v12, %v2258_v61  ;;  %v7627_v15 = vld [vmem:[#allocation25_spill] sm:$0xff]  ;;  %v7632_v61 = vld [vmem:[#allocation32_spill] sm:$0xff]  ;;  %v7638_v18 = vand.u32 4294901760, %v7626_v43  ;;  %v7641_v14 = vand.u32 4294901760, %v7629_v24  ;;  %v7642_v44 = vand.u32 4294901760, %v7630_v51 }
 0x293   :  { %v3568_v57 = vpack.c.bf16 %v986_v9, %v974_v49  ;;  %v7634_v49 = vld [vmem:[#allocation35_spill] sm:$0xff]  ;;  %v2275_v30 = vsub.f32 %v7625_v26, %v7637_v63  ;;  %v7639_v12 = vand.u32 4294901760, %v7627_v15  ;;  %v7640_v9 = vand.u32 4294901760, %v7628_v22  ;;  %v7649_v60 = vld [vmem:[#allocation40_spill] sm:$0xff] }
 0x294   :  { %3953 = vmatprep.subr.bf16.mxu0 %v3952_v50  ;;  %v7633_v50 = vld [vmem:[#allocation34_spill] sm:$0xff]  ;;  %v979_v27 = vsub.f32 %v7626_v43, %v7638_v18  ;;  %v2293_v42 = vsub.f32 %v7629_v24, %v7641_v14  ;;  %v2287_v63 = vsub.f32 %v7630_v51, %v7642_v44  ;;  %v7643_v26 = vand.u32 4294901760, %v7631_v45  ;;  %v7648_v51 = vld [vmem:[#allocation39_spill] sm:$0xff] }
 0x295   :  { %3569 = vmatprep.subr.bf16.mxu1 %v3568_v57  ;;  %v991_v57 = vsub.f32 %v7627_v15, %v7639_v12  ;;  %v2281_v48 = vsub.f32 %v7628_v22, %v7640_v9  ;;  %v7644_v43 = vand.u32 4294901760, %v7632_v61  ;;  %v7645_v15 = vand.u32 4294901760, %v7633_v50 }
 0x296   :  { %v2299_v18 = vsub.f32 %v7631_v45, %v7643_v26  ;;  %v7646_v22 = vand.u32 4294901760, %v7634_v49  ;;  %v7647_v24 = vand.u32 4294901760, %v7635_v17  ;;  %v7120_v25 = vand.u32 4294901760, %v7648_v51 }
 0x297   :  { %v997_v12 = vsub.f32 %v7632_v61, %v7644_v43  ;;  %v1009_v9 = vsub.f32 %v7633_v50, %v7645_v15  ;;  %v2264_v20 = vand.u32 4294901760, %v2263_v7  ;;  %v2276_v26 = vand.u32 4294901760, %v2275_v30  ;;  %v7651_v30 = vld [vmem:[#allocation43_spill] sm:$0xff] }
 0x298   :  { %v1003_v14 = vsub.f32 %v7634_v49, %v7646_v22  ;;  %v1015_v44 = vsub.f32 %v7635_v17, %v7647_v24  ;;  %v980_v45 = vand.u32 4294901760, %v979_v27  ;;  %v7121_v0 = vand.u32 4294901760, %v7649_v60  ;;  %v7650_v17 = vld [vmem:[#allocation42_spill] sm:$0xff]  ;;  %v7670_v49 = vld [vmem:[#allocation57_spill] sm:$0xff] }
 0x299   :  { %v992_v43 = vand.u32 4294901760, %v991_v57  ;;  %v2282_v61 = vand.u32 4294901760, %v2281_v48  ;;  %v2294_v3 = vand.u32 4294901760, %v2293_v42  ;;  %v2288_v16 = vand.u32 4294901760, %v2287_v63  ;;  %v7652_v57 = vld [vmem:[#allocation45_spill] sm:$0xff]  ;;  %v7653_v63 = vld [vmem:[#allocation46_spill] sm:$0xff] }
 0x29a   :  { %v2300_v15 = vand.u32 4294901760, %v2299_v18  ;;  %v998_v50 = vand.u32 4294901760, %v997_v12  ;;  %v1010_v23 = vand.u32 4294901760, %v1009_v9  ;;  %v1004_v53 = vand.u32 4294901760, %v1003_v14 }
 0x29b   :  { %v1016_v22 = vand.u32 4294901760, %v1015_v44  ;;  %v5492_v24 = vsub.f32 %v7648_v51, %v7120_v25  ;;  %v5499_v48 = vsub.f32 %v7649_v60, %v7121_v0  ;;  %v5503_v12 = vpack.c.bf16 %v2276_v26, %v2264_v20  ;;  %v7665_v26 = vld [vmem:[#allocation49_spill] sm:$0xff]  ;;  %v7671_v51 = vld [vmem:[#allocation58_spill] sm:$0xff] }
 0x29c   :  { %v5505_v9 = vpack.c.bf16 %v992_v43, %v980_v45  ;;  %v5507_v14 = vpack.c.bf16 %v2294_v3, %v2282_v61  ;;  %v5509_v44 = vpack.c.bf16 %v2300_v15, %v2288_v16  ;;  %v5511_v25 = vpack.c.bf16 %v1010_v23, %v998_v50  ;;  %v7664_v61 = vld [vmem:[#allocation48_spill] sm:$0xff]  ;;  %v7666_v15 = vld [vmem:[#allocation51_spill] sm:$0xff] }
 0x29d   :  { %7654 = vst [vmem:[#allocation206_spill] sm:$0xff] %v5503_v12  ;;  %v5513_v27 = vpack.c.bf16 %v1016_v22, %v1004_v53  ;;  %v2306_v7 = vand.u32 4294901760, %v5492_v24  ;;  %v7660_v0 = vand.u32 4294901760, %v7650_v17  ;;  %v7661_v18 = vand.u32 4294901760, %v7651_v30  ;;  %v7667_v22 = vld [vmem:[#allocation52_spill] sm:$0xff]  ;;  %v7688_v12 = vld [vmem:[#allocation69_spill] sm:$0xff] }
 0x29e   :  { %7655 = vst [vmem:[#allocation207_spill] sm:$0xff] %v5505_v9  ;;  %7656 = vst [vmem:[#allocation208_spill] sm:$0xff] %v5507_v14  ;;  %v2318_v45 = vand.u32 4294901760, %v5499_v48  ;;  %v7662_v3 = vand.u32 4294901760, %v7652_v57  ;;  %v7663_v23 = vand.u32 4294901760, %v7653_v63  ;;  %v7675_v24 = vand.u32 4294901760, %v7664_v61 }
 0x29f   :  { %7657 = vst [vmem:[#allocation209_spill] sm:$0xff] %v5509_v44  ;;  %7658 = vst [vmem:[#allocation210_spill] sm:$0xff] %v5511_v25  ;;  %v2311_v42 = vsub.f32 %v7650_v17, %v7660_v0  ;;  %v2323_v20 = vsub.f32 %v7651_v30, %v7661_v18  ;;  %v7668_v17 = vld [vmem:[#allocation54_spill] sm:$0xff]  ;;  %v7669_v30 = vld [vmem:[#allocation55_spill] sm:$0xff]  ;;  %v7677_v60 = vand.u32 4294901760, %v7665_v26  ;;  %v7682_v50 = vand.u32 4294901760, %v7670_v49 }
 0x2a0   :  { %7659 = vst [vmem:[#allocation211_spill] sm:$0xff] %v5513_v27  ;;  %v1021_v16 = vsub.f32 %v7652_v57, %v7662_v3  ;;  %v1033_v53 = vsub.f32 %v7653_v63, %v7663_v23  ;;  %v7672_v57 = vld [vmem:[#allocation60_spill] sm:$0xff]  ;;  %v7673_v63 = vld [vmem:[#allocation61_spill] sm:$0xff]  ;;  %v7674_v25 = vld [vmem:[#allocation63_spill] sm:$0xff]  ;;  %v1027_v18 = vsub.f32 %v7664_v61, %v7675_v24  ;;  %v7678_v27 = vand.u32 4294901760, %v7666_v15 }
 0x2a1   :  { %v2312_v44 = vand.u32 4294901760, %v2311_v42  ;;  %v2324_v23 = vand.u32 4294901760, %v2323_v20  ;;  %v7676_v9 = vld [vmem:[#allocation64_spill] sm:$0xff]  ;;  %v1039_v3 = vsub.f32 %v7665_v26, %v7677_v60  ;;  %v7679_v20 = vand.u32 4294901760, %v7667_v22 }
 0x2a2   :  { %v1022_v14 = vand.u32 4294901760, %v1021_v16  ;;  %v1034_v0 = vand.u32 4294901760, %v1033_v53  ;;  %v2329_v42 = vsub.f32 %v7666_v15, %v7678_v27  ;;  %v7680_v16 = vand.u32 4294901760, %v7668_v17 }
 0x2a3   :  { %v2341_v43 = vsub.f32 %v7667_v22, %v7679_v20  ;;  %v7681_v24 = vand.u32 4294901760, %v7669_v30  ;;  %v1045_v60 = vsub.f32 %v7670_v49, %v7682_v50  ;;  %v7683_v26 = vand.u32 4294901760, %v7671_v51 }
 0x2a4   :  { %v2335_v53 = vsub.f32 %v7668_v17, %v7680_v16  ;;  %v7684_v61 = vand.u32 4294901760, %v7672_v57  ;;  %v7685_v22 = vand.u32 4294901760, %v7673_v63  ;;  %v7686_v17 = vand.u32 4294901760, %v7674_v25 }
 0x2a5   :  { %v2347_v48 = vsub.f32 %v7669_v30, %v7681_v24  ;;  %v1057_v27 = vsub.f32 %v7671_v51, %v7683_v26  ;;  %v7687_v30 = vld [vmem:[#allocation68_spill] sm:$0xff]  ;;  %v1028_v49 = vand.u32 4294901760, %v1027_v18  ;;  %v7689_v34 = vand.u32 4294901760, %v7676_v9  ;;  %v7690_v51 = vld [vmem:[#allocation70_spill] sm:$0xff] }
 0x2a6   :  { %v1051_v20 = vsub.f32 %v7672_v57, %v7684_v61  ;;  %v1063_v16 = vsub.f32 %v7673_v63, %v7685_v22  ;;  %v2353_v24 = vsub.f32 %v7674_v25, %v7686_v17  ;;  %v7691_v61 = vld [vmem:[#allocation71_spill] sm:$0xff]  ;;  %v1040_v8 = vand.u32 4294901760, %v1039_v3 }
 0x2a7   :  { %v2365_v26 = vsub.f32 %v7676_v9, %v7689_v34  ;;  %v7150_v57 = vand.u32 4294901760, %v7691_v61  ;;  %v2330_v19 = vand.u32 4294901760, %v2329_v42  ;;  %v2342_v22 = vand.u32 4294901760, %v2341_v43  ;;  %v7695_v42 = vld [vmem:[#allocation72_spill] sm:$0xff] }
 0x2a8   :  { %v2336_v63 = vand.u32 4294901760, %v2335_v53  ;;  %v2348_v1 = vand.u32 4294901760, %v2347_v48  ;;  %v1046_v36 = vand.u32 4294901760, %v1045_v60  ;;  %v1058_v17 = vand.u32 4294901760, %v1057_v27 }
 0x2a9   :  { %v1052_v25 = vand.u32 4294901760, %v1051_v20  ;;  %v1064_v15 = vand.u32 4294901760, %v1063_v16  ;;  %v2354_v55 = vand.u32 4294901760, %v2353_v24  ;;  %v7692_v18 = vand.u32 4294901760, %v7687_v30  ;;  %v7696_v20 = vld [vmem:[#allocation73_spill] sm:$0xff]  ;;  %v7697_v24 = vld [vmem:[#allocation75_spill] sm:$0xff] }
 0x2aa   :  { %v7693_v34 = vand.u32 4294901760, %v7688_v12  ;;  %v2366_v9 = vand.u32 4294901760, %v2365_v26  ;;  %v7694_v3 = vand.u32 4294901760, %v7690_v51  ;;  %v1081_v48 = vsub.f32 %v7691_v61, %v7150_v57 }
 0x2ab   :  { %v2359_v50 = vsub.f32 %v7687_v30, %v7692_v18  ;;  %v7151_v53 = vand.u32 4294901760, %v7695_v42  ;;  %v5594_v60 = vpack.c.bf16 %v2318_v45, %v2306_v7  ;;  %v5596_v27 = vpack.c.bf16 %v2324_v23, %v2312_v44 }
 0x2ac   :  { %v2371_v52 = vsub.f32 %v7688_v12, %v7693_v34  ;;  %v1069_v43 = vsub.f32 %v7690_v51, %v7694_v3  ;;  %v7154_v18 = vand.u32 4294901760, %v7697_v24  ;;  %v5600_v34 = vpack.c.bf16 %v1034_v0, %v1022_v14  ;;  %v7708_v0 = vld [vmem:[#allocation82_spill] sm:$0xff] }
 0x2ad   :  { %v5602_v26 = vpack.c.bf16 %v1040_v8, %v1028_v49  ;;  %v5604_v12 = vpack.c.bf16 %v2342_v22, %v2330_v19  ;;  %v5606_v3 = vpack.c.bf16 %v2348_v1, %v2336_v63  ;;  %v5608_v30 = vpack.c.bf16 %v1058_v17, %v1046_v36  ;;  %v7704_v1 = vld [vmem:[#allocation76_spill] sm:$0xff]  ;;  %v7705_v49 = vld [vmem:[#allocation78_spill] sm:$0xff]  ;;  %v7709_v22 = vld [vmem:[#allocation83_spill] sm:$0xff] }
 0x2ae   :  { %v5610_v57 = vpack.c.bf16 %v1064_v15, %v1052_v25  ;;  %v2360_v7 = vand.u32 4294901760, %v2359_v50  ;;  %v2372_v45 = vand.u32 4294901760, %v2371_v52  ;;  %v5612_v44 = vpack.c.bf16 %v2366_v9, %v2354_v55  ;;  %v7706_v55 = vld [vmem:[#allocation79_spill] sm:$0xff]  ;;  %v7707_v9 = vld [vmem:[#allocation81_spill] sm:$0xff] }
 0x2af   :  { %7698 = vst [vmem:[#allocation212_spill] sm:$0xff] %v5602_v26  ;;  %7699 = vst [vmem:[#allocation213_spill] sm:$0xff] %v5606_v3  ;;  %v1070_v23 = vand.u32 4294901760, %v1069_v43  ;;  %v1082_v16 = vand.u32 4294901760, %v1081_v48  ;;  %v1075_v14 = vsub.f32 %v7695_v42, %v7151_v53  ;;  %v7703_v8 = vand.u32 4294901760, %v7696_v20  ;;  %v7711_v48 = vld [vmem:[#allocation85_spill] sm:$0xff] }
 0x2b0   :  { %7700 = vst [vmem:[#allocation214_spill] sm:$0xff] %v5608_v30  ;;  %7701 = vst [vmem:[#allocation215_spill] sm:$0xff] %v5610_v57  ;;  %v2377_v36 = vsub.f32 %v7697_v24, %v7154_v18  ;;  %v7161_v17 = vand.u32 4294901760, %v7709_v22  ;;  %v5629_v43 = vpack.c.bf16 %v2372_v45, %v2360_v7  ;;  %v7712_v53 = vld [vmem:[#allocation87_spill] sm:$0xff]  ;;  %v7713_v42 = vld [vmem:[#allocation88_spill] sm:$0xff]  ;;  %v7717_v50 = vand.u32 4294901760, %v7704_v1 }
 0x2b1   :  { %7702 = vst [vmem:[#allocation216_spill] sm:$0xff] %v5612_v44  ;;  %v1087_v19 = vsub.f32 %v7696_v20, %v7703_v8  ;;  %v7167_v18 = vand.u32 4294901760, %v7713_v42  ;;  %v5634_v24 = vpack.c.bf16 %v1082_v16, %v1070_v23  ;;  %v1076_v25 = vand.u32 4294901760, %v1075_v14  ;;  %v7715_v52 = vld [vmem:[#allocation89_spill] sm:$0xff]  ;;  %v7716_v63 = vld [vmem:[#allocation91_spill] sm:$0xff] }
 0x2b2   :  { %7710 = vst [vmem:[#allocation217_spill] sm:$0xff] %v5629_v43  ;;  %v2378_v57 = vand.u32 4294901760, %v2377_v36  ;;  %v2389_v7 = vsub.f32 %v7704_v1, %v7717_v50  ;;  %v7718_v45 = vand.u32 4294901760, %v7705_v49  ;;  %v7719_v20 = vand.u32 4294901760, %v7706_v55 }
 0x2b3   :  { %7714 = vst [vmem:[#allocation218_spill] sm:$0xff] %v5634_v24  ;;  %v1088_v15 = vand.u32 4294901760, %v1087_v19  ;;  %v7720_v23 = vand.u32 4294901760, %v7707_v9  ;;  %v7721_v51 = vand.u32 4294901760, %v7708_v0  ;;  %v1099_v36 = vsub.f32 %v7709_v22, %v7161_v17  ;;  %v7729_v24 = vld [vmem:[#allocation97_spill] sm:$0xff] }
 0x2b4   :  { %v2383_v8 = vsub.f32 %v7705_v49, %v7718_v45  ;;  %v2395_v16 = vsub.f32 %v7706_v55, %v7719_v20  ;;  %v7722_v50 = vand.u32 4294901760, %v7711_v48  ;;  %v7723_v61 = vand.u32 4294901760, %v7712_v53  ;;  %v7724_v55 = vld [vmem:[#allocation93_spill] sm:$0xff] }
 0x2b5   :  { %v1093_v14 = vsub.f32 %v7707_v9, %v7720_v23  ;;  %v1105_v19 = vsub.f32 %v7708_v0, %v7721_v51  ;;  %v2413_v23 = vsub.f32 %v7713_v42, %v7167_v18  ;;  %v7725_v51 = vand.u32 4294901760, %v7715_v52  ;;  %v7727_v9 = vld [vmem:[#allocation94_spill] sm:$0xff] }
 0x2b6   :  { %v1111_v45 = vsub.f32 %v7711_v48, %v7722_v50  ;;  %v2401_v20 = vsub.f32 %v7712_v53, %v7723_v61  ;;  %v7726_v17 = vand.u32 4294901760, %v7716_v63  ;;  %v7728_v48 = vld [vmem:[#allocation95_spill] sm:$0xff]  ;;  %v5674_v43 = vpack.c.bf16 %v1088_v15, %v1076_v25 }
 0x2b7   :  { %v2407_v0 = vsub.f32 %v7715_v52, %v7725_v51  ;;  %v7172_v1 = vand.u32 4294901760, %v7728_v48  ;;  %v2390_v61 = vand.u32 4294901760, %v2389_v7  ;;  %v2384_v53 = vand.u32 4294901760, %v2383_v8 }
 0x2b8   :  { %v2419_v22 = vsub.f32 %v7716_v63, %v7726_v17  ;;  %v7171_v18 = vand.u32 4294901760, %v7729_v24  ;;  %v2396_v42 = vand.u32 4294901760, %v2395_v16  ;;  %v1094_v49 = vand.u32 4294901760, %v1093_v14  ;;  %v7732_v14 = vld [vmem:[#allocation98_spill] sm:$0xff] }
 0x2b9   :  { %v1106_v44 = vand.u32 4294901760, %v1105_v19  ;;  %v1100_v3 = vand.u32 4294901760, %v1099_v36  ;;  %v1112_v30 = vand.u32 4294901760, %v1111_v45  ;;  %v2402_v51 = vand.u32 4294901760, %v2401_v20  ;;  %v7733_v36 = vld [vmem:[#allocation100_spill] sm:$0xff] }
 0x2ba   :  { %v2414_v52 = vand.u32 4294901760, %v2413_v23  ;;  %v7730_v26 = vand.u32 4294901760, %v7724_v55  ;;  %v2408_v50 = vand.u32 4294901760, %v2407_v0  ;;  %v2420_v63 = vand.u32 4294901760, %v2419_v22 }
 0x2bb   :  { %v7731_v25 = vand.u32 4294901760, %v7727_v9  ;;  %v1123_v8 = vsub.f32 %v7728_v48, %v7172_v1  ;;  %v5686_v7 = vpack.c.bf16 %v2390_v61, %v2378_v57  ;;  %v1135_v16 = vsub.f32 %v7729_v24, %v7171_v18 }
 0x2bc   :  { %v1117_v17 = vsub.f32 %v7724_v55, %v7730_v26  ;;  %v7175_v19 = vand.u32 4294901760, %v7732_v14  ;;  %v5693_v0 = vpack.c.bf16 %v2396_v42, %v2384_v53  ;;  %v5695_v22 = vpack.c.bf16 %v1106_v44, %v1094_v49 }
 0x2bd   :  { %v1129_v15 = vsub.f32 %v7727_v9, %v7731_v25  ;;  %v7174_v45 = vand.u32 4294901760, %v5092_v54  ;;  %v7173_v20 = vand.u32 4294901760, %v5097_v39  ;;  %v5699_v23 = vpack.c.bf16 %v1112_v30, %v1100_v3 }
 0x2be   :  { %v5701_v57 = vpack.c.bf16 %v2414_v52, %v2402_v51  ;;  %v7176_v61 = vand.u32 4294901760, %v5102_v13  ;;  %v7177_v25 = vand.u32 4294901760, %v5107_v29  ;;  %v5705_v18 = vpack.c.bf16 %v2420_v63, %v2408_v50 }
 0x2bf   :  { %v1118_v1 = vand.u32 4294901760, %v1117_v17  ;;  %v1130_v26 = vand.u32 4294901760, %v1129_v15  ;;  %v1124_v42 = vand.u32 4294901760, %v1123_v8  ;;  %v1136_v53 = vand.u32 4294901760, %v1135_v16 }
 0x2c0   :  { %v2425_v44 = vsub.f32 %v7732_v14, %v7175_v19  ;;  %v7734_v49 = vand.u32 4294901760, %v7733_v36  ;;  %v7180_v3 = vand.u32 4294901760, %v5114_v58  ;;  %v2431_v52 = vsub.f32 %v5092_v54, %v7174_v45 }
 0x2c1   :  { %v2443_v63 = vsub.f32 %v5097_v39, %v7173_v20  ;;  %v1141_v17 = vsub.f32 %v5102_v13, %v7176_v61  ;;  %v1153_v15 = vsub.f32 %v5107_v29, %v7177_v25  ;;  %v5735_v51 = vpack.c.bf16 %v1136_v53, %v1124_v42 }
 0x2c2   :  { %v2437_v30 = vsub.f32 %v7733_v36, %v7734_v49  ;;  %v5730_v49 = vpack.c.bf16 %v1130_v26, %v1118_v1  ;;  %v2426_v50 = vand.u32 4294901760, %v2425_v44  ;;  %v1147_v25 = vsub.f32 %v5114_v58, %v7180_v3 }
 0x2c3   :  { %v2432_v39 = vand.u32 4294901760, %v2431_v52  ;;  %v2444_v8 = vand.u32 4294901760, %v2443_v63  ;;  %v7735_v16 = vand.u32 4294901760, %v5119_v47  ;;  %v7736_v26 = vand.u32 4294901760, %v5124_v28 }
 0x2c4   :  { %v2438_v61 = vand.u32 4294901760, %v2437_v30  ;;  %v1142_v20 = vand.u32 4294901760, %v1141_v17  ;;  %v1154_v19 = vand.u32 4294901760, %v1153_v15  ;;  %v7737_v42 = vand.u32 4294901760, %v5129_v11 }
 0x2c5   :  { %v1159_v1 = vsub.f32 %v5119_v47, %v7735_v16  ;;  %v2449_v45 = vsub.f32 %v5124_v28, %v7736_v26  ;;  %v7738_v44 = vand.u32 4294901760, %v5134_v31  ;;  %v7739_v52 = vand.u32 4294901760, %v5139_v38 }
 0x2c6   :  { %v2461_v53 = vsub.f32 %v5129_v11, %v7737_v42  ;;  %v7740_v16 = vand.u32 4294901760, %v5144_v56  ;;  %v7741_v26 = vand.u32 4294901760, %v5149_v33  ;;  %v1148_v47 = vand.u32 4294901760, %v1147_v25 }
 0x2c7   :  { %v2455_v30 = vsub.f32 %v5134_v31, %v7738_v44  ;;  %v2467_v63 = vsub.f32 %v5139_v38, %v7739_v52  ;;  %v7199_v44 = vand.u32 4294901760, %v5170_v40  ;;  %v1160_v31 = vand.u32 4294901760, %v1159_v1 }
 0x2c8   :  { %v1165_v3 = vsub.f32 %v5144_v56, %v7740_v16  ;;  %v1177_v17 = vsub.f32 %v5149_v33, %v7741_v26  ;;  %v2450_v11 = vand.u32 4294901760, %v2449_v45  ;;  %v561_v16 = vpop.permute.xlu1 %560  ;;  %v565_v56 = vpop.permute.xlu0 %564  ;;  %v2462_v28 = vand.u32 4294901760, %v2461_v53 }
 0x2c9   :  { %v2456_v54 = vand.u32 4294901760, %v2455_v30  ;;  %v2468_v15 = vand.u32 4294901760, %v2467_v63  ;;  %v7742_v58 = vand.u32 4294901760, %v5155_v4  ;;  %v5774_v45 = vpack.c.bf16 %v2438_v61, %v2426_v50 }
 0x2ca   :  { %v1166_v42 = vand.u32 4294901760, %v1165_v3  ;;  %v1178_v33 = vand.u32 4294901760, %v1177_v17  ;;  %v7743_v38 = vand.u32 4294901760, %v5160_v41  ;;  %v7744_v53 = vand.u32 4294901760, %v5165_v46 }
 0x2cb   :  { %v5772_v1 = vsub.f32 %v5155_v4, %v7742_v58  ;;  %v5789_v3 = vsub.f32 %v5170_v40, %v7199_v44  ;;  %v5791_v63 = vpack.c.bf16 %v2444_v8, %v2432_v39  ;;  %v7745_v58 = vand.u32 4294901760, %v5189_v37  ;;  %v4326_v4 = vld [vmem:[#allocation2 + $0x18] sm:$0xff] }
 0x2cc   :  { %v5779_v52 = vsub.f32 %v5160_v41, %v7743_v38  ;;  %v5784_v30 = vsub.f32 %v5165_v46, %v7744_v53  ;;  %v7746_v38 = vand.u32 4294901760, %v5194_v10  ;;  %v576_v53 = vpop.permute.xlu1 %575  ;;  %v584_v25 = vpop.permute.xlu0 %583  ;;  %v5804_v26 = vpack.c.bf16 %v1154_v19, %v1142_v20 }
 0x2cd   :  { %v5796_v61 = vsub.f32 %v5189_v37, %v7745_v58  ;;  %v5806_v44 = vpack.c.bf16 %v1160_v31, %v1148_v47  ;;  %v7747_v39 = vand.u32 4294901760, %v5199_v2  ;;  %v7749_v58 = vand.u32 4294901760, %v5204_v59  ;;  %v4321_v31 = vld [vmem:[#allocation2 + $0x40] sm:$0xff] }
 0x2ce   :  { %v5801_v50 = vsub.f32 %v5194_v10, %v7746_v38  ;;  %v5818_v38 = vpack.c.bf16 %v2462_v28, %v2450_v11  ;;  %v5820_v10 = vpack.c.bf16 %v2468_v15, %v2456_v54  ;;  %v5822_v17 = vpack.c.bf16 %v1178_v33, %v1166_v42  ;;  %v4319_v33 = vld [vmem:[#allocation2] sm:$0xff]  ;;  %v4320_v42 = vld [vmem:[#allocation2 + $0x8] sm:$0xff]  ;;  %v4324_v11 = vld [vmem:[#allocation2 + $0x58] sm:$0xff] }
 0x2cf   :  { %v5811_v8 = vsub.f32 %v5199_v2, %v7747_v39  ;;  %v5816_v37 = vsub.f32 %v5204_v59, %v7749_v58  ;;  %v7753_v28 = vand.u32 4294901760, %v5209_v5  ;;  %v5837_v15 = vmul.f32 %v4319_v33, %v561_v16  ;;  %v4322_v39 = vld [vmem:[#allocation2 + $0x48] sm:$0xff]  ;;  %v4327_v2 = vld [vmem:[#allocation2 + $0x60] sm:$0xff] }
 0x2d0   :  { %7751 = vst [vmem:[#allocation221_spill] sm:$0xff] %v5820_v10  ;;  %7752 = vst [vmem:[#allocation222_spill] sm:$0xff] %v5822_v17  ;;  %v5839_v47 = vmul.f32 %v4320_v42, %v561_v16  ;;  %v580_v19 = vpop.permute.xlu1 %579  ;;  %v5843_v58 = vmul.f32 %v4321_v31, %v576_v53  ;;  %v5845_v59 = vmul.f32 %v4322_v39, %v576_v53  ;;  %v588_v41 = vpop.permute.xlu0 %587  ;;  %v4325_v16 = vld [vmem:[#allocation2 + $0x10] sm:$0xff]  ;;  %v4328_v31 = vld [vmem:[#allocation2 + $0x68] sm:$0xff] }
 0x2d1   :  { %7748 = vst [vmem:[#allocation219_spill] sm:$0xff] %v5811_v8  ;;  %7750 = vst [vmem:[#allocation220_spill] sm:$0xff] %v5816_v37  ;;  %v5834_v54 = vsub.f32 %v5209_v5, %v7753_v28  ;;  %v4323_v28 = vld [vmem:[#allocation2 + $0x50] sm:$0xff]  ;;  %v5849_v33 = vmul.f32 %v4324_v11, %v580_v19  ;;  %v5851_v42 = vmul.f32 %v4325_v16, %v565_v56  ;;  %v4331_v16 = vld [vmem:[#allocation2 + $0x20] sm:$0xff] }
 0x2d2   :  { %7755 = vst [vmem:[#allocation224_spill] sm:$0xff] %v5837_v15  ;;  %7756 = vst [vmem:[#allocation225_spill] sm:$0xff] %v5839_v47  ;;  %v5847_v5 = vmul.f32 %v4323_v28, %v580_v19  ;;  %v5853_v20 = vmul.f32 %v4326_v4, %v565_v56  ;;  %v5855_v40 = vmul.f32 %v4327_v2, %v584_v25  ;;  %v4329_v56 = vld [vmem:[#allocation2 + $0x70] sm:$0xff]  ;;  %v4330_v2 = vld [vmem:[#allocation2 + $0x78] sm:$0xff] }
 0x2d3   :  { %7754 = vst [vmem:[#allocation223_spill] sm:$0xff] %v5834_v54  ;;  %7757 = vst [vmem:[#allocation226_spill] sm:$0xff] %v5843_v58  ;;  %v5857_v46 = vmul.f32 %v4328_v31, %v584_v25  ;;  %v632_v19 = vadd.f32 %v5849_v33, %v5845_v59  ;;  %v672_v11 = vmax.f32 %v5845_v59, %v5849_v33  ;;  %v7767_v31 = vand.u32 4294901760, %v5214_v35  ;;  %v7774_v37 = vld [vmem:[#allocation161_spill] sm:$0xff]  ;;  %v7775_v8 = vld [vmem:[#allocation162_spill] sm:$0xff] }
 0x2d4   :  { %7758 = vst [vmem:[#allocation227_spill] sm:$0xff] %v5845_v59  ;;  %7759 = vst [vmem:[#allocation228_spill] sm:$0xff] %v5847_v5  ;;  %v623_v53 = vadd.f32 %v5847_v5, %v5843_v58  ;;  %v663_v39 = vmax.f32 %v5843_v58, %v5847_v5  ;;  %v5867_v4 = vmul.f32 %v4329_v56, %v588_v41  ;;  %v569_v25 = vpop.permute.xlu1 %568  ;;  %v4332_v58 = vld [vmem:[#allocation2 + $0x28] sm:$0xff] }
 0x2d5   :  { %7760 = vst [vmem:[#allocation229_spill] sm:$0xff] %v5849_v33  ;;  %7761 = vst [vmem:[#allocation230_spill] sm:$0xff] %v5851_v42  ;;  %v5869_v28 = vmul.f32 %v4330_v2, %v588_v41  ;;  %v5875_v29 = vsub.f32 %v5214_v35, %v7767_v31  ;;  %v633_v5 = vadd.f32 %v632_v19, %v5857_v46 }
 0x2d6   :  { %7762 = vst [vmem:[#allocation231_spill] sm:$0xff] %v5853_v20  ;;  %7763 = vst [vmem:[#allocation232_spill] sm:$0xff] %v5855_v40  ;;  %v624_v13 = vadd.f32 %v623_v53, %v5855_v40  ;;  %v664_v33 = vmax.f32 %v663_v39, %v5855_v40  ;;  %v673_v56 = vmax.f32 %v672_v11, %v5857_v46 }
 0x2d7   :  { %7764 = vst [vmem:[#allocation233_spill] sm:$0xff] %v5857_v46  ;;  %7765 = vst [vmem:[#allocation234_spill] sm:$0xff] %v5867_v4  ;;  %v605_v41 = vadd.f32 %v5851_v42, %v5837_v15  ;;  %v614_v2 = vadd.f32 %v5853_v20, %v5839_v47  ;;  %v5885_v59 = vmul.f32 %v4331_v16, %v569_v25 }
 0x2d8   :  { %7766 = vst [vmem:[#allocation235_spill] sm:$0xff] %v5869_v28  ;;  %v5887_v31 = vmul.f32 %v4332_v58, %v569_v25  ;;  %v625_v53 = vadd.f32 %v624_v13, %v5867_v4  ;;  %v634_v19 = vadd.f32 %v633_v5, %v5869_v28  ;;  %v665_v39 = vmax.f32 %v664_v33, %v5867_v4  ;;  %v573_v58 = vpop.permute.xlu1 %572  ;;  %v4334_v4 = vld [vmem:[#allocation2 + $0x38] sm:$0xff] }
 0x2d9   :  { %7768 = vst [vmem:[#allocation236_spill] sm:$0xff] %v5885_v59  ;;  %v674_v11 = vmax.f32 %v673_v56, %v5869_v28  ;;  %v645_v46 = vmax.f32 %v5837_v15, %v5851_v42  ;;  %v654_v40 = vmax.f32 %v5839_v47, %v5853_v20  ;;  %v606_v16 = vadd.f32 %v605_v41, %v5885_v59  ;;  %v4333_v56 = vld [vmem:[#allocation2 + $0x30] sm:$0xff] }
 0x2da   :  { %7769 = vst [vmem:[#allocation237_spill] sm:$0xff] %v5887_v31  ;;  %v615_v35 = vadd.f32 %v614_v2, %v5887_v31  ;;  %v626_v25 = vrot.slane %v625_v53, 4  ;;  %v635_v24 = vrot.slane %v634_v19, 4  ;;  %v666_v13 = vrot.slane %v665_v39, 4 }
 0x2db   :  { %v675_v48 = vrot.slane %v674_v11, 4  ;;  %v646_v5 = vmax.f32 %v645_v46, %v5885_v59  ;;  %v655_v33 = vmax.f32 %v654_v40, %v5887_v31  ;;  %v5901_v28 = vmul.f32 %v4333_v56, %v573_v58 }
 0x2dc   :  { %v5903_v42 = vmul.f32 %v4334_v4, %v573_v58  ;;  %v627_v20 = vadd.f32 %v626_v25, %v625_v53  ;;  %v636_v47 = vadd.f32 %v635_v24, %v634_v19  ;;  %v667_v41 = vmax.f32 %v665_v39, %v666_v13 }
 0x2dd   :  { %7770 = vst [vmem:[#allocation238_spill] sm:$0xff] %v5901_v28  ;;  %v676_v15 = vmax.f32 %v674_v11, %v675_v48  ;;  %v607_v2 = vadd.f32 %v606_v16, %v5901_v28  ;;  %v647_v14 = vmax.f32 %v646_v5, %v5901_v28 }
 0x2de   :  { %7771 = vst [vmem:[#allocation239_spill] sm:$0xff] %v5903_v42  ;;  %v616_v36 = vadd.f32 %v615_v35, %v5903_v42  ;;  %v656_v46 = vmax.f32 %v655_v33, %v5903_v42  ;;  %v628_v59 = vrot.slane %v627_v20, 2  ;;  %v637_v40 = vrot.slane %v636_v47, 2 }
 0x2df   :  { %v668_v31 = vrot.slane %v667_v41, 2  ;;  %v677_v56 = vrot.slane %v676_v15, 2  ;;  %v608_v9 = vrot.slane %v607_v2, 4  ;;  %v648_v4 = vrot.slane %v647_v14, 4 }
 0x2e0   :  { %v617_v55 = vrot.slane %v616_v36, 4  ;;  %v657_v58 = vrot.slane %v656_v46, 4  ;;  %v629_v53 = vadd.f32 %v628_v59, %v627_v20  ;;  %v638_v24 = vadd.f32 %v637_v40, %v636_v47 }
 0x2e1   :  { %v669_v19 = vmax.f32 %v667_v41, %v668_v31  ;;  %v678_v48 = vmax.f32 %v676_v15, %v677_v56  ;;  %v609_v39 = vadd.f32 %v608_v9, %v607_v2  ;;  %v649_v16 = vmax.f32 %v647_v14, %v648_v4  ;;  %v7772_v41 = vld [vmem:[#allocation150_spill] sm:$0xff] }
 0x2e2   :  { %v618_v11 = vadd.f32 %v617_v55, %v616_v36  ;;  %v658_v35 = vmax.f32 %v656_v46, %v657_v58  ;;  %v630_v25 = vrot.slane %v629_v53, 1  ;;  %v639_v13 = vrot.slane %v638_v24, 1 }
 0x2e3   :  { %v670_v5 = vrot.slane %v669_v19, 1  ;;  %v679_v33 = vrot.slane %v678_v48, 1  ;;  %v610_v42 = vrot.slane %v609_v39, 2  ;;  %v650_v10 = vrot.slane %v649_v16, 2 }
 0x2e4   :  { %v619_v28 = vrot.slane %v618_v11, 2  ;;  %v659_v54 = vrot.slane %v658_v35, 2  ;;  %v631_v17 = vadd.f32 %v630_v25, %v629_v53  ;;  %v640_v31 = vadd.f32 %v639_v13, %v638_v24  ;;  %v7773_v53 = vld [vmem:[#allocation160_spill] sm:$0xff] }
 0x2e5   :  { %v611_v20 = vadd.f32 %v610_v42, %v609_v39  ;;  %v651_v55 = vmax.f32 %v649_v16, %v650_v10  ;;  %v671_v36 = vmax.f32 %v669_v19, %v670_v5  ;;  %v680_v15 = vmax.f32 %v678_v48, %v679_v33  ;;  %v7778_v33 = vld [vmem:[#allocation151_spill] sm:$0xff] }
 0x2e6   :  { %v620_v9 = vadd.f32 %v619_v28, %v618_v11  ;;  %v660_v14 = vmax.f32 %v658_v35, %v659_v54  ;;  %v643_v58 = vmul.f32 0.03125, %v631_v17  ;;  %v7250_v25 = vand.u32 4294901760, %v7773_v53 }
 0x2e7   :  { %v612_v46 = vrot.slane %v611_v20, 1  ;;  %v652_v56 = vrot.slane %v651_v55, 1  ;;  %v7249_v59 = vand.u32 4294901760, %v7774_v37  ;;  %v7253_v47 = vand.u32 4294901760, %v7775_v8 }
 0x2e8   :  { %v621_v40 = vrot.slane %v620_v9, 1  ;;  %v661_v4 = vrot.slane %v660_v14, 1  ;;  %v644_v19 = vmul.f32 0.03125, %v640_v31  ;;  %v1243_v24 = vsub.f32 %v7773_v53, %v7250_v25 }
 0x2e9   :  { %v613_v42 = vadd.f32 %v612_v46, %v611_v20  ;;  %v653_v28 = vmax.f32 %v651_v55, %v652_v56  ;;  %v1255_v48 = vsub.f32 %v7774_v37, %v7249_v59  ;;  %v2545_v17 = vsub.f32 %v7775_v8, %v7253_v47 }
 0x2ea   :  { %v662_v10 = vmax.f32 %v660_v14, %v661_v4  ;;  %v622_v54 = vadd.f32 %v621_v40, %v620_v9  ;;  %v1244_v9 = vand.u32 4294901760, %v1243_v24 }
 0x2eb   :  { %v641_v39 = vmul.f32 0.03125, %v613_v42  ;;  %v693_v16 = vsel %vm331_vm3, %v671_v36, %v653_v28  ;;  %v1256_v31 = vand.u32 4294901760, %v1255_v48  ;;  %v2546_v46 = vand.u32 4294901760, %v2545_v17  ;;  %v7784_v42 = vld [vmem:[#allocation163_spill] sm:$0xff] }
 0x2ec   :  { %v694_v11 = vsel %vm331_vm3, %v680_v15, %v662_v10  ;;  %v642_v35 = vmul.f32 0.03125, %v622_v54  ;;  %v5929_v5 = vand.u32 4294901760, %v693_v16  ;;  %v7251_v28 = vand.u32 4294901760, %v7784_v42  ;;  %v7785_v10 = vld [vmem:[#allocation164_spill] sm:$0xff] }
 0x2ed   :  { %v5927_v13 = vand.u32 4294901760, %v694_v11  ;;  %v685_v14 = vsel %vm331_vm3, %v643_v58, %v641_v39  ;;  %v5944_v4 = vpack.c.bf16 %v1256_v31, %v1244_v9  ;;  %v7252_v54 = vand.u32 4294901760, %v7785_v10  ;;  %v7789_v9 = vld [vmem:[#allocation166_spill] sm:$0xff] }
 0x2ee   :  { %7777 = vst [vmem:[#allocation161_spill] sm:$0xff] %v5929_v5  ;;  %v686_v55 = vsel %vm331_vm3, %v644_v19, %v642_v35  ;;  %v5938_v15 = vsub.f32 %v693_v16, %v5929_v5  ;;  %v5942_v56 = vand.u32 4294901760, %v685_v14  ;;  %v7786_v19 = vld [vmem:[#allocation165_spill] sm:$0xff]  ;;  %v7263_v31 = vand.u32 4294901760, %v7789_v9 }
 0x2ef   :  { %7776 = vst [vmem:[#allocation160_spill] sm:$0xff] %v5927_v13  ;;  %v5935_v40 = vsub.f32 %v694_v11, %v5927_v13  ;;  %v5940_v36 = vand.u32 4294901760, %v686_v55  ;;  %7783 = vst [vmem:[#allocation243_spill] sm:$0xff] %v5944_v4  ;;  %v7254_v58 = vand.u32 4294901760, %v7786_v19  ;;  %v2557_v11 = vsub.f32 %v7784_v42, %v7251_v28  ;;  %v7794_v5 = vld [vmem:[#allocation169_spill] sm:$0xff] }
 0x2f0   :  { %7780 = vst [vmem:[#allocation240_spill] sm:$0xff] %v5938_v15  ;;  %7782 = vst [vmem:[#allocation242_spill] sm:$0xff] %v5942_v56  ;;  %v7256_v48 = vand.u32 4294901760, %v5938_v15  ;;  %v5955_v39 = vsub.f32 %v685_v14, %v5942_v56  ;;  %v2551_v16 = vsub.f32 %v7785_v10, %v7252_v54  ;;  %v7274_v4 = vand.u32 4294901760, %v7794_v5 }
 0x2f1   :  { %7779 = vst [vmem:[#allocation162_spill] sm:$0xff] %v5935_v40  ;;  %7781 = vst [vmem:[#allocation241_spill] sm:$0xff] %v5940_v36  ;;  %v7255_v24 = vand.u32 4294901760, %v5935_v40  ;;  %v5952_v17 = vsub.f32 %v686_v55, %v5940_v36  ;;  %v2563_v35 = vsub.f32 %v7786_v19, %v7254_v58  ;;  %v2558_v28 = vand.u32 4294901760, %v2557_v11 }
 0x2f2   :  { %7788 = vst [vmem:[#allocation164_spill] sm:$0xff] %v5955_v39  ;;  %v2246_v14 = vsub.f32 %v5938_v15, %v7256_v48  ;;  %v7267_v25 = vand.u32 4294901760, %v5955_v39  ;;  %v2552_v54 = vand.u32 4294901760, %v2551_v16  ;;  %v1261_v58 = vsub.f32 %v7789_v9, %v7263_v31  ;;  %v7792_v16 = vld [vmem:[#allocation167_spill] sm:$0xff] }
 0x2f3   :  { %7787 = vst [vmem:[#allocation163_spill] sm:$0xff] %v5952_v17  ;;  %v2240_v55 = vsub.f32 %v5935_v40, %v7255_v24  ;;  %v7266_v59 = vand.u32 4294901760, %v5952_v17  ;;  %v2564_v47 = vand.u32 4294901760, %v2563_v35  ;;  %v5984_v15 = vpack.c.bf16 %v2558_v28, %v2546_v46  ;;  %v7796_v28 = vld [vmem:[#allocation172_spill] sm:$0xff] }
 0x2f4   :  { %v2247_v2 = vand.u32 4294901760, %v2246_v14  ;;  %v962_v48 = vsub.f32 %v5955_v39, %v7267_v25  ;;  %v1262_v11 = vand.u32 4294901760, %v1261_v58  ;;  %v7270_v35 = vand.u32 4294901760, %v7792_v16  ;;  %v7795_v25 = vld [vmem:[#allocation171_spill] sm:$0xff]  ;;  %v7798_v39 = vld [vmem:[#allocation206_spill] sm:$0xff] }
 0x2f5   :  { %v2241_v20 = vand.u32 4294901760, %v2240_v55  ;;  %v956_v24 = vsub.f32 %v5952_v17, %v7266_v59  ;;  %7790 = vst [vmem:[#allocation165_spill] sm:$0xff] %v5984_v15  ;;  %v5986_v56 = vpack.c.bf16 %v2564_v47, %v2552_v54  ;;  %v7793_v55 = vld [vmem:[#allocation168_spill] sm:$0xff]  ;;  %v7275_v46 = vand.u32 4294901760, %v7795_v25  ;;  %v7797_v54 = vld [vmem:[#allocation174_spill] sm:$0xff] }
 0x2f6   :  { %v963_v31 = vand.u32 4294901760, %v962_v48  ;;  %v7273_v14 = vand.u32 4294901760, %v7793_v55  ;;  %v1273_v59 = vsub.f32 %v7792_v16, %v7270_v35  ;;  %v7279_v58 = vand.u32 4294901760, %v7797_v54  ;;  %v7800_v35 = vld [vmem:[#allocation176_spill] sm:$0xff] }
 0x2f7   :  { %7791 = vst [vmem:[#allocation166_spill] sm:$0xff] %v5986_v56  ;;  %2242 = vmatprep.mubr.f32.mxu0 %v2241_v20  ;;  %v957_v40 = vand.u32 4294901760, %v956_v24  ;;  %v7799_v24 = vld [vmem:[#allocation175_spill] sm:$0xff]  ;;  %v7805_v15 = vld [vmem:[#allocation208_spill] sm:$0xff] }
 0x2f8   :  { %2248 = vmatmul.mubr.f32.vlgmr.msra.gmra.mrb[0].mxu0 %v2247_v2  ;;  %v1267_v20 = vsub.f32 %v7793_v55, %v7273_v14  ;;  %v1279_v2 = vsub.f32 %v7794_v5, %v7274_v4  ;;  %v1274_v47 = vand.u32 4294901760, %v1273_v59  ;;  %v2575_v4 = vsub.f32 %v7797_v54, %v7279_v58  ;;  %v7802_v56 = vld [vmem:[#allocation207_spill] sm:$0xff] }
 0x2f9   :  { %3955 = vmatpush1.bf16.msra.mxu0 %v7798_v39  ;;  %958 = vmatprep.mubr.f32.mxu1 %v957_v40  ;;  %v2569_v40 = vsub.f32 %v7795_v25, %v7275_v46  ;;  %v7801_v39 = vand.u32 4294901760, %v7796_v28  ;;  %v7803_v59 = vand.u32 4294901760, %v7799_v24  ;;  %v7804_v46 = vand.u32 4294901760, %v7800_v35 }
 0x2fa   :  { %2639 = vmatprep.mubr.f32.mxu0 %v5927_v13  ;;  %964 = vmatmul.mubr.f32.vlgmr.msra.gmra.mrb[0].mxu1 %v963_v31  ;;  %v1268_v17 = vand.u32 4294901760, %v1267_v20  ;;  %v1280_v48 = vand.u32 4294901760, %v1279_v2  ;;  %v2576_v54 = vand.u32 4294901760, %v2575_v4 }
 0x2fb   :  { %v2581_v14 = vsub.f32 %v7796_v28, %v7801_v39  ;;  %3571 = vmatpush1.bf16.msra.mxu1 %v7802_v56  ;;  %1355 = vmatprep.mubr.f32.mxu1 %v5940_v36  ;;  %v2587_v31 = vsub.f32 %v7799_v24, %v7803_v59  ;;  %v1285_v13 = vsub.f32 %v7800_v35, %v7804_v46  ;;  %v7806_v39 = vld [vmem:[#allocation210_spill] sm:$0xff]  ;;  %v2570_v58 = vand.u32 4294901760, %v2569_v40  ;;  %v7808_v36 = vld [vmem:[#allocation209_spill] sm:$0xff] }
 0x2fc   :  { %3957 = vmatprep.subr.bf16.mxu0 %v7805_v15  ;;  %3573 = vmatprep.subr.bf16.mxu1 %v7806_v39  ;;  %v6026_v28 = vpack.c.bf16 %v1274_v47, %v1262_v11  ;;  %v6029_v20 = vpack.c.bf16 %v1280_v48, %v1268_v17  ;;  %v7810_v59 = vld [vmem:[#allocation178_spill] sm:$0xff]  ;;  %v7812_v15 = vld [vmem:[#allocation180_spill] sm:$0xff]  ;;  %v7813_v39 = vld [vmem:[#allocation181_spill] sm:$0xff] }
 0x2fd   :  { %v2582_v56 = vand.u32 4294901760, %v2581_v14  ;;  %3959 = vmatpush1.bf16.msra.mxu0 %v7808_v36  ;;  %v2588_v2 = vand.u32 4294901760, %v2587_v31  ;;  %v1286_v25 = vand.u32 4294901760, %v1285_v13  ;;  %v7287_v24 = vand.u32 4294901760, %v7810_v59  ;;  %v7814_v47 = vld [vmem:[#allocation182_spill] sm:$0xff]  ;;  %v7815_v14 = vld [vmem:[#allocation211_spill] sm:$0xff] }
 0x2fe   :  { %7807 = vst [vmem:[#allocation167_spill] sm:$0xff] %v6026_v28  ;;  %7809 = vst [vmem:[#allocation168_spill] sm:$0xff] %v6029_v20  ;;  %3961 = vmatprep.subr.bf16.mxu0 %v5594_v60  ;;  %v7286_v35 = vand.u32 4294901760, %v7812_v15  ;;  %v7288_v11 = vand.u32 4294901760, %v7813_v39  ;;  %v7289_v40 = vand.u32 4294901760, %v7814_v47  ;;  %v7817_v36 = vld [vmem:[#allocation184_spill] sm:$0xff] }
 0x2ff   :  { %v6033_v46 = vpack.c.bf16 %v2582_v56, %v2570_v58  ;;  %3575 = vmatpush1.bf16.msra.mxu1 %v7815_v14  ;;  %v6039_v4 = vpack.c.bf16 %v2588_v2, %v2576_v54  ;;  %v1297_v13 = vsub.f32 %v7810_v59, %v7287_v24  ;;  %v7290_v17 = vand.u32 4294901760, %v7817_v36  ;;  %v7818_v48 = vld [vmem:[#allocation185_spill] sm:$0xff]  ;;  %v7819_v56 = vld [vmem:[#allocation187_spill] sm:$0xff] }
 0x300   :  { %v7291_v60 = vand.u32 4294901760, %v7818_v48  ;;  %3577 = vmatprep.subr.bf16.mxu1 %v5600_v34  ;;  %v1291_v58 = vsub.f32 %v7812_v15, %v7286_v35  ;;  %v1303_v31 = vsub.f32 %v7813_v39, %v7288_v11  ;;  %v2593_v54 = vsub.f32 %v7814_v47, %v7289_v40  ;;  %v7820_v24 = vld [vmem:[#allocation189_spill] sm:$0xff] }
 0x301   :  { %7811 = vst [vmem:[#allocation169_spill] sm:$0xff] %v6033_v46  ;;  %7816 = vst [vmem:[#allocation206_spill] sm:$0xff] %v6039_v4  ;;  %v7295_v2 = vand.u32 4294901760, %v7819_v56  ;;  %3963 = vmatpush1.bf16.msra.mxu0 %v5596_v27  ;;  %v1298_v14 = vand.u32 4294901760, %v1297_v13  ;;  %v2605_v34 = vsub.f32 %v7817_v36, %v7290_v17  ;;  %v7297_v4 = vand.u32 4294901760, %v7820_v24  ;;  %v7821_v13 = vld [vmem:[#allocation212_spill] sm:$0xff] }
 0x302   :  { %v2599_v35 = vsub.f32 %v7818_v48, %v7291_v60  ;;  %3965 = vmatprep.subr.bf16.mxu0 %v5604_v12  ;;  %v1292_v11 = vand.u32 4294901760, %v1291_v58  ;;  %v1304_v20 = vand.u32 4294901760, %v1303_v31  ;;  %v2594_v40 = vand.u32 4294901760, %v2593_v54  ;;  %v7823_v48 = vld [vmem:[#allocation214_spill] sm:$0xff]  ;;  %v7826_v36 = vld [vmem:[#allocation192_spill] sm:$0xff] }
 0x303   :  { %v2611_v27 = vsub.f32 %v7819_v56, %v7295_v2  ;;  %3579 = vmatpush1.bf16.msra.mxu1 %v7821_v13  ;;  %v6070_v46 = vpack.c.bf16 %v1298_v14, %v1286_v25  ;;  %v2606_v17 = vand.u32 4294901760, %v2605_v34  ;;  %v1309_v60 = vsub.f32 %v7820_v24, %v7297_v4  ;;  %v7825_v31 = vld [vmem:[#allocation190_spill] sm:$0xff]  ;;  %v7827_v2 = vld [vmem:[#allocation213_spill] sm:$0xff]  ;;  %v7830_v34 = vld [vmem:[#allocation195_spill] sm:$0xff] }
 0x304   :  { %v2600_v28 = vand.u32 4294901760, %v2599_v35  ;;  %3581 = vmatprep.subr.bf16.mxu1 %v7823_v48  ;;  %v6076_v12 = vpack.c.bf16 %v1304_v20, %v1292_v11  ;;  %v7298_v54 = vand.u32 4294901760, %v7825_v31  ;;  %v7299_v47 = vand.u32 4294901760, %v7826_v36  ;;  %v7829_v14 = vld [vmem:[#allocation193_spill] sm:$0xff]  ;;  %v7831_v56 = vld [vmem:[#allocation216_spill] sm:$0xff] }
 0x305   :  { %7822 = vst [vmem:[#allocation207_spill] sm:$0xff] %v6070_v46  ;;  %v2612_v58 = vand.u32 4294901760, %v2611_v27  ;;  %3967 = vmatpush1.bf16.msra.mxu0 %v7827_v2  ;;  %v6081_v13 = vpack.c.bf16 %v2606_v17, %v2594_v40  ;;  %v1310_v25 = vand.u32 4294901760, %v1309_v60  ;;  %v7301_v35 = vand.u32 4294901760, %v7829_v14  ;;  %v7833_v48 = vld [vmem:[#allocation196_spill] sm:$0xff]  ;;  %v7834_v17 = vld [vmem:[#allocation215_spill] sm:$0xff] }
 0x306   :  { %7824 = vst [vmem:[#allocation208_spill] sm:$0xff] %v6076_v12  ;;  %v7303_v46 = vand.u32 4294901760, %v7830_v34  ;;  %3969 = vmatprep.subr.bf16.mxu0 %v7831_v56  ;;  %v1321_v20 = vsub.f32 %v7825_v31, %v7298_v54  ;;  %v1315_v11 = vsub.f32 %v7826_v36, %v7299_v47  ;;  %v7304_v40 = vand.u32 4294901760, %v7833_v48  ;;  %v7835_v56 = vld [vmem:[#allocation198_spill] sm:$0xff]  ;;  %v7836_v27 = vld [vmem:[#allocation199_spill] sm:$0xff]  ;;  %v7838_v12 = vld [vmem:[#allocation201_spill] sm:$0xff] }
 0x307   :  { %7828 = vst [vmem:[#allocation210_spill] sm:$0xff] %v6081_v13  ;;  %v6086_v4 = vpack.c.bf16 %v2612_v58, %v2600_v28  ;;  %3583 = vmatpush1.bf16.msra.mxu1 %v7834_v17  ;;  %v1327_v60 = vsub.f32 %v7829_v14, %v7301_v35  ;;  %v7305_v2 = vand.u32 4294901760, %v7835_v56  ;;  %v7309_v58 = vand.u32 4294901760, %v7836_v27  ;;  %v7837_v54 = vld [vmem:[#allocation218_spill] sm:$0xff]  ;;  %v7839_v36 = vld [vmem:[#allocation217_spill] sm:$0xff] }
 0x308   :  { %v2617_v28 = vsub.f32 %v7830_v34, %v7303_v46  ;;  %3585 = vmatprep.subr.bf16.mxu1 %v7837_v54  ;;  %v1316_v47 = vand.u32 4294901760, %v1315_v11  ;;  %v2629_v17 = vsub.f32 %v7833_v48, %v7304_v40  ;;  %v7311_v13 = vand.u32 4294901760, %v7838_v12  ;;  %v7841_v48 = vld [vmem:[#allocation204_spill] sm:$0xff] }
 0x309   :  { %7832 = vst [vmem:[#allocation209_spill] sm:$0xff] %v6086_v4  ;;  %v1322_v4 = vand.u32 4294901760, %v1321_v20  ;;  %3971 = vmatpush1.bf16.msra.mxu0 %v7839_v36  ;;  %v1328_v35 = vand.u32 4294901760, %v1327_v60  ;;  %v2623_v46 = vsub.f32 %v7835_v56, %v7305_v2  ;;  %v2635_v54 = vsub.f32 %v7836_v27, %v7309_v58  ;;  %v7840_v36 = vld [vmem:[#allocation202_spill] sm:$0xff] }
 0x30a   :  { %v2618_v14 = vand.u32 4294901760, %v2617_v28  ;;  %3973 = vmatprep.subr.bf16.mxu0 %v5686_v7  ;;  %v2630_v11 = vand.u32 4294901760, %v2629_v17  ;;  %v1333_v40 = vsub.f32 %v7838_v12, %v7311_v13  ;;  %v7310_v60 = vand.u32 4294901760, %v7840_v36  ;;  %v7842_v17 = vld [vmem:[#allocation205_spill] sm:$0xff] }
 0x30b   :  { %v6117_v20 = vpack.c.bf16 %v1322_v4, %v1310_v25  ;;  %3587 = vmatpush1.bf16.msra.mxu1 %v5674_v43  ;;  %v6124_v28 = vpack.c.bf16 %v1328_v35, %v1316_v47  ;;  %v2624_v2 = vand.u32 4294901760, %v2623_v46  ;;  %v2636_v56 = vand.u32 4294901760, %v2635_v54  ;;  %v7843_v43 = vld [vmem:[#allocation154_spill] sm:$0xff]  ;;  %v7844_v35 = vld [vmem:[#allocation155_spill] sm:$0xff]  ;;  %v7850_v46 = vld [vmem:[#allocation153_spill] sm:$0xff] }
 0x30c   :  { %v7312_v34 = vand.u32 4294901760, %v7841_v48  ;;  %3589 = vmatprep.subr.bf16.mxu1 %v5695_v22  ;;  %v6128_v7 = vpack.c.bf16 %v2630_v11, %v2618_v14  ;;  %v1334_v4 = vand.u32 4294901760, %v1333_v40  ;;  %v1345_v25 = vsub.f32 %v7840_v36, %v7310_v60  ;;  %v7847_v11 = vld [vmem:[#allocation152_spill] sm:$0xff] }
 0x30d   :  { %v7313_v58 = vand.u32 4294901760, %v7842_v17  ;;  %3975 = vmatpush1.bf16.msra.mxu0 %v5693_v0  ;;  %v6137_v54 = vpack.c.bf16 %v2636_v56, %v2624_v2  ;;  %v7846_v14 = vand.u32 4294901760, %v5219_v21  ;;  %v7848_v56 = vand.u32 4294901760, %v5224_v6 }
 0x30e   :  { %v1339_v22 = vsub.f32 %v7841_v48, %v7312_v34  ;;  %3977 = vmatprep.subr.bf16.mxu0 %v5701_v57  ;;  %v1346_v13 = vand.u32 4294901760, %v1345_v25  ;;  %v7849_v34 = vand.u32 4294901760, %v5230_v62  ;;  %v7851_v25 = vand.u32 4294901760, %v5235_v32 }
 0x30f   :  { %7845 = vst [vmem:[#allocation178_spill] sm:$0xff] %v6137_v54  ;;  %v2497_v40 = vsub.f32 %v5219_v21, %v7846_v14  ;;  %v1351_v0 = vsub.f32 %v7842_v17, %v7313_v58  ;;  %3591 = vmatpush1.bf16.msra.mxu1 %v5699_v23  ;;  %v2509_v2 = vsub.f32 %v5224_v6, %v7848_v56  ;;  %v7852_v58 = vand.u32 4294901760, %v7772_v41 }
 0x310   :  { %v2503_v57 = vsub.f32 %v5230_v62, %v7849_v34  ;;  %v1340_v14 = vand.u32 4294901760, %v1339_v22  ;;  %3593 = vmatprep.subr.bf16.mxu1 %v5730_v49  ;;  %v2515_v60 = vsub.f32 %v5235_v32, %v7851_v25  ;;  %v6165_v21 = vpack.c.bf16 %v1346_v13, %v1334_v4  ;;  %v7856_v32 = vld [vmem:[#allocation156_spill] sm:$0xff]  ;;  %v7857_v13 = vld [vmem:[#allocation157_spill] sm:$0xff]  ;;  %v7858_v4 = vld [vmem:[#allocation158_spill] sm:$0xff] }
 0x311   :  { %v1213_v23 = vsub.f32 %v7772_v41, %v7852_v58  ;;  %v1352_v56 = vand.u32 4294901760, %v1351_v0  ;;  %3979 = vmatpush1.bf16.msra.mxu0 %v5705_v18  ;;  %v7853_v34 = vand.u32 4294901760, %v7778_v33  ;;  %v7854_v22 = vand.u32 4294901760, %v7843_v43  ;;  %v7859_v0 = vld [vmem:[#allocation159_spill] sm:$0xff] }
 0x312   :  { %v7855_v62 = vand.u32 4294901760, %v7844_v35  ;;  %3981 = vmatprep.subr.bf16.mxu0 %v5774_v45  ;;  %v7327_v41 = vand.u32 4294901760, %v7859_v0  ;;  %v2504_v45 = vand.u32 4294901760, %v2503_v57  ;;  %v2516_v58 = vand.u32 4294901760, %v2515_v60 }
 0x313   :  { %v1225_v47 = vsub.f32 %v7778_v33, %v7853_v34  ;;  %v2521_v49 = vsub.f32 %v7843_v43, %v7854_v22  ;;  %v6182_v54 = vpack.c.bf16 %v1352_v56, %v1340_v14  ;;  %3595 = vmatpush1.bf16.msra.mxu1 %v5735_v51  ;;  %v1208_v34 = vand.u32 4294901760, %v5875_v29 }
 0x314   :  { %v2533_v25 = vsub.f32 %v7844_v35, %v7855_v62  ;;  %v2498_v22 = vand.u32 4294901760, %v2497_v40  ;;  %v2510_v43 = vand.u32 4294901760, %v2509_v2  ;;  %v7860_v62 = vand.u32 4294901760, %v7847_v11  ;;  %3597 = vmatprep.subr.bf16.mxu1 %v5804_v26 }
 0x315   :  { %v1214_v35 = vand.u32 4294901760, %v1213_v23  ;;  %v7861_v18 = vand.u32 4294901760, %v7850_v46  ;;  %3983 = vmatpush1.bf16.msra.mxu0 %v5791_v63  ;;  %v1226_v51 = vand.u32 4294901760, %v1225_v47  ;;  %v2522_v56 = vand.u32 4294901760, %v2521_v49 }
 0x316   :  { %v1219_v6 = vsub.f32 %v7847_v11, %v7860_v62  ;;  %v2534_v29 = vand.u32 4294901760, %v2533_v25  ;;  %v7862_v40 = vand.u32 4294901760, %v7856_v32  ;;  %3985 = vmatprep.subr.bf16.mxu0 %v5818_v38  ;;  %v7863_v26 = vand.u32 4294901760, %v5784_v30 }
 0x317   :  { %v1231_v14 = vsub.f32 %v7850_v46, %v7861_v18  ;;  %v7864_v60 = vand.u32 4294901760, %v5789_v3  ;;  %v7865_v23 = vand.u32 4294901760, %v7857_v13  ;;  %v7866_v63 = vand.u32 4294901760, %v7858_v4  ;;  %3599 = vmatpush1.bf16.msra.mxu1 %v5806_v44 }
 0x318   :  { %v2527_v2 = vsub.f32 %v7856_v32, %v7862_v40  ;;  %v1249_v49 = vsub.f32 %v7859_v0, %v7327_v41  ;;  %v7867_v38 = vand.u32 4294901760, %v5772_v1  ;;  %v7868_v30 = vand.u32 4294901760, %v5779_v52  ;;  %v7875_v32 = vld [vmem:[#allocation222_spill] sm:$0xff]  ;;  %v7876_v41 = vld [vmem:[#allocation223_spill] sm:$0xff]  ;;  %v7878_v52 = vld [vmem:[#allocation221_spill] sm:$0xff] }
 0x319   :  { %v3988_v57 = vpack.c.bf16 %v7864_v60, %v7863_v26  ;;  %v2539_v18 = vsub.f32 %v7857_v13, %v7865_v23  ;;  %v1237_v47 = vsub.f32 %v7858_v4, %v7866_v63  ;;  %v7869_v25 = vand.u32 4294901760, %v5796_v61  ;;  %v7871_v26 = vld [vmem:[#allocation219_spill] sm:$0xff]  ;;  %v7873_v23 = vld [vmem:[#allocation220_spill] sm:$0xff]  ;;  %3601 = vmatprep.subr.bf16.mxu1 %v7875_v32  ;;  %3987 = vmatpush1.bf16.msra.mxu0 %v7878_v52 }
 0x31a   :  { %v3602_v3 = vpack.c.bf16 %v7868_v30, %v7867_v38  ;;  %v7870_v62 = vand.u32 4294901760, %v5801_v50  ;;  %v7872_v60 = vand.u32 4294901760, %v7871_v26  ;;  %v7874_v63 = vand.u32 4294901760, %v7873_v23  ;;  %v7889_v23 = vld [vmem:[#allocation193_spill] sm:$0xff]  ;;  %v7890_v52 = vld [vmem:[#allocation195_spill] sm:$0xff] }
 0x31b   :  { %v7877_v0 = vand.u32 4294901760, %v7876_v41  ;;  %v3992_v4 = vpack.c.bf16 %v2510_v43, %v2498_v22  ;;  %v1220_v1 = vand.u32 4294901760, %v1219_v6  ;;  %v1232_v46 = vand.u32 4294901760, %v1231_v14  ;;  %3989 = vmatprep.subr.bf16.mxu0 %v3988_v57  ;;  %v7882_v22 = vld [vmem:[#allocation175_spill] sm:$0xff]  ;;  %v7883_v14 = vld [vmem:[#allocation176_spill] sm:$0xff]  ;;  %v7892_v43 = vld [vmem:[#allocation198_spill] sm:$0xff] }
 0x31c   :  { %v3990_v40 = vpack.c.bf16 %v7870_v62, %v7869_v25  ;;  %v3604_v13 = vpack.c.bf16 %v7874_v63, %v7872_v60  ;;  %v3994_v38 = vpack.c.bf16 %v2516_v58, %v2504_v45  ;;  %v3608_v61 = vpack.c.bf16 %v1226_v51, %v1214_v35  ;;  %3603 = vmatpush1.bf16.msra.mxu1 %v3602_v3  ;;  %v7879_v35 = vld [vmem:[#allocation171_spill] sm:$0xff]  ;;  %v7880_v58 = vld [vmem:[#allocation172_spill] sm:$0xff]  ;;  %v7897_v51 = vld [vmem:[#allocation169_spill] sm:$0xff] }
 0x31d   :  { %v3606_v44 = vpack.c.bf16 %v1208_v34, %v7877_v0  ;;  %v3996_v30 = vpack.c.bf16 %v2534_v29, %v2522_v56  ;;  %v2528_v50 = vand.u32 4294901760, %v2527_v2  ;;  %v2540_v25 = vand.u32 4294901760, %v2539_v18  ;;  %v7881_v34 = vld [vmem:[#allocation174_spill] sm:$0xff]  ;;  %v7885_v2 = vld [vmem:[#allocation184_spill] sm:$0xff]  ;;  %v7886_v18 = vld [vmem:[#allocation185_spill] sm:$0xff] }
 0x31e   :  { %v1238_v62 = vand.u32 4294901760, %v1237_v47  ;;  %v1250_v26 = vand.u32 4294901760, %v1249_v49  ;;  %3605 = vmatprep.subr.bf16.mxu1 %v3604_v13  ;;  %3991 = vmatpush1.bf16.msra.mxu0 %v3990_v40  ;;  %v7884_v29 = vld [vmem:[#allocation182_spill] sm:$0xff]  ;;  %v7887_v47 = vld [vmem:[#allocation187_spill] sm:$0xff]  ;;  %v7888_v3 = vld [vmem:[#allocation192_spill] sm:$0xff]  ;;  %v3610_v49 = vpack.c.bf16 %v1232_v46, %v1220_v1 }
 0x31f   :  { %3993 = vmatprep.subr.bf16.mxu0 %v3992_v4  ;;  %v7891_v45 = vld [vmem:[#allocation196_spill] sm:$0xff]  ;;  %v3998_v0 = vpack.c.bf16 %v2540_v25, %v2528_v50  ;;  %v7893_v4 = vld [vmem:[#allocation165_spill] sm:$0xff]  ;;  %v7894_v63 = vld [vmem:[#allocation243_spill] sm:$0xff] }
 0x320   :  { %3607 = vmatpush1.bf16.msra.mxu1 %v3606_v44  ;;  %v3612_v13 = vpack.c.bf16 %v1250_v26, %v1238_v62  ;;  %v7895_v56 = vld [vmem:[#allocation167_spill] sm:$0xff]  ;;  %v7896_v40 = vld [vmem:[#allocation166_spill] sm:$0xff]  ;;  %v7898_v44 = vld [vmem:[#allocation168_spill] sm:$0xff] }
 0x321   :  { %3609 = vmatprep.subr.bf16.mxu1 %v3608_v61  ;;  %v7899_v46 = vld [vmem:[#allocation207_spill] sm:$0xff]  ;;  %v7900_v1 = vld [vmem:[#allocation206_spill] sm:$0xff]  ;;  %v7902_v61 = vld [vmem:[#allocation208_spill] sm:$0xff] }
 0x322   :  { %3995 = vmatpush1.bf16.msra.mxu0 %v3994_v38  ;;  %v7901_v38 = vld [vmem:[#allocation210_spill] sm:$0xff]  ;;  %v7904_v50 = vld [vmem:[#allocation15_spill] sm:$0xff]  ;;  %v7905_v25 = vld [vmem:[#allocation16_spill] sm:$0xff] }
 0x323   :  { %3997 = vmatprep.subr.bf16.mxu0 %v3996_v30  ;;  %v7903_v30 = vld [vmem:[#allocation209_spill] sm:$0xff]  ;;  %v4016_v62 = vpack.c.bf16 %v7905_v25, %v7904_v50  ;;  %v7921_v57 = vld [vmem:[#allocation242_spill] sm:$0xff]  ;;  %v7922_v6 = vld [vmem:[#allocation39_spill] sm:$0xff] }
 0x324   :  { %3611 = vmatpush1.bf16.msra.mxu1 %v3610_v49  ;;  %v7906_v26 = vld [vmem:[#allocation21_spill] sm:$0xff]  ;;  %v7924_v60 = vld [vmem:[#allocation163_spill] sm:$0xff] }
 0x325   :  { %3613 = vmatprep.subr.bf16.mxu1 %v3612_v13  ;;  %v7909_v49 = vld [vmem:[#allocation17_spill] sm:$0xff]  ;;  %v7910_v13 = vld [vmem:[#allocation19_spill] sm:$0xff] }
 0x326   :  { %3999 = vmatpush1.bf16.msra.mxu0 %v3998_v0  ;;  %v7907_v0 = vld [vmem:[#allocation22_spill] sm:$0xff]  ;;  %v7925_v32 = vld [vmem:[#allocation35_spill] sm:$0xff] }
 0x327   :  { %4001 = vmatprep.subr.bf16.mxu0 %v7893_v4 }
 0x328   :  { %3615 = vmatpush1.bf16.msra.mxu1 %v7894_v63  ;;  %v4018_v63 = vpack.c.bf16 %v7910_v13, %v7909_v49 }
 0x329   :  { %3617 = vmatprep.subr.bf16.mxu1 %v7895_v56  ;;  %v7908_v56 = vld [vmem:[#allocation178_spill] sm:$0xff] }
 0x32a   :  { %4003 = vmatpush1.bf16.msra.mxu0 %v7896_v40  ;;  %v7912_v40 = vld [vmem:[#allocation28_spill] sm:$0xff] }
 0x32b   :  { %4005 = vmatprep.subr.bf16.mxu0 %v7897_v51  ;;  %v3632_v51 = vpack.c.bf16 %v7907_v0, %v7906_v26 }
 0x32c   :  { %3619 = vmatpush1.bf16.msra.mxu1 %v7898_v44  ;;  %v7914_v44 = vld [vmem:[#allocation25_spill] sm:$0xff] }
 0x32d   :  { %3621 = vmatprep.subr.bf16.mxu1 %v7899_v46 }
 0x32e   :  { %4007 = vmatpush1.bf16.msra.mxu0 %v7900_v1  ;;  %v7917_v1 = vld [vmem:[#allocation34_spill] sm:$0xff] }
 0x32f   :  { %4009 = vmatprep.subr.bf16.mxu0 %v7901_v38 }
 0x330   :  { %3623 = vmatpush1.bf16.msra.mxu1 %v7902_v61  ;;  %v7918_v61 = vld [vmem:[#allocation162_spill] sm:$0xff] }
 0x331   :  { %3625 = vmatprep.subr.bf16.mxu1 %v6117_v20  ;;  %v7911_v20 = vld [vmem:[#allocation26_spill] sm:$0xff] }
 0x332   :  { %4011 = vmatpush1.bf16.msra.mxu0 %v7903_v30  ;;  %v4020_v4 = vpack.c.bf16 %v7912_v40, %v7911_v20  ;;  %v7919_v30 = vld [vmem:[#allocation30_spill] sm:$0xff]  ;;  %v7935_v40 = vld [vmem:[#allocation57_spill] sm:$0xff] }
 0x333   :  { %4013 = vmatprep.subr.bf16.mxu0 %v6128_v7  ;;  %v7913_v7 = vld [vmem:[#allocation24_spill] sm:$0xff]  ;;  %v7936_v20 = vld [vmem:[#allocation58_spill] sm:$0xff] }
 0x334   :  { %3627 = vmatpush1.bf16.msra.mxu1 %v6124_v28  ;;  %v3634_v46 = vpack.c.bf16 %v7914_v44, %v7913_v7  ;;  %v7915_v28 = vld [vmem:[#allocation161_spill] sm:$0xff]  ;;  %v7929_v44 = vld [vmem:[#allocation42_spill] sm:$0xff]  ;;  %v7930_v7 = vld [vmem:[#allocation43_spill] sm:$0xff] }
 0x335   :  { %3629 = vmatprep.subr.bf16.mxu1 %v6165_v21  ;;  %v7916_v21 = vld [vmem:[#allocation32_spill] sm:$0xff] }
 0x336   :  { %4015 = vmatpush1.bf16.msra.mxu0 %v7908_v56  ;;  %v3636_v38 = vpack.c.bf16 %v7917_v1, %v7916_v21  ;;  %v7920_v56 = vld [vmem:[#allocation31_spill] sm:$0xff]  ;;  %v7927_v1 = vld [vmem:[#allocation45_spill] sm:$0xff] }
 0x337   :  { %4017 = vmatprep.subr.bf16.mxu0 %v4016_v62  ;;  %v4022_v62 = vpack.c.bf16 %v7920_v56, %v7919_v30  ;;  %v4026_v56 = vpack.c.bf16 %v7930_v7, %v7929_v44  ;;  %v7942_v44 = vld [vmem:[#allocation61_spill] sm:$0xff] }
 0x338   :  { %3631 = vmatpush1.bf16.msra.mxu1 %v6182_v54  ;;  %v7923_v54 = vld [vmem:[#allocation40_spill] sm:$0xff] }
 0x339   :  { %2641 = vmatmul.mubr.f32.vlgmr.msra.gmra.mrb[0].mxu0 %v7915_v28  ;;  %3633 = vmatprep.subr.bf16.mxu1 %v3632_v51  ;;  %v4024_v41 = vpack.c.bf16 %v7923_v54, %v7922_v6  ;;  %v7926_v51 = vld [vmem:[#allocation37_spill] sm:$0xff]  ;;  %v7933_v54 = vld [vmem:[#allocation48_spill] sm:$0xff] }
 0x33a   :  { %4019 = vmatpush1.bf16.msra.mxu0 %v4018_v63  ;;  %2841 = vmatprep.mubr.f32.mxu0 %v7918_v61  ;;  %v3638_v28 = vpack.c.bf16 %v7926_v51, %v7925_v32  ;;  %v7928_v63 = vld [vmem:[#allocation46_spill] sm:$0xff]  ;;  %v3644_v51 = vpack.c.bf16 %v7936_v20, %v7935_v40  ;;  %v7938_v32 = vld [vmem:[#allocation55_spill] sm:$0xff]  ;;  %v7948_v40 = vld [vmem:[#allocation76_spill] sm:$0xff] }
 0x33b   :  { %1357 = vmatmul.mubr.f32.vlgmr.msra.gmra.mrb[0].mxu1 %v7921_v57  ;;  %4021 = vmatprep.subr.bf16.mxu0 %v4020_v4  ;;  %v3640_v21 = vpack.c.bf16 %v7928_v63, %v7927_v1  ;;  %v7931_v57 = vld [vmem:[#allocation51_spill] sm:$0xff]  ;;  %v7932_v4 = vld [vmem:[#allocation52_spill] sm:$0xff] }
 0x33c   :  { %3635 = vmatpush1.bf16.msra.mxu1 %v3634_v46  ;;  %1557 = vmatprep.mubr.f32.mxu1 %v7924_v60  ;;  %v4028_v30 = vpack.c.bf16 %v7932_v4, %v7931_v57  ;;  %v7934_v46 = vld [vmem:[#allocation49_spill] sm:$0xff]  ;;  %v7940_v1 = vld [vmem:[#allocation64_spill] sm:$0xff]  ;;  %v7944_v57 = vld [vmem:[#allocation71_spill] sm:$0xff] }
 0x33d   :  { %3637 = vmatprep.subr.bf16.mxu1 %v3636_v38  ;;  %v3642_v6 = vpack.c.bf16 %v7934_v46, %v7933_v54  ;;  %v7937_v38 = vld [vmem:[#allocation54_spill] sm:$0xff]  ;;  %v7946_v54 = vld [vmem:[#allocation69_spill] sm:$0xff] }
 0x33e   :  { %4023 = vmatpush1.bf16.msra.mxu0 %v4022_v62  ;;  %v4030_v63 = vpack.c.bf16 %v7938_v32, %v7937_v38  ;;  %v7939_v62 = vld [vmem:[#allocation63_spill] sm:$0xff]  ;;  %v7950_v38 = vld [vmem:[#allocation73_spill] sm:$0xff] }
 0x33f   :  { %4025 = vmatprep.subr.bf16.mxu0 %v4024_v41  ;;  %v4032_v7 = vpack.c.bf16 %v7940_v1, %v7939_v62  ;;  %v7941_v41 = vld [vmem:[#allocation60_spill] sm:$0xff]  ;;  %v7952_v62 = vld [vmem:[#allocation82_spill] sm:$0xff] }
 0x340   :  { %3639 = vmatpush1.bf16.msra.mxu1 %v3638_v28  ;;  %v3646_v4 = vpack.c.bf16 %v7942_v44, %v7941_v41  ;;  %v7943_v28 = vld [vmem:[#allocation70_spill] sm:$0xff]  ;;  %v7954_v41 = vld [vmem:[#allocation79_spill] sm:$0xff] }
 0x341   :  { %3641 = vmatprep.subr.bf16.mxu1 %v3640_v21  ;;  %v3648_v46 = vpack.c.bf16 %v7944_v57, %v7943_v28  ;;  %v7945_v21 = vld [vmem:[#allocation68_spill] sm:$0xff] }
 0x342   :  { %4027 = vmatpush1.bf16.msra.mxu0 %v4026_v56  ;;  %v4034_v20 = vpack.c.bf16 %v7946_v54, %v7945_v21  ;;  %v7947_v56 = vld [vmem:[#allocation75_spill] sm:$0xff]  ;;  %v7956_v28 = vld [vmem:[#allocation88_spill] sm:$0xff]  ;;  %v7958_v21 = vld [vmem:[#allocation85_spill] sm:$0xff] }
 0x343   :  { %4029 = vmatprep.subr.bf16.mxu0 %v4028_v30  ;;  %v4036_v32 = vpack.c.bf16 %v7948_v40, %v7947_v56  ;;  %v7949_v30 = vld [vmem:[#allocation72_spill] sm:$0xff]  ;;  %v7960_v56 = vld [vmem:[#allocation94_spill] sm:$0xff] }
 0x344   :  { %3643 = vmatpush1.bf16.msra.mxu1 %v3642_v6  ;;  %v3650_v1 = vpack.c.bf16 %v7950_v38, %v7949_v30  ;;  %v7951_v6 = vld [vmem:[#allocation81_spill] sm:$0xff]  ;;  %v7962_v30 = vld [vmem:[#allocation91_spill] sm:$0xff] }
 0x345   :  { %3645 = vmatprep.subr.bf16.mxu1 %v3644_v51  ;;  %v3652_v44 = vpack.c.bf16 %v7952_v62, %v7951_v6  ;;  %v7953_v51 = vld [vmem:[#allocation78_spill] sm:$0xff]  ;;  %v7964_v6 = vld [vmem:[#allocation100_spill] sm:$0xff] }
 0x346   :  { %4031 = vmatpush1.bf16.msra.mxu0 %v4030_v63  ;;  %v4038_v57 = vpack.c.bf16 %v7954_v41, %v7953_v51  ;;  %v7955_v63 = vld [vmem:[#allocation87_spill] sm:$0xff]  ;;  %v7966_v51 = vld [vmem:[#allocation97_spill] sm:$0xff] }
 0x347   :  { %4033 = vmatprep.subr.bf16.mxu0 %v4032_v7  ;;  %v4040_v54 = vpack.c.bf16 %v7956_v28, %v7955_v63  ;;  %v7957_v7 = vld [vmem:[#allocation83_spill] sm:$0xff]  ;;  %v7968_v63 = vld [vmem:[#allocation125_spill] sm:$0xff] }
 0x348   :  { %3647 = vmatpush1.bf16.msra.mxu1 %v3646_v4  ;;  %v3654_v40 = vpack.c.bf16 %v7958_v21, %v7957_v7  ;;  %v7959_v4 = vld [vmem:[#allocation93_spill] sm:$0xff]  ;;  %v7970_v7 = vld [vmem:[#allocation123_spill] sm:$0xff] }
 0x349   :  { %3649 = vmatprep.subr.bf16.mxu1 %v3648_v46  ;;  %v3656_v38 = vpack.c.bf16 %v7960_v56, %v7959_v4  ;;  %v7961_v46 = vld [vmem:[#allocation89_spill] sm:$0xff] }
 0x34a   :  { %4035 = vmatpush1.bf16.msra.mxu0 %v4034_v20  ;;  %v4042_v62 = vpack.c.bf16 %v7962_v30, %v7961_v46  ;;  %v7963_v20 = vld [vmem:[#allocation98_spill] sm:$0xff]  ;;  %v7972_v4 = vld [vmem:[#allocation129_spill] sm:$0xff]  ;;  %v7974_v46 = vld [vmem:[#allocation127_spill] sm:$0xff] }
 0x34b   :  { %4037 = vmatprep.subr.bf16.mxu0 %v4036_v32  ;;  %v4044_v41 = vpack.c.bf16 %v7964_v6, %v7963_v20  ;;  %v7965_v32 = vld [vmem:[#allocation95_spill] sm:$0xff]  ;;  %v7976_v20 = vld [vmem:[#allocation133_spill] sm:$0xff] }
 0x34c   :  { %3651 = vmatpush1.bf16.msra.mxu1 %v3650_v1  ;;  %v3658_v28 = vpack.c.bf16 %v7966_v51, %v7965_v32  ;;  %v7967_v1 = vld [vmem:[#allocation124_spill] sm:$0xff]  ;;  %v7978_v32 = vld [vmem:[#allocation131_spill] sm:$0xff] }
 0x34d   :  { %3653 = vmatprep.subr.bf16.mxu1 %v3652_v44  ;;  %v3660_v21 = vpack.c.bf16 %v7968_v63, %v7967_v1  ;;  %v7969_v44 = vld [vmem:[#allocation122_spill] sm:$0xff]  ;;  %v7980_v1 = vld [vmem:[#allocation137_spill] sm:$0xff] }
 0x34e   :  { %4039 = vmatpush1.bf16.msra.mxu0 %v4038_v57  ;;  %v4046_v56 = vpack.c.bf16 %v7970_v7, %v7969_v44  ;;  %v7971_v57 = vld [vmem:[#allocation128_spill] sm:$0xff]  ;;  %v7982_v44 = vld [vmem:[#allocation135_spill] sm:$0xff] }
 0x34f   :  { %4041 = vmatprep.subr.bf16.mxu0 %v4040_v54  ;;  %v4048_v30 = vpack.c.bf16 %v7972_v4, %v7971_v57  ;;  %v7973_v54 = vld [vmem:[#allocation126_spill] sm:$0xff]  ;;  %v7984_v57 = vld [vmem:[#allocation143_spill] sm:$0xff] }
 0x350   :  { %3655 = vmatpush1.bf16.msra.mxu1 %v3654_v40  ;;  %v3662_v6 = vpack.c.bf16 %v7974_v46, %v7973_v54  ;;  %v7975_v40 = vld [vmem:[#allocation132_spill] sm:$0xff]  ;;  %v7986_v54 = vld [vmem:[#allocation141_spill] sm:$0xff] }
 0x351   :  { %3657 = vmatprep.subr.bf16.mxu1 %v3656_v38  ;;  %v3664_v51 = vpack.c.bf16 %v7976_v20, %v7975_v40  ;;  %v7977_v38 = vld [vmem:[#allocation130_spill] sm:$0xff]  ;;  %v7988_v40 = vld [vmem:[#allocation147_spill] sm:$0xff] }
 0x352   :  { %4043 = vmatpush1.bf16.msra.mxu0 %v4042_v62  ;;  %v4050_v63 = vpack.c.bf16 %v7978_v32, %v7977_v38  ;;  %v7979_v62 = vld [vmem:[#allocation136_spill] sm:$0xff]  ;;  %v7990_v38 = vld [vmem:[#allocation145_spill] sm:$0xff] }
 0x353   :  { %4045 = vmatprep.subr.bf16.mxu0 %v4044_v41  ;;  %v4052_v7 = vpack.c.bf16 %v7980_v1, %v7979_v62  ;;  %v7981_v41 = vld [vmem:[#allocation134_spill] sm:$0xff] }
 0x354   :  { %3659 = vmatpush1.bf16.msra.mxu1 %v3658_v28  ;;  %v3666_v4 = vpack.c.bf16 %v7982_v44, %v7981_v41  ;;  %v7983_v28 = vld [vmem:[#allocation142_spill] sm:$0xff]  ;;  %v7993_v41 = vld [vmem:[#allocation149_spill] sm:$0xff] }
 0x355   :  { %3661 = vmatprep.subr.bf16.mxu1 %v3660_v21  ;;  %v3668_v46 = vpack.c.bf16 %v7984_v57, %v7983_v28  ;;  %v7985_v21 = vld [vmem:[#allocation140_spill] sm:$0xff]  ;;  %v7995_v28 = vld [vmem:[#allocation155_spill] sm:$0xff] }
 0x356   :  { %4047 = vmatpush1.bf16.msra.mxu0 %v4046_v56  ;;  %v4054_v20 = vpack.c.bf16 %v7986_v54, %v7985_v21  ;;  %v7987_v56 = vld [vmem:[#allocation146_spill] sm:$0xff] }
 0x357   :  { %4049 = vmatprep.subr.bf16.mxu0 %v4048_v30  ;;  %v4056_v32 = vpack.c.bf16 %v7988_v40, %v7987_v56  ;;  %v7989_v30 = vld [vmem:[#allocation144_spill] sm:$0xff]  ;;  %v7998_v56 = vld [vmem:[#allocation159_spill] sm:$0xff] }
 0x358   :  { %3663 = vmatpush1.bf16.msra.mxu1 %v3662_v6  ;;  %v3670_v1 = vpack.c.bf16 %v7990_v38, %v7989_v30  ;;  %v7991_v6 = vld [vmem:[#allocation150_spill] sm:$0xff]  ;;  %v8000_v30 = vld [vmem:[#allocation157_spill] sm:$0xff] }
 0x359   :  { %3665 = vmatprep.subr.bf16.mxu1 %v3664_v51  ;;  %v3672_v44 = vpack.c.bf16 %v7778_v33, %v7991_v6  ;;  %v7992_v51 = vld [vmem:[#allocation148_spill] sm:$0xff] }
 0x35a   :  { %4051 = vmatpush1.bf16.msra.mxu0 %v4050_v63  ;;  %v4058_v57 = vpack.c.bf16 %v7993_v41, %v7992_v51  ;;  %v7994_v63 = vld [vmem:[#allocation154_spill] sm:$0xff] }
 0x35b   :  { %4053 = vmatprep.subr.bf16.mxu0 %v4052_v7  ;;  %v4060_v54 = vpack.c.bf16 %v7995_v28, %v7994_v63  ;;  %v7996_v7 = vld [vmem:[#allocation153_spill] sm:$0xff] }
 0x35c   :  { %3667 = vmatpush1.bf16.msra.mxu1 %v3666_v4  ;;  %v3674_v40 = vpack.c.bf16 %v7996_v7, %v7847_v11  ;;  %v7997_v4 = vld [vmem:[#allocation158_spill] sm:$0xff] }
 0x35d   :  { %3669 = vmatprep.subr.bf16.mxu1 %v3668_v46  ;;  %v3676_v38 = vpack.c.bf16 %v7998_v56, %v7997_v4  ;;  %v7999_v46 = vld [vmem:[#allocation156_spill] sm:$0xff] }
 0x35e   :  { %4055 = vmatpush1.bf16.msra.mxu0 %v4054_v20  ;;  %v4062_v33 = vpack.c.bf16 %v8000_v30, %v7999_v46  ;;  %v8001_v20 = vpack.c.bf16 %v7784_v42, %v7775_v8 }
 0x35f   :  { %4057 = vmatprep.subr.bf16.mxu0 %v4056_v32  ;;  %v8002_v32 = vpack.c.bf16 %v7774_v37, %v7773_v53 }
 0x360   :  { %3671 = vmatpush1.bf16.msra.mxu1 %v3670_v1  ;;  %v8003_v1 = vpack.c.bf16 %v7792_v16, %v7789_v9 }
 0x361   :  { %3673 = vmatprep.subr.bf16.mxu1 %v3672_v44  ;;  %v8004_v44 = vpack.c.bf16 %v7786_v19, %v7785_v10 }
 0x362   :  { %4059 = vmatpush1.bf16.msra.mxu0 %v4058_v57  ;;  %v8005_v57 = vpack.c.bf16 %v7880_v58, %v7879_v35 }
 0x363   :  { %4061 = vmatprep.subr.bf16.mxu0 %v4060_v54  ;;  %v8007_v54 = vpack.c.bf16 %v7810_v59, %v7883_v14 }
 0x364   :  { %3675 = vmatpush1.bf16.msra.mxu1 %v3674_v40  ;;  %v8008_v40 = vpack.c.bf16 %v7882_v22, %v7881_v34 }
 0x365   :  { %3677 = vmatprep.subr.bf16.mxu1 %v3676_v38  ;;  %v8009_v38 = vpack.c.bf16 %v7885_v2, %v7884_v29 }
 0x366   :  { %4063 = vmatpush1.bf16.msra.mxu0 %v4062_v33  ;;  %v8006_v33 = vpack.c.bf16 %v7794_v5, %v7793_v55 }
 0x367   :  { %4065 = vmatprep.subr.bf16.mxu0 %v8001_v20  ;;  %v8010_v20 = vpack.c.bf16 %v7813_v39, %v7812_v15 }
 0x368   :  { %3679 = vmatpush1.bf16.msra.mxu1 %v8002_v32  ;;  %v8011_v32 = vpack.c.bf16 %v7825_v31, %v7820_v24 }
 0x369   :  { %3681 = vmatprep.subr.bf16.mxu1 %v8003_v1  ;;  %v8012_v1 = vpack.c.bf16 %v7887_v47, %v7886_v18 }
 0x36a   :  { %4067 = vmatpush1.bf16.msra.mxu0 %v8004_v44  ;;  %v8013_v44 = vpack.c.bf16 %v7891_v45, %v7890_v52 }
 0x36b   :  { %4069 = vmatprep.subr.bf16.mxu0 %v8005_v57  ;;  %v8014_v57 = vpack.c.bf16 %v7889_v23, %v7888_v3 }
 0x36c   :  { %3683 = vmatpush1.bf16.msra.mxu1 %v8006_v33  ;;  %v8015_v33 = vpack.c.bf16 %v7840_v36, %v7838_v12  ;;  %v8098_v36 = vld [vmem:[#allocation25_spill] sm:$0xff] }
 0x36d   :  { %3685 = vmatprep.subr.bf16.mxu1 %v8007_v54  ;;  %v8016_v54 = vpack.c.bf16 %v7836_v27, %v7892_v43  ;;  %v8088_v27 = vld [vmem:[#allocation197_spill] sm:$0xff]  ;;  %v8095_v43 = vld [vmem:[#allocation203_spill] sm:$0xff] }
 0x36e   :  { %4071 = vmatpush1.bf16.msra.mxu0 %v8008_v40  ;;  %v8017_v40 = vld [vmem:[#allocation14_spill] sm:$0xff] }
 0x36f   :  { %4073 = vmatprep.subr.bf16.mxu0 %v8009_v38  ;;  %v8018_v38 = vpack.c.bf16 %v7842_v17, %v7841_v48  ;;  %v8027_v17 = vld [vmem:[#allocation33_spill] sm:$0xff]  ;;  %v8029_v48 = vld [vmem:[#allocation38_spill] sm:$0xff] }
 0x370   :  { %3687 = vmatpush1.bf16.msra.mxu1 %v8010_v20  ;;  %v8019_v20 = vld [vmem:[#allocation240_spill] sm:$0xff] }
 0x371   :  { %3689 = vmatprep.subr.bf16.mxu1 %v8011_v32  ;;  %v8020_v32 = vld [vmem:[#allocation20_spill] sm:$0xff] }
 0x372   :  { %4075 = vmatpush1.bf16.msra.mxu0 %v8012_v1  ;;  %v8021_v1 = vld [vmem:[#allocation18_spill] sm:$0xff] }
 0x373   :  { %4077 = vmatprep.subr.bf16.mxu0 %v8013_v44  ;;  %v8022_v44 = vand.u32 4294901760, %v7918_v61  ;;  %v8032_v61 = vld [vmem:[#allocation41_spill] sm:$0xff] }
 0x374   :  { %3691 = vmatpush1.bf16.msra.mxu1 %v8014_v57  ;;  %v8023_v57 = vld [vmem:[#allocation164_spill] sm:$0xff] }
 0x375   :  { %3693 = vmatprep.subr.bf16.mxu1 %v8015_v33  ;;  %v8024_v33 = vld [vmem:[#allocation27_spill] sm:$0xff] }
 0x376   :  { %4079 = vmatpush1.bf16.msra.mxu0 %v8016_v54  ;;  %v8025_v54 = vld [vmem:[#allocation23_spill] sm:$0xff] }
 0x377   :  { %4081 = vmatprep.subr.bf16.mxu0 %v8017_v40  ;;  %v8026_v40 = vand.u32 4294901760, %v7924_v60  ;;  %v8036_v60 = vld [vmem:[#allocation53_spill] sm:$0xff] }
 0x378   :  { %3695 = vmatpush1.bf16.msra.mxu1 %v8018_v38  ;;  %v8028_v38 = vld [vmem:[#allocation29_spill] sm:$0xff] }
 0x379   :  { %2844 = vmatmul.mubr.f32.vlgmr.msra.gmra.mrb[0].mxu0 %v8019_v20  ;;  %3697 = vmatprep.subr.bf16.mxu1 %v8020_v32  ;;  %v8030_v32 = vld [vmem:[#allocation36_spill] sm:$0xff] }
 0x37a   :  { %4083 = vmatpush1.bf16.msra.mxu0 %v8021_v1  ;;  %2981 = vmatprep.mubr.f32.mxu0 %v8022_v44  ;;  %v8031_v1 = vld [vmem:[#allocation44_spill] sm:$0xff]  ;;  %v8033_v44 = vld [vmem:[#allocation50_spill] sm:$0xff] }
 0x37b   :  { %1560 = vmatmul.mubr.f32.vlgmr.msra.gmra.mrb[0].mxu1 %v8023_v57  ;;  %4085 = vmatprep.subr.bf16.mxu0 %v8024_v33  ;;  %v8034_v33 = vld [vmem:[#allocation47_spill] sm:$0xff] }
 0x37c   :  { %3699 = vmatpush1.bf16.msra.mxu1 %v8025_v54  ;;  %1697 = vmatprep.mubr.f32.mxu1 %v8026_v40  ;;  %v8035_v54 = vld [vmem:[#allocation56_spill] sm:$0xff]  ;;  %v8037_v40 = vld [vmem:[#allocation62_spill] sm:$0xff] }
 0x37d   :  { %3701 = vmatprep.subr.bf16.mxu1 %v8027_v17  ;;  %v8038_v17 = vld [vmem:[#allocation59_spill] sm:$0xff] }
 0x37e   :  { %4087 = vmatpush1.bf16.msra.mxu0 %v8028_v38  ;;  %v8039_v38 = vld [vmem:[#allocation66_spill] sm:$0xff] }
 0x37f   :  { %4089 = vmatprep.subr.bf16.mxu0 %v8029_v48  ;;  %v8040_v48 = vld [vmem:[#allocation65_spill] sm:$0xff] }
 0x380   :  { %3703 = vmatpush1.bf16.msra.mxu1 %v8030_v32  ;;  %v8041_v32 = vld [vmem:[#allocation74_spill] sm:$0xff] }
 0x381   :  { %3705 = vmatprep.subr.bf16.mxu1 %v8031_v1  ;;  %v8042_v1 = vld [vmem:[#allocation67_spill] sm:$0xff] }
 0x382   :  { %4091 = vmatpush1.bf16.msra.mxu0 %v8032_v61  ;;  %v8043_v61 = vld [vmem:[#allocation80_spill] sm:$0xff] }
 0x383   :  { %4093 = vmatprep.subr.bf16.mxu0 %v8033_v44  ;;  %v8044_v44 = vld [vmem:[#allocation77_spill] sm:$0xff] }
 0x384   :  { %3707 = vmatpush1.bf16.msra.mxu1 %v8034_v33  ;;  %v8045_v33 = vld [vmem:[#allocation86_spill] sm:$0xff] }
 0x385   :  { %3709 = vmatprep.subr.bf16.mxu1 %v8035_v54  ;;  %v8046_v54 = vld [vmem:[#allocation84_spill] sm:$0xff] }
 0x386   :  { %4095 = vmatpush1.bf16.msra.mxu0 %v8036_v60  ;;  %v8047_v60 = vld [vmem:[#allocation92_spill] sm:$0xff] }
 0x387   :  { %4097 = vmatprep.subr.bf16.mxu0 %v8037_v40  ;;  %v8048_v40 = vld [vmem:[#allocation90_spill] sm:$0xff] }
 0x388   :  { %3711 = vmatpush1.bf16.msra.mxu1 %v8038_v17  ;;  %v8049_v17 = vld [vmem:[#allocation99_spill] sm:$0xff] }
 0x389   :  { %3713 = vmatprep.subr.bf16.mxu1 %v8039_v38  ;;  %v8050_v38 = vld [vmem:[#allocation96_spill] sm:$0xff] }
 0x38a   :  { %4099 = vmatpush1.bf16.msra.mxu0 %v8040_v48  ;;  %v8051_v48 = vld [vmem:[#allocation102_spill] sm:$0xff] }
 0x38b   :  { %4101 = vmatprep.subr.bf16.mxu0 %v8041_v32  ;;  %v8052_v32 = vld [vmem:[#allocation101_spill] sm:$0xff] }
 0x38c   :  { %3715 = vmatpush1.bf16.msra.mxu1 %v8042_v1  ;;  %v8053_v1 = vld [vmem:[#allocation104_spill] sm:$0xff] }
 0x38d   :  { %3717 = vmatprep.subr.bf16.mxu1 %v8043_v61  ;;  %v8054_v61 = vld [vmem:[#allocation103_spill] sm:$0xff] }
 0x38e   :  { %4103 = vmatpush1.bf16.msra.mxu0 %v8044_v44  ;;  %v8055_v44 = vld [vmem:[#allocation106_spill] sm:$0xff] }
 0x38f   :  { %4105 = vmatprep.subr.bf16.mxu0 %v8045_v33  ;;  %v8056_v33 = vld [vmem:[#allocation105_spill] sm:$0xff] }
 0x390   :  { %3719 = vmatpush1.bf16.msra.mxu1 %v8046_v54  ;;  %v8057_v54 = vld [vmem:[#allocation108_spill] sm:$0xff] }
 0x391   :  { %3721 = vmatprep.subr.bf16.mxu1 %v8047_v60  ;;  %v8058_v60 = vld [vmem:[#allocation107_spill] sm:$0xff] }
 0x392   :  { %4107 = vmatpush1.bf16.msra.mxu0 %v8048_v40  ;;  %v8059_v40 = vld [vmem:[#allocation110_spill] sm:$0xff] }
 0x393   :  { %4109 = vmatprep.subr.bf16.mxu0 %v8049_v17  ;;  %v8060_v17 = vld [vmem:[#allocation109_spill] sm:$0xff] }
 0x394   :  { %3723 = vmatpush1.bf16.msra.mxu1 %v8050_v38  ;;  %v8061_v38 = vld [vmem:[#allocation112_spill] sm:$0xff] }
 0x395   :  { %3725 = vmatprep.subr.bf16.mxu1 %v8051_v48  ;;  %v8062_v48 = vld [vmem:[#allocation111_spill] sm:$0xff] }
 0x396   :  { %4111 = vmatpush1.bf16.msra.mxu0 %v8052_v32  ;;  %v8063_v32 = vld [vmem:[#allocation114_spill] sm:$0xff] }
 0x397   :  { %4113 = vmatprep.subr.bf16.mxu0 %v8053_v1  ;;  %v8064_v1 = vld [vmem:[#allocation113_spill] sm:$0xff] }
 0x398   :  { %3727 = vmatpush1.bf16.msra.mxu1 %v8054_v61  ;;  %v8065_v61 = vld [vmem:[#allocation116_spill] sm:$0xff] }
 0x399   :  { %3729 = vmatprep.subr.bf16.mxu1 %v8055_v44  ;;  %v8066_v44 = vld [vmem:[#allocation115_spill] sm:$0xff] }
 0x39a   :  { %4115 = vmatpush1.bf16.msra.mxu0 %v8056_v33  ;;  %v8067_v33 = vld [vmem:[#allocation117_spill] sm:$0xff] }
 0x39b   :  { %4117 = vmatprep.subr.bf16.mxu0 %v8057_v54  ;;  %v8068_v54 = vld [vmem:[#allocation118_spill] sm:$0xff] }
 0x39c   :  { %3731 = vmatpush1.bf16.msra.mxu1 %v8058_v60  ;;  %v8069_v60 = vld [vmem:[#allocation120_spill] sm:$0xff] }
 0x39d   :  { %3733 = vmatprep.subr.bf16.mxu1 %v8059_v40  ;;  %v8070_v40 = vld [vmem:[#allocation119_spill] sm:$0xff] }
 0x39e   :  { %4119 = vmatpush1.bf16.msra.mxu0 %v8060_v17  ;;  %v8071_v17 = vld [vmem:[#allocation138_spill] sm:$0xff] }
 0x39f   :  { %4121 = vmatprep.subr.bf16.mxu0 %v8061_v38  ;;  %v8072_v38 = vld [vmem:[#allocation121_spill] sm:$0xff] }
 0x3a0   :  { %3735 = vmatpush1.bf16.msra.mxu1 %v8062_v48  ;;  %v8073_v48 = vld [vmem:[#allocation170_spill] sm:$0xff] }
 0x3a1   :  { %3737 = vmatprep.subr.bf16.mxu1 %v8063_v32  ;;  %v8074_v32 = vld [vmem:[#allocation139_spill] sm:$0xff] }
 0x3a2   :  { %4123 = vmatpush1.bf16.msra.mxu0 %v8064_v1  ;;  %v8075_v1 = vld [vmem:[#allocation177_spill] sm:$0xff] }
 0x3a3   :  { %4125 = vmatprep.subr.bf16.mxu0 %v8065_v61  ;;  %v8076_v61 = vld [vmem:[#allocation173_spill] sm:$0xff] }
 0x3a4   :  { %3739 = vmatpush1.bf16.msra.mxu1 %v8066_v44  ;;  %v8077_v44 = vld [vmem:[#allocation183_spill] sm:$0xff] }
 0x3a5   :  { %3741 = vmatprep.subr.bf16.mxu1 %v8067_v33  ;;  %v8078_v33 = vld [vmem:[#allocation179_spill] sm:$0xff] }
 0x3a6   :  { %4127 = vmatpush1.bf16.msra.mxu0 %v8068_v54  ;;  %v8079_v54 = vld [vmem:[#allocation188_spill] sm:$0xff] }
 0x3a7   :  { %4129 = vmatprep.subr.bf16.mxu0 %v8069_v60  ;;  %v8080_v60 = vld [vmem:[#allocation186_spill] sm:$0xff] }
 0x3a8   :  { %3743 = vmatpush1.bf16.msra.mxu1 %v8070_v40  ;;  %v8081_v40 = vld [vmem:[#allocation194_spill] sm:$0xff] }
 0x3a9   :  { %3745 = vmatprep.subr.bf16.mxu1 %v8071_v17 }
 0x3aa   :  { %4131 = vmatpush1.bf16.msra.mxu0 %v8072_v38  ;;  %v8082_v38 = vand.u32 4294901760, %v7904_v50  ;;  %v8091_v50 = vld [vmem:[#allocation26_spill] sm:$0xff] }
 0x3ab   :  { %4133 = vmatprep.subr.bf16.mxu0 %v8073_v48  ;;  %v8083_v48 = vand.u32 4294901760, %v7905_v25  ;;  %v8092_v25 = vand.u32 4294901760, %v8091_v50  ;;  %v8105_v50 = vld [vmem:[#allocation160_spill] sm:$0xff] }
 0x3ac   :  { %3747 = vmatpush1.bf16.msra.mxu1 %v8074_v32  ;;  %v8084_v32 = vld [vmem:[#allocation191_spill] sm:$0xff] }
 0x3ad   :  { %3749 = vmatprep.subr.bf16.mxu1 %v8075_v1  ;;  %v4144_v17 = vpack.c.bf16 %v8083_v48, %v8082_v38  ;;  %v8085_v1 = vld [vmem:[#allocation200_spill] sm:$0xff] }
 0x3ae   :  { %4135 = vmatpush1.bf16.msra.mxu0 %v8076_v61  ;;  %v8086_v61 = vand.u32 4294901760, %v7906_v26  ;;  %v8093_v48 = vld [vmem:[#allocation28_spill] sm:$0xff] }
 0x3af   :  { %4137 = vmatprep.subr.bf16.mxu0 %v8077_v44  ;;  %v8087_v44 = vand.u32 4294901760, %v7907_v0  ;;  %v8094_v38 = vand.u32 4294901760, %v8093_v48  ;;  %v8099_v0 = vand.u32 4294901760, %v8098_v36  ;;  %v8110_v36 = vand.u32 4294901760, %v8023_v57 }
 0x3b0   :  { %3751 = vmatpush1.bf16.msra.mxu1 %v8078_v33 }
 0x3b1   :  { %3753 = vmatprep.subr.bf16.mxu1 %v8079_v54  ;;  %v3760_v33 = vpack.c.bf16 %v8087_v44, %v8086_v61  ;;  %v8100_v44 = vand.u32 4294901760, %v8019_v20  ;;  %v8111_v20 = vld [vmem:[#allocation39_spill] sm:$0xff] }
 0x3b2   :  { %4139 = vmatpush1.bf16.msra.mxu0 %v8080_v60  ;;  %v8089_v60 = vand.u32 4294901760, %v7909_v49  ;;  %v8101_v49 = vld [vmem:[#allocation32_spill] sm:$0xff] }
 0x3b3   :  { %4141 = vmatprep.subr.bf16.mxu0 %v8081_v40  ;;  %v8090_v40 = vand.u32 4294901760, %v7910_v13  ;;  %v8102_v13 = vand.u32 4294901760, %v8101_v49  ;;  %v8115_v49 = vld [vmem:[#allocation241_spill] sm:$0xff] }
 0x3b4   :  { %3755 = vmatpush1.bf16.msra.mxu1 %v8084_v32  ;;  %v4148_v32 = vpack.c.bf16 %v8094_v38, %v8092_v25  ;;  %v8106_v25 = vld [vmem:[#allocation30_spill] sm:$0xff]  ;;  %v8108_v38 = vld [vmem:[#allocation31_spill] sm:$0xff] }
 0x3b5   :  { %3757 = vmatprep.subr.bf16.mxu1 %v8085_v1  ;;  %v4146_v54 = vpack.c.bf16 %v8090_v40, %v8089_v60  ;;  %v8096_v1 = vld [vmem:[#allocation24_spill] sm:$0xff]  ;;  %v8103_v60 = vld [vmem:[#allocation34_spill] sm:$0xff]  ;;  %v8107_v48 = vand.u32 4294901760, %v8106_v25 }
 0x3b6   :  { %4143 = vmatpush1.bf16.msra.mxu0 %v8088_v27  ;;  %v8097_v26 = vand.u32 4294901760, %v8096_v1  ;;  %v8126_v27 = vld [vmem:[#allocation43_spill] sm:$0xff] }
 0x3b7   :  { %4145 = vmatprep.subr.bf16.mxu0 %v4144_v17  ;;  %v8104_v17 = vand.u32 4294901760, %v8103_v60  ;;  %v8118_v60 = vld [vmem:[#allocation37_spill] sm:$0xff] }
 0x3b8   :  { %3759 = vmatpush1.bf16.msra.mxu1 %v8095_v43  ;;  %v3762_v61 = vpack.c.bf16 %v8099_v0, %v8097_v26  ;;  %v8109_v43 = vand.u32 4294901760, %v8108_v38  ;;  %v8112_v26 = vand.u32 4294901760, %v8111_v20  ;;  %v8120_v38 = vld [vmem:[#allocation45_spill] sm:$0xff] }
 0x3b9   :  { %2985 = vmatmul.mubr.f32.vlgmr.msra.gmra.mrb[0].mxu0 %v8100_v44  ;;  %3761 = vmatprep.subr.bf16.mxu1 %v3760_v33  ;;  %v3764_v40 = vpack.c.bf16 %v8104_v17, %v8102_v13  ;;  %v8113_v33 = vld [vmem:[#allocation40_spill] sm:$0xff]  ;;  %v8119_v17 = vand.u32 4294901760, %v8118_v60  ;;  %v8134_v60 = vld [vmem:[#allocation49_spill] sm:$0xff] }
 0x3ba   :  { %4147 = vmatpush1.bf16.msra.mxu0 %v4146_v54  ;;  %3248 = vmatprep.mubr.f32.mxu0 %v8105_v50  ;;  %v4150_v1 = vpack.c.bf16 %v8109_v43, %v8107_v48  ;;  %v8114_v0 = vand.u32 4294901760, %v8113_v33  ;;  %v8116_v54 = vld [vmem:[#allocation35_spill] sm:$0xff]  ;;  %v8121_v43 = vand.u32 4294901760, %v8120_v38  ;;  %v8122_v48 = vld [vmem:[#allocation46_spill] sm:$0xff]  ;;  %v8127_v33 = vand.u32 4294901760, %v8126_v27 }
 0x3bb   :  { %1701 = vmatmul.mubr.f32.vlgmr.msra.gmra.mrb[0].mxu1 %v8110_v36  ;;  %4149 = vmatprep.subr.bf16.mxu0 %v4148_v32  ;;  %v8117_v13 = vand.u32 4294901760, %v8116_v54  ;;  %v8123_v57 = vand.u32 4294901760, %v8122_v48  ;;  %v8124_v32 = vld [vmem:[#allocation42_spill] sm:$0xff] }
 0x3bc   :  { %v4152_v44 = vpack.c.bf16 %v8114_v0, %v8112_v26  ;;  %3763 = vmatpush1.bf16.msra.mxu1 %v3762_v61  ;;  %1964 = vmatprep.mubr.f32.mxu1 %v8115_v49  ;;  %v8125_v20 = vand.u32 4294901760, %v8124_v32  ;;  %v8128_v61 = vld [vmem:[#allocation51_spill] sm:$0xff]  ;;  %v8130_v49 = vld [vmem:[#allocation52_spill] sm:$0xff]  ;;  %v8138_v48 = vld [vmem:[#allocation58_spill] sm:$0xff] }
 0x3bd   :  { %v3766_v25 = vpack.c.bf16 %v8119_v17, %v8117_v13  ;;  %3765 = vmatprep.subr.bf16.mxu1 %v3764_v40  ;;  %v3768_v36 = vpack.c.bf16 %v8123_v57, %v8121_v43  ;;  %v8129_v0 = vand.u32 4294901760, %v8128_v61  ;;  %v8131_v54 = vand.u32 4294901760, %v8130_v49  ;;  %v8132_v13 = vld [vmem:[#allocation48_spill] sm:$0xff]  ;;  %v8136_v43 = vld [vmem:[#allocation57_spill] sm:$0xff]  ;;  %v8140_v27 = vld [vmem:[#allocation54_spill] sm:$0xff] }
 0x3be   :  { %4151 = vmatpush1.bf16.msra.mxu0 %v4150_v1  ;;  %v4154_v26 = vpack.c.bf16 %v8127_v33, %v8125_v20  ;;  %v8133_v40 = vand.u32 4294901760, %v8132_v13  ;;  %v8135_v17 = vand.u32 4294901760, %v8134_v60  ;;  %v8137_v1 = vand.u32 4294901760, %v8136_v43  ;;  %v8142_v20 = vld [vmem:[#allocation55_spill] sm:$0xff]  ;;  %v8150_v60 = vld [vmem:[#allocation61_spill] sm:$0xff] }
 0x3bf   :  { %4153 = vmatprep.subr.bf16.mxu0 %v4152_v44  ;;  %v4156_v50 = vpack.c.bf16 %v8131_v54, %v8129_v0  ;;  %v8139_v57 = vand.u32 4294901760, %v8138_v48  ;;  %v8141_v44 = vand.u32 4294901760, %v8140_v27  ;;  %v8143_v33 = vand.u32 4294901760, %v8142_v20  ;;  %v8144_v49 = vld [vmem:[#allocation63_spill] sm:$0xff]  ;;  %v8146_v0 = vld [vmem:[#allocation64_spill] sm:$0xff]  ;;  %v8158_v20 = vld [vmem:[#allocation69_spill] sm:$0xff] }
 0x3c0   :  { %3767 = vmatpush1.bf16.msra.mxu1 %v3766_v25  ;;  %v3770_v38 = vpack.c.bf16 %v8135_v17, %v8133_v40  ;;  %v8145_v25 = vand.u32 4294901760, %v8144_v49  ;;  %v8147_v54 = vand.u32 4294901760, %v8146_v0  ;;  %v8148_v40 = vld [vmem:[#allocation60_spill] sm:$0xff]  ;;  %v8151_v17 = vand.u32 4294901760, %v8150_v60  ;;  %v8154_v48 = vld [vmem:[#allocation71_spill] sm:$0xff]  ;;  %v8166_v60 = vld [vmem:[#allocation73_spill] sm:$0xff] }
 0x3c1   :  { %3769 = vmatprep.subr.bf16.mxu1 %v3768_v36  ;;  %v3772_v32 = vpack.c.bf16 %v8139_v57, %v8137_v1  ;;  %v4158_v61 = vpack.c.bf16 %v8143_v33, %v8141_v44  ;;  %v8149_v36 = vand.u32 4294901760, %v8148_v40  ;;  %v8152_v1 = vld [vmem:[#allocation70_spill] sm:$0xff]  ;;  %v8155_v57 = vand.u32 4294901760, %v8154_v48  ;;  %v8156_v44 = vld [vmem:[#allocation68_spill] sm:$0xff] }
 0x3c2   :  { %4155 = vmatpush1.bf16.msra.mxu0 %v4154_v26  ;;  %v4160_v13 = vpack.c.bf16 %v8147_v54, %v8145_v25  ;;  %v8153_v26 = vand.u32 4294901760, %v8152_v1  ;;  %v8159_v33 = vand.u32 4294901760, %v8158_v20  ;;  %v8160_v25 = vld [vmem:[#allocation75_spill] sm:$0xff]  ;;  %v8162_v0 = vld [vmem:[#allocation76_spill] sm:$0xff]  ;;  %v8170_v48 = vld [vmem:[#allocation82_spill] sm:$0xff] }
 0x3c3   :  { %4157 = vmatprep.subr.bf16.mxu0 %v4156_v50  ;;  %v3774_v43 = vpack.c.bf16 %v8151_v17, %v8149_v36  ;;  %v8157_v50 = vand.u32 4294901760, %v8156_v44  ;;  %v8163_v54 = vand.u32 4294901760, %v8162_v0  ;;  %v8164_v36 = vld [vmem:[#allocation72_spill] sm:$0xff]  ;;  %v8167_v17 = vand.u32 4294901760, %v8166_v60  ;;  %v8174_v20 = vld [vmem:[#allocation79_spill] sm:$0xff]  ;;  %v8182_v60 = vld [vmem:[#allocation85_spill] sm:$0xff] }
 0x3c4   :  { %3771 = vmatpush1.bf16.msra.mxu1 %v3770_v38  ;;  %v3776_v27 = vpack.c.bf16 %v8155_v57, %v8153_v26  ;;  %v8161_v38 = vand.u32 4294901760, %v8160_v25  ;;  %v8168_v26 = vld [vmem:[#allocation81_spill] sm:$0xff]  ;;  %v8171_v57 = vand.u32 4294901760, %v8170_v48  ;;  %v8178_v0 = vld [vmem:[#allocation88_spill] sm:$0xff]  ;;  %v8186_v48 = vld [vmem:[#allocation94_spill] sm:$0xff] }
 0x3c5   :  { %3773 = vmatprep.subr.bf16.mxu1 %v3772_v32  ;;  %v4162_v49 = vpack.c.bf16 %v8159_v33, %v8157_v50  ;;  %v8165_v32 = vand.u32 4294901760, %v8164_v36  ;;  %v8172_v50 = vld [vmem:[#allocation78_spill] sm:$0xff]  ;;  %v8175_v33 = vand.u32 4294901760, %v8174_v20  ;;  %v8190_v20 = vld [vmem:[#allocation91_spill] sm:$0xff] }
 0x3c6   :  { %4159 = vmatpush1.bf16.msra.mxu0 %v4158_v61  ;;  %v4164_v40 = vpack.c.bf16 %v8163_v54, %v8161_v38  ;;  %v8169_v61 = vand.u32 4294901760, %v8168_v26  ;;  %v8176_v38 = vld [vmem:[#allocation87_spill] sm:$0xff]  ;;  %v8179_v54 = vand.u32 4294901760, %v8178_v0  ;;  %v8194_v0 = vld [vmem:[#allocation100_spill] sm:$0xff] }
 0x3c7   :  { %4161 = vmatprep.subr.bf16.mxu0 %v4160_v13  ;;  %v3778_v1 = vpack.c.bf16 %v8167_v17, %v8165_v32  ;;  %v8173_v13 = vand.u32 4294901760, %v8172_v50  ;;  %v8180_v32 = vld [vmem:[#allocation83_spill] sm:$0xff]  ;;  %v8183_v17 = vand.u32 4294901760, %v8182_v60  ;;  %v8198_v60 = vld [vmem:[#allocation97_spill] sm:$0xff] }
 0x3c8   :  { %3775 = vmatpush1.bf16.msra.mxu1 %v3774_v43  ;;  %v3780_v44 = vpack.c.bf16 %v8171_v57, %v8169_v61  ;;  %v8177_v43 = vand.u32 4294901760, %v8176_v38  ;;  %v8184_v61 = vld [vmem:[#allocation93_spill] sm:$0xff]  ;;  %v8187_v57 = vand.u32 4294901760, %v8186_v48 }
 0x3c9   :  { %3777 = vmatprep.subr.bf16.mxu1 %v3776_v27  ;;  %v4166_v25 = vpack.c.bf16 %v8175_v33, %v8173_v13  ;;  %v8181_v27 = vand.u32 4294901760, %v8180_v32  ;;  %v8188_v13 = vld [vmem:[#allocation89_spill] sm:$0xff]  ;;  %v8191_v33 = vand.u32 4294901760, %v8190_v20  ;;  %v8206_v20 = vld [vmem:[#allocation123_spill] sm:$0xff] }
 0x3ca   :  { %4163 = vmatpush1.bf16.msra.mxu0 %v4162_v49  ;;  %v4168_v36 = vpack.c.bf16 %v8179_v54, %v8177_v43  ;;  %v8185_v49 = vand.u32 4294901760, %v8184_v61  ;;  %v8192_v43 = vld [vmem:[#allocation98_spill] sm:$0xff]  ;;  %v8195_v54 = vand.u32 4294901760, %v8194_v0  ;;  %v8202_v48 = vld [vmem:[#allocation125_spill] sm:$0xff] }
 0x3cb   :  { %4165 = vmatprep.subr.bf16.mxu0 %v4164_v40  ;;  %v3782_v26 = vpack.c.bf16 %v8183_v17, %v8181_v27  ;;  %v8189_v40 = vand.u32 4294901760, %v8188_v13  ;;  %v8196_v27 = vld [vmem:[#allocation95_spill] sm:$0xff]  ;;  %v8199_v17 = vand.u32 4294901760, %v8198_v60  ;;  %v8210_v0 = vld [vmem:[#allocation129_spill] sm:$0xff] }
 0x3cc   :  { %3779 = vmatpush1.bf16.msra.mxu1 %v3778_v1  ;;  %v3784_v50 = vpack.c.bf16 %v8187_v57, %v8185_v49  ;;  %v8193_v1 = vand.u32 4294901760, %v8192_v43  ;;  %v8200_v49 = vld [vmem:[#allocation124_spill] sm:$0xff]  ;;  %v8203_v57 = vand.u32 4294901760, %v8202_v48  ;;  %v8214_v60 = vld [vmem:[#allocation127_spill] sm:$0xff]  ;;  %v8218_v48 = vld [vmem:[#allocation133_spill] sm:$0xff] }
 0x3cd   :  { %3781 = vmatprep.subr.bf16.mxu1 %v3780_v44  ;;  %v4170_v38 = vpack.c.bf16 %v8191_v33, %v8189_v40  ;;  %v8197_v44 = vand.u32 4294901760, %v8196_v27  ;;  %v8204_v40 = vld [vmem:[#allocation122_spill] sm:$0xff]  ;;  %v8207_v33 = vand.u32 4294901760, %v8206_v20  ;;  %v8222_v20 = vld [vmem:[#allocation131_spill] sm:$0xff] }
 0x3ce   :  { %4167 = vmatpush1.bf16.msra.mxu0 %v4166_v25  ;;  %v4172_v32 = vpack.c.bf16 %v8195_v54, %v8193_v1  ;;  %v8201_v25 = vand.u32 4294901760, %v8200_v49  ;;  %v8208_v1 = vld [vmem:[#allocation128_spill] sm:$0xff]  ;;  %v8211_v54 = vand.u32 4294901760, %v8210_v0 }
 0x3cf   :  { %4169 = vmatprep.subr.bf16.mxu0 %v4168_v36  ;;  %v3786_v61 = vpack.c.bf16 %v8199_v17, %v8197_v44  ;;  %v8205_v36 = vand.u32 4294901760, %v8204_v40  ;;  %v8212_v44 = vld [vmem:[#allocation126_spill] sm:$0xff]  ;;  %v8215_v17 = vand.u32 4294901760, %v8214_v60 }
 0x3d0   :  { %3783 = vmatpush1.bf16.msra.mxu1 %v3782_v26  ;;  %v3788_v13 = vpack.c.bf16 %v8203_v57, %v8201_v25  ;;  %v8209_v26 = vand.u32 4294901760, %v8208_v1  ;;  %v8216_v25 = vld [vmem:[#allocation132_spill] sm:$0xff]  ;;  %v8219_v57 = vand.u32 4294901760, %v8218_v48 }
 0x3d1   :  { %3785 = vmatprep.subr.bf16.mxu1 %v3784_v50  ;;  %v4174_v43 = vpack.c.bf16 %v8207_v33, %v8205_v36  ;;  %v8213_v50 = vand.u32 4294901760, %v8212_v44  ;;  %v8220_v36 = vld [vmem:[#allocation130_spill] sm:$0xff]  ;;  %v8223_v33 = vand.u32 4294901760, %v8222_v20 }
 0x3d2   :  { %4171 = vmatpush1.bf16.msra.mxu0 %v4170_v38  ;;  %v4176_v27 = vpack.c.bf16 %v8211_v54, %v8209_v26  ;;  %v8217_v38 = vand.u32 4294901760, %v8216_v25  ;;  %v8225_v26 = vld [vmem:[#allocation137_spill] sm:$0xff]  ;;  %v8227_v44 = vld [vmem:[#allocation134_spill] sm:$0xff] }
 0x3d3   :  { %4173 = vmatprep.subr.bf16.mxu0 %v4172_v32  ;;  %v3790_v49 = vpack.c.bf16 %v8215_v17, %v8213_v50  ;;  %v8221_v32 = vand.u32 4294901760, %v8220_v36  ;;  %v8226_v0 = vand.u32 4294901760, %v8225_v26  ;;  %v8229_v50 = vld [vmem:[#allocation135_spill] sm:$0xff]  ;;  %v8231_v25 = vld [vmem:[#allocation142_spill] sm:$0xff]  ;;  %v8236_v36 = vld [vmem:[#allocation141_spill] sm:$0xff] }
 0x3d4   :  { %3787 = vmatpush1.bf16.msra.mxu1 %v3786_v61  ;;  %v3792_v40 = vpack.c.bf16 %v8219_v57, %v8217_v38  ;;  %v8224_v61 = vand.u32 4294901760, %v7979_v62  ;;  %v8230_v60 = vand.u32 4294901760, %v8229_v50  ;;  %v8233_v38 = vld [vmem:[#allocation143_spill] sm:$0xff]  ;;  %v8237_v62 = vand.u32 4294901760, %v8236_v36  ;;  %v8238_v20 = vld [vmem:[#allocation146_spill] sm:$0xff] }
 0x3d5   :  { %3789 = vmatprep.subr.bf16.mxu1 %v3788_v13  ;;  %v4178_v1 = vpack.c.bf16 %v8223_v33, %v8221_v32  ;;  %v8228_v13 = vand.u32 4294901760, %v8227_v44  ;;  %v8234_v48 = vand.u32 4294901760, %v8233_v38  ;;  %v8240_v33 = vld [vmem:[#allocation147_spill] sm:$0xff]  ;;  %v8244_v44 = vld [vmem:[#allocation145_spill] sm:$0xff] }
 0x3d6   :  { %4175 = vmatpush1.bf16.msra.mxu0 %v4174_v43  ;;  %v4180_v54 = vpack.c.bf16 %v8226_v0, %v8224_v61  ;;  %v8232_v43 = vand.u32 4294901760, %v8231_v25  ;;  %v8241_v61 = vand.u32 4294901760, %v8240_v33  ;;  %v8242_v0 = vld [vmem:[#allocation144_spill] sm:$0xff] }
 0x3d7   :  { %4177 = vmatprep.subr.bf16.mxu0 %v4176_v27  ;;  %v3794_v17 = vpack.c.bf16 %v8230_v60, %v8228_v13  ;;  %v8235_v27 = vand.u32 4294901760, %v7985_v21  ;;  %v8245_v13 = vand.u32 4294901760, %v8244_v44  ;;  %v8247_v60 = vld [vmem:[#allocation151_spill] sm:$0xff] }
 0x3d8   :  { %3791 = vmatpush1.bf16.msra.mxu1 %v3790_v49  ;;  %v3796_v57 = vpack.c.bf16 %v8234_v48, %v8232_v43  ;;  %v8239_v49 = vand.u32 4294901760, %v8238_v20  ;;  %v8248_v21 = vand.u32 4294901760, %v8247_v60  ;;  %v8250_v43 = vand.u32 4294901760, %v7993_v41 }
 0x3d9   :  { %3793 = vmatprep.subr.bf16.mxu1 %v3792_v40  ;;  %v4182_v32 = vpack.c.bf16 %v8237_v62, %v8235_v27  ;;  %v8243_v40 = vand.u32 4294901760, %v8242_v0  ;;  %v8252_v48 = vand.u32 4294901760, %v7995_v28  ;;  %v8255_v62 = vand.u32 4294901760, %v7997_v4 }
 0x3da   :  { %4179 = vmatpush1.bf16.msra.mxu0 %v4178_v1  ;;  %v4184_v26 = vpack.c.bf16 %v8241_v61, %v8239_v49  ;;  %v8246_v1 = vand.u32 4294901760, %v7991_v6  ;;  %v8254_v6 = vand.u32 4294901760, %v7996_v7  ;;  %v8257_v41 = vand.u32 4294901760, %v7999_v46 }
 0x3db   :  { %4181 = vmatprep.subr.bf16.mxu0 %v4180_v54  ;;  %v3798_v50 = vpack.c.bf16 %v8245_v13, %v8243_v40  ;;  %v8249_v54 = vand.u32 4294901760, %v7992_v51  ;;  %v8256_v51 = vand.u32 4294901760, %v7998_v56  ;;  %v8259_v28 = vand.u32 4294901760, %v7775_v8 }
 0x3dc   :  { %3795 = vmatpush1.bf16.msra.mxu1 %v3794_v17  ;;  %v3800_v25 = vpack.c.bf16 %v8248_v21, %v8246_v1  ;;  %v8251_v17 = vand.u32 4294901760, %v7994_v63  ;;  %v8258_v63 = vand.u32 4294901760, %v8000_v30  ;;  %v8261_v7 = vand.u32 4294901760, %v7773_v53 }
 0x3dd   :  { %3797 = vmatprep.subr.bf16.mxu1 %v3796_v57  ;;  %v4186_v38 = vpack.c.bf16 %v8250_v43, %v8249_v54  ;;  %v8253_v57 = vand.u32 4294901760, %v7847_v11  ;;  %v8260_v11 = vand.u32 4294901760, %v7784_v42  ;;  %v8262_v4 = vand.u32 4294901760, %v7774_v37  ;;  %v8288_v43 = vld [vmem:[#allocation202_spill] sm:$0xff] }
 0x3de   :  { %4183 = vmatpush1.bf16.msra.mxu0 %v4182_v32  ;;  %v4188_v27 = vpack.c.bf16 %v8252_v48, %v8251_v17  ;;  %v3804_v32 = vpack.c.bf16 %v8256_v51, %v8255_v62  ;;  %v4190_v20 = vpack.c.bf16 %v8258_v63, %v8257_v41  ;;  %v8263_v56 = vand.u32 4294901760, %v7789_v9  ;;  %v8292_v48 = vld [vmem:[#allocation199_spill] sm:$0xff]  ;;  %v8300_v62 = vld [vmem:[#allocation20_spill] sm:$0xff]  ;;  %v8301_v51 = vld [vmem:[#allocation18_spill] sm:$0xff] }
 0x3df   :  { %4185 = vmatprep.subr.bf16.mxu0 %v4184_v26  ;;  %v3802_v36 = vpack.c.bf16 %v8254_v6, %v8253_v57  ;;  %v4192_v49 = vpack.c.bf16 %v8260_v11, %v8259_v28  ;;  %v3806_v33 = vpack.c.bf16 %v8262_v4, %v8261_v7  ;;  %v8264_v46 = vand.u32 4294901760, %v7792_v16  ;;  %v8303_v41 = vld [vmem:[#allocation242_spill] sm:$0xff]  ;;  %v8304_v63 = vld [vmem:[#allocation27_spill] sm:$0xff]  ;;  %v8306_v28 = vld [vmem:[#allocation241_spill] sm:$0xff] }
 0x3e0   :  { %3799 = vmatpush1.bf16.msra.mxu1 %v3798_v50  ;;  %v8265_v30 = vand.u32 4294901760, %v7785_v10  ;;  %v8266_v8 = vand.u32 4294901760, %v7786_v19  ;;  %v8267_v42 = vand.u32 4294901760, %v7879_v35  ;;  %v8268_v53 = vand.u32 4294901760, %v7880_v58  ;;  %v8307_v11 = vld [vmem:[#allocation33_spill] sm:$0xff]  ;;  %v8309_v7 = vld [vmem:[#allocation38_spill] sm:$0xff] }
 0x3e1   :  { %3801 = vmatprep.subr.bf16.mxu1 %v3800_v25  ;;  %v3808_v61 = vpack.c.bf16 %v8264_v46, %v8263_v56  ;;  %v8269_v37 = vand.u32 4294901760, %v7793_v55  ;;  %v8270_v9 = vand.u32 4294901760, %v7794_v5  ;;  %v8271_v16 = vand.u32 4294901760, %v7883_v14  ;;  %v8310_v4 = vld [vmem:[#allocation36_spill] sm:$0xff]  ;;  %v8312_v56 = vld [vmem:[#allocation41_spill] sm:$0xff]  ;;  %v8313_v46 = vld [vmem:[#allocation50_spill] sm:$0xff] }
 0x3e2   :  { %4187 = vmatpush1.bf16.msra.mxu0 %v4186_v38  ;;  %v4194_v26 = vpack.c.bf16 %v8266_v8, %v8265_v30  ;;  %v4196_v0 = vpack.c.bf16 %v8268_v53, %v8267_v42  ;;  %v8272_v10 = vand.u32 4294901760, %v7810_v59  ;;  %v8273_v19 = vand.u32 4294901760, %v7881_v34  ;;  %v8315_v30 = vld [vmem:[#allocation56_spill] sm:$0xff]  ;;  %v8316_v8 = vld [vmem:[#allocation53_spill] sm:$0xff]  ;;  %v8318_v42 = vld [vmem:[#allocation59_spill] sm:$0xff] }
 0x3e3   :  { %4189 = vmatprep.subr.bf16.mxu0 %v4188_v27  ;;  %v3810_v40 = vpack.c.bf16 %v8270_v9, %v8269_v37  ;;  %v8274_v35 = vand.u32 4294901760, %v7882_v22  ;;  %v8275_v58 = vand.u32 4294901760, %v7884_v29  ;;  %v8276_v55 = vand.u32 4294901760, %v7885_v2  ;;  %v8319_v53 = vld [vmem:[#allocation66_spill] sm:$0xff]  ;;  %v8322_v9 = vld [vmem:[#allocation67_spill] sm:$0xff] }
 0x3e4   :  { %3803 = vmatpush1.bf16.msra.mxu1 %v3802_v36  ;;  %v3812_v44 = vpack.c.bf16 %v8272_v10, %v8271_v16  ;;  %v8277_v5 = vand.u32 4294901760, %v7812_v15  ;;  %v8278_v14 = vand.u32 4294901760, %v7813_v39  ;;  %v8279_v59 = vand.u32 4294901760, %v7820_v24  ;;  %v8298_v36 = vld [vmem:[#allocation14_spill] sm:$0xff]  ;;  %v8324_v16 = vld [vmem:[#allocation77_spill] sm:$0xff] }
 0x3e5   :  { %3805 = vmatprep.subr.bf16.mxu1 %v3804_v32  ;;  %v4198_v13 = vpack.c.bf16 %v8274_v35, %v8273_v19  ;;  %v4200_v50 = vpack.c.bf16 %v8276_v55, %v8275_v58  ;;  %v8280_v34 = vand.u32 4294901760, %v7825_v31  ;;  %v8281_v22 = vand.u32 4294901760, %v7886_v18  ;;  %v8302_v32 = vld [vmem:[#allocation160_spill] sm:$0xff]  ;;  %v8321_v37 = vld [vmem:[#allocation74_spill] sm:$0xff] }
 0x3e6   :  { %4191 = vmatpush1.bf16.msra.mxu0 %v4190_v20  ;;  %v3814_v1 = vpack.c.bf16 %v8278_v14, %v8277_v5  ;;  %v8282_v29 = vand.u32 4294901760, %v7887_v47  ;;  %v8283_v2 = vand.u32 4294901760, %v7890_v52  ;;  %v8284_v15 = vand.u32 4294901760, %v7891_v45  ;;  %v8290_v47 = vld [vmem:[#allocation198_spill] sm:$0xff]  ;;  %v8294_v45 = vld [vmem:[#allocation204_spill] sm:$0xff]  ;;  %v8305_v20 = vld [vmem:[#allocation23_spill] sm:$0xff] }
 0x3e7   :  { %4193 = vmatprep.subr.bf16.mxu0 %v4192_v49  ;;  %v3816_v60 = vpack.c.bf16 %v8280_v34, %v8279_v59  ;;  %v8285_v39 = vand.u32 4294901760, %v7888_v3  ;;  %v8286_v24 = vand.u32 4294901760, %v7889_v23  ;;  %v8287_v31 = vand.u32 4294901760, %v7838_v12  ;;  %v8296_v3 = vld [vmem:[#allocation205_spill] sm:$0xff]  ;;  %v8325_v10 = vld [vmem:[#allocation86_spill] sm:$0xff]  ;;  %v8327_v19 = vld [vmem:[#allocation92_spill] sm:$0xff] }
 0x3e8   :  { %3807 = vmatpush1.bf16.msra.mxu1 %v3806_v33  ;;  %v4202_v21 = vpack.c.bf16 %v8282_v29, %v8281_v22  ;;  %v4204_v25 = vpack.c.bf16 %v8284_v15, %v8283_v2  ;;  %v8289_v18 = vand.u32 4294901760, %v8288_v43  ;;  %v8291_v17 = vand.u32 4294901760, %v8290_v47  ;;  %v8299_v12 = vld [vmem:[#allocation161_spill] sm:$0xff]  ;;  %v8311_v33 = vld [vmem:[#allocation44_spill] sm:$0xff]  ;;  %v8328_v35 = vld [vmem:[#allocation90_spill] sm:$0xff] }
 0x3e9   :  { %3809 = vmatprep.subr.bf16.mxu1 %v3808_v61  ;;  %v3818_v54 = vpack.c.bf16 %v8286_v24, %v8285_v39  ;;  %v8293_v52 = vand.u32 4294901760, %v8292_v48  ;;  %v8295_v57 = vand.u32 4294901760, %v8294_v45  ;;  %v8297_v6 = vand.u32 4294901760, %v8296_v3  ;;  %v8308_v49 = vld [vmem:[#allocation29_spill] sm:$0xff]  ;;  %v8314_v61 = vld [vmem:[#allocation47_spill] sm:$0xff]  ;;  %v8330_v58 = vld [vmem:[#allocation96_spill] sm:$0xff] }
 0x3ea   :  { %4195 = vmatpush1.bf16.msra.mxu0 %v4194_v26  ;;  %v3820_v38 = vpack.c.bf16 %v8289_v18, %v8287_v31  ;;  %v8317_v26 = vld [vmem:[#allocation62_spill] sm:$0xff]  ;;  %v8333_v5 = vld [vmem:[#allocation104_spill] sm:$0xff]  ;;  %v8334_v14 = vld [vmem:[#allocation103_spill] sm:$0xff] }
 0x3eb   :  { %4197 = vmatprep.subr.bf16.mxu0 %v4196_v0  ;;  %v4206_v27 = vpack.c.bf16 %v8293_v52, %v8291_v17  ;;  %v3822_v23 = vpack.c.bf16 %v8297_v6, %v8295_v57  ;;  %v8320_v0 = vld [vmem:[#allocation65_spill] sm:$0xff]  ;;  %v8331_v55 = vld [vmem:[#allocation102_spill] sm:$0xff]  ;;  %v8337_v34 = vld [vmem:[#allocation108_spill] sm:$0xff] }
 0x3ec   :  { %3811 = vmatpush1.bf16.msra.mxu1 %v3810_v40  ;;  %v8323_v40 = vld [vmem:[#allocation80_spill] sm:$0xff]  ;;  %v8336_v59 = vld [vmem:[#allocation105_spill] sm:$0xff]  ;;  %v8339_v22 = vld [vmem:[#allocation110_spill] sm:$0xff] }
 0x3ed   :  { %3813 = vmatprep.subr.bf16.mxu1 %v3812_v44  ;;  %v8326_v44 = vld [vmem:[#allocation84_spill] sm:$0xff]  ;;  %v8340_v29 = vld [vmem:[#allocation109_spill] sm:$0xff]  ;;  %v8342_v2 = vld [vmem:[#allocation111_spill] sm:$0xff] }
 0x3ee   :  { %4199 = vmatpush1.bf16.msra.mxu0 %v4198_v13  ;;  %v8329_v13 = vld [vmem:[#allocation99_spill] sm:$0xff]  ;;  %v8343_v15 = vld [vmem:[#allocation114_spill] sm:$0xff]  ;;  %v8345_v39 = vld [vmem:[#allocation116_spill] sm:$0xff] }
 0x3ef   :  { %4201 = vmatprep.subr.bf16.mxu0 %v4200_v50  ;;  %v8332_v50 = vld [vmem:[#allocation101_spill] sm:$0xff]  ;;  %v8346_v24 = vld [vmem:[#allocation115_spill] sm:$0xff]  ;;  %v8348_v31 = vld [vmem:[#allocation118_spill] sm:$0xff] }
 0x3f0   :  { %3815 = vmatpush1.bf16.msra.mxu1 %v3814_v1  ;;  %v8335_v1 = vld [vmem:[#allocation106_spill] sm:$0xff]  ;;  %v8349_v43 = vld [vmem:[#allocation120_spill] sm:$0xff]  ;;  %v8350_v18 = vld [vmem:[#allocation119_spill] sm:$0xff] }
 0x3f1   :  { %3817 = vmatprep.subr.bf16.mxu1 %v3816_v60  ;;  %v8338_v60 = vld [vmem:[#allocation107_spill] sm:$0xff]  ;;  %v8352_v47 = vld [vmem:[#allocation121_spill] sm:$0xff]  ;;  %v8353_v17 = vld [vmem:[#allocation170_spill] sm:$0xff] }
 0x3f2   :  { %4203 = vmatpush1.bf16.msra.mxu0 %v4202_v21  ;;  %v8341_v21 = vld [vmem:[#allocation112_spill] sm:$0xff]  ;;  %v8354_v48 = vld [vmem:[#allocation139_spill] sm:$0xff]  ;;  %v8355_v52 = vld [vmem:[#allocation177_spill] sm:$0xff] }
 0x3f3   :  { %4205 = vmatprep.subr.bf16.mxu0 %v4204_v25  ;;  %v8344_v25 = vld [vmem:[#allocation113_spill] sm:$0xff]  ;;  %v8357_v45 = vld [vmem:[#allocation183_spill] sm:$0xff]  ;;  %v8359_v3 = vld [vmem:[#allocation188_spill] sm:$0xff] }
 0x3f4   :  { %3819 = vmatpush1.bf16.msra.mxu1 %v3818_v54  ;;  %v8347_v54 = vld [vmem:[#allocation117_spill] sm:$0xff]  ;;  %v8358_v57 = vld [vmem:[#allocation179_spill] sm:$0xff]  ;;  %v8360_v6 = vld [vmem:[#allocation186_spill] sm:$0xff] }
 0x3f5   :  { %3821 = vmatprep.subr.bf16.mxu1 %v3820_v38  ;;  %v8351_v38 = vld [vmem:[#allocation138_spill] sm:$0xff] }
 0x3f6   :  { %4207 = vmatpush1.bf16.msra.mxu0 %v4206_v27  ;;  %v8356_v27 = vld [vmem:[#allocation173_spill] sm:$0xff] }
 0x3f7   :  { %4209 = vmatprep.subr.bf16.mxu0 %v8298_v36  ;;  %v8362_v36 = vld [vmem:[#allocation191_spill] sm:$0xff] }
 0x3f8   :  { %3823 = vmatpush1.bf16.msra.mxu1 %v3822_v23  ;;  %v8361_v23 = vld [vmem:[#allocation194_spill] sm:$0xff] }
 0x3f9   :  { %3250 = vmatmul.mubr.f32.vlgmr.msra.gmra.mrb[0].mxu0 %v8299_v12  ;;  %3825 = vmatprep.subr.bf16.mxu1 %v8300_v62  ;;  %v8363_v62 = vld [vmem:[#allocation200_spill] sm:$0xff] }
 0x3fa   :  { %4211 = vmatpush1.bf16.msra.mxu0 %v8301_v51  ;;  %3385 = vmatprep.mubr.f32.mxu0 %v8302_v32  ;;  %v8364_v51 = vld [vmem:[#allocation197_spill] sm:$0xff]  ;;  %v8365_v32 = vld [vmem:[#allocation203_spill] sm:$0xff] }
 0x3fb   :  { %1966 = vmatmul.mubr.f32.vlgmr.msra.gmra.mrb[0].mxu1 %v8303_v41  ;;  %4213 = vmatprep.subr.bf16.mxu0 %v8304_v63 }
 0x3fc   :  { %3827 = vmatpush1.bf16.msra.mxu1 %v8305_v20  ;;  %2101 = vmatprep.mubr.f32.mxu1 %v8306_v28 }
 0x3fd   :  { %3829 = vmatprep.subr.bf16.mxu1 %v8307_v11 }
 0x3fe   :  { %4215 = vmatpush1.bf16.msra.mxu0 %v8308_v49 }
 0x3ff   :  { %4217 = vmatprep.subr.bf16.mxu0 %v8309_v7 }
 0x400   :  { %3831 = vmatpush1.bf16.msra.mxu1 %v8310_v4 }
 0x401   :  { %3833 = vmatprep.subr.bf16.mxu1 %v8311_v33 }
 0x402   :  { %4219 = vmatpush1.bf16.msra.mxu0 %v8312_v56 }
 0x403   :  { %4221 = vmatprep.subr.bf16.mxu0 %v8313_v46 }
 0x404   :  { %3835 = vmatpush1.bf16.msra.mxu1 %v8314_v61 }
 0x405   :  { %3837 = vmatprep.subr.bf16.mxu1 %v8315_v30 }
 0x406   :  { %4223 = vmatpush1.bf16.msra.mxu0 %v8316_v8  ;;  %v4412_v8 = vmov 1966171168  }
 0x407   :  { %4225 = vmatprep.subr.bf16.mxu0 %v8317_v26 }
 0x408   :  { %3839 = vmatpush1.bf16.msra.mxu1 %v8318_v42  ;;  %v8366_v42 = vld [vmem:[#allocation11_spill] sm:$0xff] }
 0x409   :  { %3841 = vmatprep.subr.bf16.mxu1 %v8319_v53 }
 0x40a   :  { %4227 = vmatpush1.bf16.msra.mxu0 %v8320_v0 }
 0x40b   :  { %4229 = vmatprep.subr.bf16.mxu0 %v8321_v37 }
 0x40c   :  { %3843 = vmatpush1.bf16.msra.mxu1 %v8322_v9 }
 0x40d   :  { %3845 = vmatprep.subr.bf16.mxu1 %v8323_v40 }
 0x40e   :  { %4231 = vmatpush1.bf16.msra.mxu0 %v8324_v16 }
 0x40f   :  { %4233 = vmatprep.subr.bf16.mxu0 %v8325_v10 }
 0x410   :  { %3847 = vmatpush1.bf16.msra.mxu1 %v8326_v44  ;;  %v8367_v44 = vld [vmem:[#allocation12_spill] sm:$0xff] }
 0x411   :  { %3849 = vmatprep.subr.bf16.mxu1 %v8327_v19 }
 0x412   :  { %4235 = vmatpush1.bf16.msra.mxu0 %v8328_v35  ;;  %v8368_v35 = vld [vmem:[#allocation13_spill] sm:$0xff] }
 0x413   :  { %4237 = vmatprep.subr.bf16.mxu0 %v8329_v13 }
 0x414   :  { %3851 = vmatpush1.bf16.msra.mxu1 %v8330_v58 }
 0x415   :  { %3853 = vmatprep.subr.bf16.mxu1 %v8331_v55 }
 0x416   :  { %4239 = vmatpush1.bf16.msra.mxu0 %v8332_v50  ;;  %v8369_v50 = vld [vmem:[#allocation224_spill] sm:$0xff] }
 0x417   :  { %4241 = vmatprep.subr.bf16.mxu0 %v8333_v5 }
 0x418   :  { %3855 = vmatpush1.bf16.msra.mxu1 %v8334_v14  ;;  %v8370_v14 = vld [vmem:[#allocation225_spill] sm:$0xff] }
 0x419   :  { %3857 = vmatprep.subr.bf16.mxu1 %v8335_v1 }
 0x41a   :  { %4243 = vmatpush1.bf16.msra.mxu0 %v8336_v59  ;;  %v8371_v59 = vld [vmem:[#allocation230_spill] sm:$0xff] }
 0x41b   :  { %4245 = vmatprep.subr.bf16.mxu0 %v8337_v34 }
 0x41c   :  { %3859 = vmatpush1.bf16.msra.mxu1 %v8338_v60  ;;  %v8372_v60 = vld [vmem:[#allocation231_spill] sm:$0xff] }
 0x41d   :  { %3861 = vmatprep.subr.bf16.mxu1 %v8339_v22 }
 0x41e   :  { %4247 = vmatpush1.bf16.msra.mxu0 %v8340_v29  ;;  %v8373_v29 = vld [vmem:[#allocation236_spill] sm:$0xff] }
 0x41f   :  { %4249 = vmatprep.subr.bf16.mxu0 %v8341_v21 }
 0x420   :  { %3863 = vmatpush1.bf16.msra.mxu1 %v8342_v2  ;;  %v8374_v2 = vld [vmem:[#allocation237_spill] sm:$0xff] }
 0x421   :  { %3865 = vmatprep.subr.bf16.mxu1 %v8343_v15 }
 0x422   :  { %4251 = vmatpush1.bf16.msra.mxu0 %v8344_v25  ;;  %v8375_v25 = vld [vmem:[#allocation238_spill] sm:$0xff] }
 0x423   :  { %4253 = vmatprep.subr.bf16.mxu0 %v8345_v39 }
 0x424   :  { %3867 = vmatpush1.bf16.msra.mxu1 %v8346_v24  ;;  %v8376_v24 = vld [vmem:[#allocation239_spill] sm:$0xff] }
 0x425   :  { %3869 = vmatprep.subr.bf16.mxu1 %v8347_v54 }
 0x426   :  { %4255 = vmatpush1.bf16.msra.mxu0 %v8348_v31  ;;  %v8377_v31 = vld [vmem:[#allocation226_spill] sm:$0xff] }
 0x427   :  { %4257 = vmatprep.subr.bf16.mxu0 %v8349_v43 }
 0x428   :  { %3871 = vmatpush1.bf16.msra.mxu1 %v8350_v18  ;;  %v8378_v18 = vld [vmem:[#allocation227_spill] sm:$0xff] }
 0x429   :  { %3873 = vmatprep.subr.bf16.mxu1 %v8351_v38 }
 0x42a   :  { %4259 = vmatpush1.bf16.msra.mxu0 %v8352_v47  ;;  %v8379_v47 = vld [vmem:[#allocation228_spill] sm:$0xff] }
 0x42b   :  { %4261 = vmatprep.subr.bf16.mxu0 %v8353_v17 }
 0x42c   :  { %3875 = vmatpush1.bf16.msra.mxu1 %v8354_v48  ;;  %v8380_v48 = vld [vmem:[#allocation229_spill] sm:$0xff] }
 0x42d   :  { %3877 = vmatprep.subr.bf16.mxu1 %v8355_v52 }
 0x42e   :  { %4263 = vmatpush1.bf16.msra.mxu0 %v8356_v27  ;;  %v8381_v27 = vld [vmem:[#allocation232_spill] sm:$0xff] }
 0x42f   :  { %4265 = vmatprep.subr.bf16.mxu0 %v8357_v45 }
 0x430   :  { %3879 = vmatpush1.bf16.msra.mxu1 %v8358_v57  ;;  %v8382_v57 = vld [vmem:[#allocation233_spill] sm:$0xff] }
 0x431   :  { %3881 = vmatprep.subr.bf16.mxu1 %v8359_v3 }
 0x432   :  { %4267 = vmatpush1.bf16.msra.mxu0 %v8360_v6  ;;  %v8383_v6 = vld [vmem:[#allocation234_spill] sm:$0xff] }
 0x433   :  { %4269 = vmatprep.subr.bf16.mxu0 %v8361_v23 }
 0x434   :  { %3883 = vmatpush1.bf16.msra.mxu1 %v8362_v36  ;;  %v8384_v36 = vld [vmem:[#allocation235_spill] sm:$0xff] }
 0x435   :  { %3885 = vmatprep.subr.bf16.mxu1 %v8363_v62 }
 0x436   :  { %4271 = vmatpush1.bf16.msra.mxu0 %v8364_v51 }
 0x438   :  { %3887 = vmatpush1.bf16.msra.mxu1 %v8365_v32 }
 0x439   :  { %3387 = vmatmul.mubr.f32.vlgmr.msra.gmra.mrb[0].mxu0 %v8299_v12  ;;  %v3409_v12 = vunpack.c.l.s4 %v4412_v8 }
 0x43b   :  { %2103 = vmatmul.mubr.f32.vlgmr.msra.gmra.mrb[0].mxu1 %v8303_v41  ;;  %v3410_v26 = vunpack.c.0.s8 %v3409_v12 }
 0x43d   :  { %v3413_v53 = vsub.s32 %v3410_v26, %v8366_v42 }
 0x50c   :  { %v3388_v63 = vpop.f32.mrb[0].mxu0 }
 0x50d   :  { %v3390_v20 = vpop.f32.mrb[1].mxu0 }
 0x50e   :  { %v2104_v28 = vpop.f32.mrb[0].mxu1 }
 0x50f   :  { %v4272_v11 = vadd.f32 %v3388_v63, %v2104_v28  ;;  %v2106_v49 = vpop.f32.mrb[1].mxu1 }
 0x510   :  { %v4273_v7 = vadd.f32 %v3390_v20, %v2106_v49 }
 0x511   :  { %v3502_v4 = vmul.f32 -1.442695, %v4272_v11 }
 0x512   :  { %v3503_v33 = vmul.f32 -1.442695, %v4273_v7 }
 0x513   :  { %4311 = vpow2.f32 %v3502_v4 }
 0x514   :  { %4313 = vpow2.f32 %v3503_v33 }
 0x51d   :  { %v4312_v56 = vpop.eup %4311 }
 0x51e   :  { %v4314_v46 = vpop.eup %4313  ;;  %v3399_v61 = vadd.f32 1.0, %v4312_v56 }
 0x51f   :  { %v3400_v30 = vadd.f32 1.0, %v4314_v46 }
 0x520   :  { %4315 = vrcp.f32 %v3399_v61 }
 0x521   :  { %4317 = vrcp.f32 %v3400_v30 }
 0x52a   :  { %v4316_v41 = vpop.eup %4315 }
 0x52b   :  { %v4318_v0 = vpop.eup %4317 }
 0x52c   :  { %v3407_v37 = vcombine.low %v4316_v41, %v4318_v0 }
 0x52e   :  { %v3414_v9 = vrot.slane %v3407_v37, %v3413_v53 }
 0x530   :  { %v3415_v40 = vcombine.high %v3414_v9, %v3414_v9  ;;  %v3422_v16 = vrot.slane %v3414_v9, %v3413_v53 }
 0x532   :  { %v3429_v10 = vrot.slane %v3415_v40, %v3413_v53  ;;  %v3433_v19 = vrot.slane %v3422_v16, %v8367_v44  ;;  %v3437_v13 = vrot.slane %v3422_v16, %v8368_v35 }
 0x534   :  { %v3441_v58 = vrot.slane %v3429_v10, %v8367_v44  ;;  %v3445_v55 = vrot.slane %v3429_v10, %v8368_v35  ;;  %v3450_v5 = vmul.f32 %v3433_v19, %v8369_v50  ;;  %v3451_v1 = vmul.f32 %v3437_v13, %v8370_v14 }
 0x535   :  { %v3452_v34 = vmul.f32 %v3433_v19, %v8371_v59  ;;  %v3453_v22 = vmul.f32 %v3437_v13, %v8372_v60  ;;  %v3454_v21 = vmul.f32 %v3433_v19, %v8373_v29  ;;  %v3455_v15 = vmul.f32 %v3437_v13, %v8374_v2 }
 0x536   :  { %v3456_v39 = vmul.f32 %v3433_v19, %v8375_v25  ;;  %v3457_v54 = vmul.f32 %v3437_v13, %v8376_v24  ;;  %v3458_v43 = vmul.f32 %v3441_v58, %v8377_v31  ;;  %v3459_v38 = vmul.f32 %v3445_v55, %v8378_v18  ;;  %3466 = vst [vmem:[#allocation7] sm:$0xff] %v3450_v5 }
 0x537   :  { %3467 = vst [vmem:[#allocation7 + $0x8] sm:$0xff] %v3451_v1  ;;  %v3460_v17 = vmul.f32 %v3441_v58, %v8379_v47  ;;  %v3461_v52 = vmul.f32 %v3445_v55, %v8380_v48  ;;  %v3462_v45 = vmul.f32 %v3441_v58, %v8381_v27  ;;  %v3463_v3 = vmul.f32 %v3445_v55, %v8382_v57 }
 0x538   :  { %3468 = vst [vmem:[#allocation7 + $0x10] sm:$0xff] %v3452_v34  ;;  %3469 = vst [vmem:[#allocation7 + $0x18] sm:$0xff] %v3453_v22  ;;  %v3464_v23 = vmul.f32 %v3441_v58, %v8383_v6  ;;  %v3465_v62 = vmul.f32 %v3445_v55, %v8384_v36 }
 0x539   :  { %3470 = vst [vmem:[#allocation7 + $0x20] sm:$0xff] %v3454_v21  ;;  %3471 = vst [vmem:[#allocation7 + $0x28] sm:$0xff] %v3455_v15 }
 0x53a   :  { %3472 = vst [vmem:[#allocation7 + $0x30] sm:$0xff] %v3456_v39  ;;  %3473 = vst [vmem:[#allocation7 + $0x38] sm:$0xff] %v3457_v54 }
 0x53b   :  { %3474 = vst [vmem:[#allocation7 + $0x40] sm:$0xff] %v3458_v43  ;;  %3475 = vst [vmem:[#allocation7 + $0x48] sm:$0xff] %v3459_v38 }
 0x53c   :  { %3476 = vst [vmem:[#allocation7 + $0x50] sm:$0xff] %v3460_v17  ;;  %3477 = vst [vmem:[#allocation7 + $0x58] sm:$0xff] %v3461_v52 }
 0x53d   :  { %3478 = vst [vmem:[#allocation7 + $0x60] sm:$0xff] %v3462_v45  ;;  %3479 = vst [vmem:[#allocation7 + $0x68] sm:$0xff] %v3463_v3 }
 0x53e   :  { %3480 = vst [vmem:[#allocation7 + $0x70] sm:$0xff] %v3464_v23  ;;  %3481 = vst [vmem:[#allocation7 + $0x78] sm:$0xff] %v3465_v62 }
 0x53f   :  { %4390 = shalt.err (!%p4387_p6)
}
 0x540   :  { %s4391_s20 = scalar_lea.hbm %s6870_s4, 2048 }
 0x541   :  { %p4392_p7 = scmp.ne.s32.totalorder %s6870_s4, %s4391_s20  ;;  %p4395_p8 = scmp.lt.u32.totalorder %s4391_s20, %s6870_s4 }
 0x543   :  { %p4397_p9 = pnand %p4395_p8, %p4392_p7 }
 0x545   :  { %4400 = shalt.err (!%p4397_p9)
}
 0x546   :  { %3493 = dma.vmem_to_hbm [thread:$0]  %s3488_s16, 2048, %s6870_s4, [#allocation4], %s4408_s25, %s4408_s25, %s4409_s26  }
 0x547   :  { %4405 = dma.done.wait [#allocation4], 2048  }
 0x548   :  { %4406 = vsyncadd [#allocation4], 4294965248 }
 0x549   :  { %3497 = vsyncpa [#allocation3], 1 }
 0x54a   :  { %3498 = vsyncpa [#allocation6], 1 }
 0x54b   :  { %3499 = vsyncpa [#allocation4], 1 }

</bundles_post_ra>
